<compile_context>
chip_gen: v5e
topology: v5e:2x2
jax: 0.10.0
libtpu: 0.0.40
codegen_flags: <defaults>
</compile_context>

<pallas_src>
import math
from functools import partial

import numpy as np
import jax
import jax.numpy as jnp
from jax.experimental import pallas as pl
from jax.experimental.pallas import tpu as pltpu

_CONV_K = 5                    # ResConvBlock conv kernel size (padding=2, 'same')
_MXU_DTYPE = jnp.bfloat16      # MXU operand dtype (f32 accumulation); native on v5e/v6e/v7x

# cubic upsampling taps from the torch module (_kernels['cubic'] * 2)
_CUBIC_KERNEL = np.array(
    [-0.01171875, -0.03515625, 0.11328125, 0.43359375,
     0.43359375, 0.11328125, -0.03515625, -0.01171875], dtype=np.float64) * 2.0


def upsample_matrix(L):
    """(L, 2L) matrix M with Upsample1d(cubic, learnable=False)(x) == x @ M.

    Folds the reflect padding ((pad+1)//2 = 2 per side) and the stride-2
    transposed depthwise conv (kernel 8, padding 2*pad+1 = 7) into one constant.
    """
    k = _CUBIC_KERNEL
    taps = k.shape[0]                      # 8
    pad = taps // 2 - 1                    # 3
    p = (pad + 1) // 2                     # 2 (reflect pad each side)
    Lp = L + 2 * p
    # transposed conv:  y[j] = sum_i xp[i] * k[j + (2*pad+1) - 2*i]
    U = np.zeros((Lp, 2 * L), dtype=np.float64)
    for j in range(2 * L):
        for i in range(Lp):
            t = j + (2 * pad + 1) - 2 * i
            if 0 <= t < taps:
                U[i, j] = k[t]
    # reflect padding matrix:  xp[j] = x[reflect(j - p)]
    R = np.zeros((L, Lp), dtype=np.float64)
    for j in range(Lp):
        s = j - p
        if s < 0:
            s = -s
        elif s >= L:
            s = 2 * (L - 1) - s
        R[s, j] = 1.0
    return jnp.asarray(R @ U, dtype=jnp.float32)


# ----------------------------------------------------------------------------
# fused BlockUp1D kernel (upsample + concat-fold + 3 ResConvBlocks, one call)
# ----------------------------------------------------------------------------

def _make_kernel(K, has_temb, has_skip, n_blocks, mxu_dtype):
    inv_sqrt2 = 1.0 / math.sqrt(2.0)
    pad = (K - 1) // 2

    def kernel(*refs):
        refs = list(refs)
        o_ref = refs.pop()                                  # output ref is last
        x_ref = refs.pop(0)                                 # (1, Cin, L)
        res_ref = refs.pop(0)                               # (1, Cres, L2)
        up_ref = refs.pop(0)                                # (L, L2) folded cubic upsample
        tp_ref = refs.pop(0) if has_temb else None          # (1, n_blocks*Cmid, Lt)

        f32 = jnp.float32
        res = res_ref[0].astype(f32)                        # (Cres, L2)
        L2 = res.shape[1]
        lane = jax.lax.broadcasted_iota(jnp.int32, (1, L2), 1)

        # Upsample1d(cubic, learnable=False): reflect pad + stride-2 transposed
        # depthwise conv, folded into one constant (L, 2L) matrix -> single dot.
        # TODO(synk): for production-scale L switch to the banded 8-tap even/odd
        # phase form (O(L) memory) instead of this O(L^2) constant.
        up = jnp.dot(x_ref[0].astype(mxu_dtype), up_ref[...],
                     preferred_element_type=f32)            # (Cin, L2)

        if has_temb:
            tp_all = tp_ref[0].astype(f32)                  # (n_blocks*Cmid, Lt)
            cmid = tp_all.shape[0] // n_blocks

        def tap(h, d):
            """tap(h, d)[:, l] == h[:, l + d], zero outside [0, L2) ('same' zero pad)."""
            if d == 0:
                return h
            r = pltpu.roll(h, (-d) % L2, axis=1)            # lane rotation (XLU slot)
            if d > 0:
                return jnp.where(lane < L2 - d, r, 0.0)
            return jnp.where(lane >= -d, r, 0.0)

        def conv5(sources, w_refs, bias):
            """'same' Conv1d(K) as K per-tap MXU matmuls over roll-shifted activations.

            sources: list of (C_src, L2) f32 arrays (virtual channel-concat);
            w_refs:  matching list of (K, Cout, C_src) bf16 weight refs.
            """
            acc = None
            for h, w_ref in zip(sources, w_refs):
                for k in range(K):
                    t = tap(h, k - pad).astype(mxu_dtype)
                    p = jnp.dot(w_ref[k], t, preferred_element_type=f32)
                    acc = p if acc is None else acc + p
            return acc + bias

        def group_norm(h, gamma, beta, eps=1e-5):
            # GroupNorm(1, C): biased variance over the whole (C, L2) slab.
            # Two-pass mean/var kept on purpose (exact torch numerics), all f32.
            inv_n = 1.0 / (h.shape[0] * h.shape[1])
            mean = jnp.sum(jnp.sum(h, axis=1, keepdims=True),
                           axis=0, keepdims=True) * inv_n
            d = h - mean
            var = jnp.sum(jnp.sum(d * d, axis=1, keepdims=True),
                          axis=0, keepdims=True) * inv_n
            return d * (jax.lax.rsqrt(var + eps) * gamma) + beta

        def gelu(v):                                        # nn.GELU() default: exact erf
            return 0.5 * v * (1.0 + jax.lax.erf(v * inv_sqrt2))

        sources = [up, res]                 # virtual torch.cat([up, res], dim=1)
        for b in range(n_blocks):
            n_src = len(sources)
            skip_refs = [refs.pop(0) for _ in range(n_src)] if has_skip[b] else None
            w1_refs = [refs.pop(0) for _ in range(n_src)]
            v1 = refs.pop(0)[...].astype(f32)               # (Cmid, 3) = [b1 | gn1_g | gn1_b]
            w2_ref = refs.pop(0)
            v2 = refs.pop(0)[...].astype(f32)               # (Cout, 3) = [b2 | gn2_g | gn2_b]

            if skip_refs is not None:                       # conv_skip (1x1, bias=False)
                residual = None
                for h, s_ref in zip(sources, skip_refs):
                    p = jnp.dot(s_ref[...], h.astype(mxu_dtype),
                                preferred_element_type=f32)
                    residual = p if residual is None else residual + p
            elif n_src == 1:
                residual = sources[0]
            else:                                           # rare: no conv_skip on concat block
                residual = jnp.concatenate(sources, axis=0)

            h = conv5(sources, w1_refs, v1[:, 0:1])         # conv_1 (+bias)
            h = group_norm(h, v1[:, 1:2], v1[:, 2:3])       # group_norm_1
            if has_temb:                                    # + temb_proj(temb) (hoisted)
                h = h + tp_all[b * cmid:(b + 1) * cmid, :]
            h = gelu(h)                                     # gelu_1
            h = conv5([h], [w2_ref], v2[:, 0:1])            # conv_2
            h = group_norm(h, v2[:, 1:2], v2[:, 2:3])       # group_norm_2 (is_last=False)
            h = gelu(h)                                     # gelu_2
            sources = [h + residual]

        o_ref[0] = sources[0].astype(o_ref.dtype)

    return kernel


# ----------------------------------------------------------------------------
# BlockUp1D forward (single pallas_call)
# ----------------------------------------------------------------------------

def block_up_1d(params, hidden_states, res_hidden_states_tuple, temb=None, *,
                downsampling_fac=1):
    """BlockUp1D.forward: Upsample1d(cubic) -> cat(res_hidden) -> 3 x ResConvBlock."""
    blocks = params["resnets"]
    n_blocks = len(blocks)
    B, Cin, L = hidden_states.shape
    res_hidden = res_hidden_states_tuple[-1]
    Cres, L2 = res_hidden.shape[1], res_hidden.shape[2]
    assert L2 == 2 * L, "res_hidden length must be 2x hidden_states length"
    K = _CONV_K
    Cout = blocks[-1]["w2"].shape[1]
    has_temb = temb is not None
    has_skip = tuple("skip_w" in blk for blk in blocks)

    # --- tiny trace-time / XLA glue (no activation HBM round trips) ------------
    up_mat = upsample_matrix(L).astype(_MXU_DTYPE)

    tp = None
    if has_temb:
        if temb.shape[-1] > 1:
            # F.interpolate(temb, ..., mode='nearest') is a data-dependent gather,
            # kept outside the kernel (temb is tiny).  torch divides by
            # (downsampling_fac // 2), which is 0 for the default fac=1; guard it.
            fac = max(downsampling_fac // 2, 1)
            lt_out = temb.shape[-1] // fac
            idx = (jnp.arange(lt_out) * (temb.shape[-1] / lt_out)).astype(jnp.int32)
            temb = temb[:, :, idx]
        # hoisted temb_proj for all blocks: one tiny XLA dot instead of three
        # degenerate N=1 MXU pushes per batch element inside the kernel.
        tp = jnp.concatenate(
            [jnp.einsum("oc,bcl->bol", blk["temb_w"].astype(jnp.float32),
                        temb.astype(jnp.float32)) + blk["temb_b"][None, :, None]
             for blk in blocks], axis=1)                     # (B, n_blocks*Cmid, Lt)

    args, in_specs = [], []

    def add(a, block_shape, index_map):
        args.append(a)
        in_specs.append(pl.BlockSpec(block_shape, index_map))

    def add_const(a):                      # weights: DMA'd once, VMEM-resident
        imap = (lambda i: (0, 0)) if a.ndim == 2 else (lambda i: (0, 0, 0))
        add(a, a.shape, imap)

    add(hidden_states, (1, Cin, L), lambda i: (i, 0, 0))
    add(res_hidden, (1, Cres, L2), lambda i: (i, 0, 0))
    add_const(up_mat)
    if has_temb:
        add(tp, (1,) + tp.shape[1:], lambda i: (i, 0, 0))

    for b, blk in enumerate(blocks):
        n_src = 2 if b == 0 else 1
        if has_skip[b]:
            sw = blk["skip_w"].astype(_MXU_DTYPE)
            if n_src == 2:                 # W @ cat(up, res) == W_up @ up + W_res @ res
                add_const(sw[:, :Cin]); add_const(sw[:, Cin:])
            else:
                add_const(sw)
        w1 = blk["w1"].astype(_MXU_DTYPE)  # (K, Cmid, Cin_b), per-tap layout
        if n_src == 2:
            add_const(w1[:, :, :Cin]); add_const(w1[:, :, Cin:])
        else:
            add_const(w1)
        add_const(jnp.stack([blk["b1"], blk["gn1_g"], blk["gn1_b"]], 1).astype(jnp.float32))
        add_const(blk["w2"].astype(_MXU_DTYPE))
        add_const(jnp.stack([blk["b2"], blk["gn2_g"], blk["gn2_b"]], 1).astype(jnp.float32))

    return pl.pallas_call(
        _make_kernel(K, has_temb, has_skip, n_blocks, _MXU_DTYPE),
        out_shape=jax.ShapeDtypeStruct((B, Cout, L2), hidden_states.dtype),
        grid=(B,),
        in_specs=in_specs,
        # NOTE: at toy sizes L2 < 128 so the store is lane-underfilled; folding
        # the batch into the lane axis would trade away the per-batch megacore
        # split below, so it is intentionally left as (1, Cout, L2) blocks.
        out_specs=pl.BlockSpec((1, Cout, L2), lambda i: (i, 0, 0)),
        compiler_params=pltpu.CompilerParams(
            dimension_semantics=("parallel",),   # batch grid shards across v7x's 2 TCs
            vmem_limit_bytes=32 * 1024 * 1024,   # raise explicitly at production C/L
        ),
    )(*args)


# ----------------------------------------------------------------------------
# deterministic synthetic parameter init (shapes mirror the torch __init__,
# conv weights pre-laid-out per-tap: (K, Cout, Cin) with [k, o, c] = w[o, c, k])
# ----------------------------------------------------------------------------

def _uniform(key, shape, bound):
    return jax.random.uniform(key, shape, jnp.float32, -bound, bound)


def _init_conv_pertap(key, cout, cin, k):
    kw, kb = jax.random.split(key)
    bound = 1.0 / math.sqrt(cin * k)
    w = _uniform(kw, (cout, cin, k), bound)          # torch Conv1d layout
    return jnp.transpose(w, (2, 0, 1)), _uniform(kb, (cout,), bound)


def _init_linear(key, dout, din):
    kw, kb = jax.random.split(key)
    bound = 1.0 / math.sqrt(din)
    return _uniform(kw, (dout, din), bound), _uniform(kb, (dout,), bound)


def _init_gn(key, c):
    k1, k2 = jax.random.split(key)
    return (1.0 + 0.05 * jax.random.normal(k1, (c,), jnp.float32),
            0.05 * jax.random.normal(k2, (c,), jnp.float32))


def _init_res_block(key, cin, cmid, cout, temb_channels):
    ks = jax.random.split(key, 6)
    p = {}
    if cin != cout:                                  # conv_skip (1x1, bias=False)
        p["skip_w"] = _uniform(ks[0], (cout, cin), 1.0 / math.sqrt(cin))
    p["w1"], p["b1"] = _init_conv_pertap(ks[1], cmid, cin, _CONV_K)
    p["gn1_g"], p["gn1_b"] = _init_gn(ks[2], cmid)
    if temb_channels is not None:
        p["temb_w"], p["temb_b"] = _init_linear(ks[3], cmid, temb_channels)
    p["w2"], p["b2"] = _init_conv_pertap(ks[4], cout, cmid, _CONV_K)
    p["gn2_g"], p["gn2_b"] = _init_gn(ks[5], cout)
    return p


def init_block_up_1d(key, in_channels, out_channels, mid_channels=None, temb_channels=None):
    mid = in_channels if mid_channels is None else mid_channels
    dims = [(2 * in_channels, mid, mid), (mid, mid, mid), (mid, mid, out_channels)]
    keys = jax.random.split(key, 3)
    return {"resnets": [_init_res_block(keys[i], *dims[i], temb_channels)
                        for i in range(3)]}


# ----------------------------------------------------------------------------
# demo
# ----------------------------------------------------------------------------

if __name__ == "__main__":
    B, in_channels, out_channels, L = 2, 32, 32, 16
    temb_channels, L_temb = 32, 1        # length-1 time embedding (broadcast add, as in torch)
    downsampling_fac = 2                 # only used when temb length > 1

    key = jax.random.PRNGKey(0)
    kp, kx, kr, kt = jax.random.split(key, 4)

    params = init_block_up_1d(kp, in_channels, out_channels,
                              mid_channels=None, temb_channels=temb_channels)
    hidden_states = jax.random.normal(kx, (B, in_channels, L), jnp.float32)
    res_hidden = jax.random.normal(kr, (B, in_channels, 2 * L), jnp.float32)
    temb = jax.random.normal(kt, (B, temb_channels, L_temb), jnp.float32)

    fwd = jax.jit(partial(block_up_1d, downsampling_fac=downsampling_fac))
    out = fwd(params, hidden_states, (res_hidden,), temb)
    jax.block_until_ready(out)
    assert out.shape == (B, out_channels, 2 * L), out.shape
    assert bool(jnp.all(jnp.isfinite(out))), "non-finite output"
    print("KERNEL_OK")
</pallas_src>

<mosaic_0001>
module attributes {stable_mosaic.version = 11 : i64} {
  func.func @kernel(%arg0: i32, %arg1: memref<1x32x16xf32, #tpu.memory_space<vmem>>, %arg2: memref<1x32x32xf32, #tpu.memory_space<vmem>>, %arg3: memref<16x32xbf16, #tpu.memory_space<vmem>>, %arg4: memref<1x96x1xf32, #tpu.memory_space<vmem>>, %arg5: memref<32x32xbf16, #tpu.memory_space<vmem>>, %arg6: memref<32x32xbf16, #tpu.memory_space<vmem>>, %arg7: memref<5x32x32xbf16, #tpu.memory_space<vmem>>, %arg8: memref<5x32x32xbf16, #tpu.memory_space<vmem>>, %arg9: memref<32x3xf32, #tpu.memory_space<vmem>>, %arg10: memref<5x32x32xbf16, #tpu.memory_space<vmem>>, %arg11: memref<32x3xf32, #tpu.memory_space<vmem>>, %arg12: memref<5x32x32xbf16, #tpu.memory_space<vmem>>, %arg13: memref<32x3xf32, #tpu.memory_space<vmem>>, %arg14: memref<5x32x32xbf16, #tpu.memory_space<vmem>>, %arg15: memref<32x3xf32, #tpu.memory_space<vmem>>, %arg16: memref<5x32x32xbf16, #tpu.memory_space<vmem>>, %arg17: memref<32x3xf32, #tpu.memory_space<vmem>>, %arg18: memref<5x32x32xbf16, #tpu.memory_space<vmem>>, %arg19: memref<32x3xf32, #tpu.memory_space<vmem>>, %arg20: memref<1x32x32xf32, #tpu.memory_space<vmem>>) attributes {dimension_semantics = [#tpu.dimension_semantics<parallel>], iteration_bounds = array<i64: 2>, scalar_prefetch = 0 : i64, scratch_operands = 0 : i64, tpu.core_type = #tpu.core_type<tc>, window_params = [{transform_indices = @transform_0, window_bounds = array<i64: 1, 32, 16>}, {transform_indices = @transform_1, window_bounds = array<i64: 1, 32, 32>}, {pipeline_mode = #tpu.pipeline_mode<synchronous>, transform_indices = @transform_2, window_bounds = array<i64: 16, 32>}, {transform_indices = @transform_3, window_bounds = array<i64: 1, 96, 1>}, {pipeline_mode = #tpu.pipeline_mode<synchronous>, transform_indices = @transform_4, window_bounds = array<i64: 32, 32>}, {pipeline_mode = #tpu.pipeline_mode<synchronous>, transform_indices = @transform_5, window_bounds = array<i64: 32, 32>}, {pipeline_mode = #tpu.pipeline_mode<synchronous>, transform_indices = @transform_6, window_bounds = array<i64: 5, 32, 32>}, {pipeline_mode = #tpu.pipeline_mode<synchronous>, transform_indices = @transform_7, window_bounds = array<i64: 5, 32, 32>}, {pipeline_mode = #tpu.pipeline_mode<synchronous>, transform_indices = @transform_8, window_bounds = array<i64: 32, 3>}, {pipeline_mode = #tpu.pipeline_mode<synchronous>, transform_indices = @transform_9, window_bounds = array<i64: 5, 32, 32>}, {pipeline_mode = #tpu.pipeline_mode<synchronous>, transform_indices = @transform_10, window_bounds = array<i64: 32, 3>}, {pipeline_mode = #tpu.pipeline_mode<synchronous>, transform_indices = @transform_11, window_bounds = array<i64: 5, 32, 32>}, {pipeline_mode = #tpu.pipeline_mode<synchronous>, transform_indices = @transform_12, window_bounds = array<i64: 32, 3>}, {pipeline_mode = #tpu.pipeline_mode<synchronous>, transform_indices = @transform_13, window_bounds = array<i64: 5, 32, 32>}, {pipeline_mode = #tpu.pipeline_mode<synchronous>, transform_indices = @transform_14, window_bounds = array<i64: 32, 3>}, {pipeline_mode = #tpu.pipeline_mode<synchronous>, transform_indices = @transform_15, window_bounds = array<i64: 5, 32, 32>}, {pipeline_mode = #tpu.pipeline_mode<synchronous>, transform_indices = @transform_16, window_bounds = array<i64: 32, 3>}, {pipeline_mode = #tpu.pipeline_mode<synchronous>, transform_indices = @transform_17, window_bounds = array<i64: 5, 32, 32>}, {pipeline_mode = #tpu.pipeline_mode<synchronous>, transform_indices = @transform_18, window_bounds = array<i64: 32, 3>}, {transform_indices = @transform_19, window_bounds = array<i64: 1, 32, 32>}]} {
    %c0 = arith.constant 0 : index
    %c0_0 = arith.constant 0 : index
    %c0_1 = arith.constant 0 : index
    %0 = vector.load %arg2[%c0, %c0_0, %c0_1] : memref<1x32x32xf32, #tpu.memory_space<vmem>>, vector<1x32x32xf32>
    %1 = vector.shape_cast %0 : vector<1x32x32xf32> to vector<32x32xf32>
    %2 = tpu.iota {dimensions = array<i32: 1>} : vector<1x32xi32>
    %c0_2 = arith.constant 0 : index
    %c0_3 = arith.constant 0 : index
    %c0_4 = arith.constant 0 : index
    %3 = vector.load %arg1[%c0_2, %c0_3, %c0_4] : memref<1x32x16xf32, #tpu.memory_space<vmem>>, vector<1x32x16xf32>
    %4 = vector.shape_cast %3 : vector<1x32x16xf32> to vector<32x16xf32>
    %5 = arith.truncf %4 : vector<32x16xf32> to vector<32x16xbf16>
    %c0_5 = arith.constant 0 : index
    %c0_6 = arith.constant 0 : index
    %6 = vector.load %arg3[%c0_5, %c0_6] : memref<16x32xbf16, #tpu.memory_space<vmem>>, vector<16x32xbf16>
    %cst = arith.constant dense<0.000000e+00> : vector<32x32xf32>
    %7 = tpu.matmul %5, %6, %cst {dimension_numbers = #tpu.dot_dimension_numbers<[1], [0], [0], [1], [0, 0, 1, 1], [], []>} : vector<32x16xbf16>, vector<16x32xbf16>, vector<32x32xf32> -> vector<32x32xf32>
    %c0_7 = arith.constant 0 : index
    %c0_8 = arith.constant 0 : index
    %c0_9 = arith.constant 0 : index
    %8 = vector.load %arg4[%c0_7, %c0_8, %c0_9] : memref<1x96x1xf32, #tpu.memory_space<vmem>>, vector<1x96x1xf32>
    %9 = vector.shape_cast %8 : vector<1x96x1xf32> to vector<96x1xf32>
    %c0_10 = arith.constant 0 : index
    %c0_11 = arith.constant 0 : index
    %10 = vector.load %arg9[%c0_10, %c0_11] : memref<32x3xf32, #tpu.memory_space<vmem>>, vector<32x3xf32>
    %c0_12 = arith.constant 0 : index
    %c0_13 = arith.constant 0 : index
    %11 = vector.load %arg11[%c0_12, %c0_13] : memref<32x3xf32, #tpu.memory_space<vmem>>, vector<32x3xf32>
    %c0_14 = arith.constant 0 : index
    %c0_15 = arith.constant 0 : index
    %12 = vector.load %arg5[%c0_14, %c0_15] : memref<32x32xbf16, #tpu.memory_space<vmem>>, vector<32x32xbf16>
    %13 = arith.truncf %7 : vector<32x32xf32> to vector<32x32xbf16>
    %cst_16 = arith.constant dense<0.000000e+00> : vector<32x32xf32>
    %14 = tpu.matmul %12, %13, %cst_16 {dimension_numbers = #tpu.dot_dimension_numbers<[1], [0], [0], [1], [0, 0, 1, 1], [], []>} : vector<32x32xbf16>, vector<32x32xbf16>, vector<32x32xf32> -> vector<32x32xf32>
    %c0_17 = arith.constant 0 : index
    %c0_18 = arith.constant 0 : index
    %15 = vector.load %arg6[%c0_17, %c0_18] : memref<32x32xbf16, #tpu.memory_space<vmem>>, vector<32x32xbf16>
    %16 = arith.truncf %1 : vector<32x32xf32> to vector<32x32xbf16>
    %cst_19 = arith.constant dense<0.000000e+00> : vector<32x32xf32>
    %17 = tpu.matmul %15, %16, %cst_19 {dimension_numbers = #tpu.dot_dimension_numbers<[1], [0], [0], [1], [0, 0, 1, 1], [], []>} : vector<32x32xbf16>, vector<32x32xbf16>, vector<32x32xf32> -> vector<32x32xf32>
    %18 = arith.addf %14, %17 : vector<32x32xf32>
    %19 = vector.extract_strided_slice %10 {offsets = [0, 0], sizes = [32, 1], strides = [1, 1]} : vector<32x3xf32> to vector<32x1xf32>
    %c2_i32 = arith.constant 2 : i32
    %20 = tpu.dynamic_rotate %7 by %c2_i32 dim 1 : vector<32x32xf32>, i32 -> vector<32x32xf32>
    %c2_i32_20 = arith.constant 2 : i32
    %21 = vector.broadcast %c2_i32_20 : i32 to vector<1x32xi32>
    %22 = arith.cmpi sge, %2, %21 : vector<1x32xi32>
    %cst_21 = arith.constant 0.000000e+00 : f32
    %23 = vector.shape_cast %22 : vector<1x32xi1> to vector<1x32xi1>
    %24 = vector.broadcast %23 : vector<1x32xi1> to vector<32x32xi1>
    %25 = vector.broadcast %cst_21 : f32 to vector<32x32xf32>
    %26 = arith.select %24, %20, %25 : vector<32x32xi1>, vector<32x32xf32>
    %27 = arith.truncf %26 : vector<32x32xf32> to vector<32x32xbf16>
    %c0_22 = arith.constant 0 : index
    %c0_23 = arith.constant 0 : index
    %c0_24 = arith.constant 0 : index
    %28 = vector.load %arg7[%c0_22, %c0_23, %c0_24] : memref<5x32x32xbf16, #tpu.memory_space<vmem>>, vector<1x32x32xbf16>
    %29 = vector.shape_cast %28 : vector<1x32x32xbf16> to vector<32x32xbf16>
    %cst_25 = arith.constant dense<0.000000e+00> : vector<32x32xf32>
    %30 = tpu.matmul %29, %27, %cst_25 {dimension_numbers = #tpu.dot_dimension_numbers<[1], [0], [0], [1], [0, 0, 1, 1], [], []>} : vector<32x32xbf16>, vector<32x32xbf16>, vector<32x32xf32> -> vector<32x32xf32>
    %c1_i32 = arith.constant 1 : i32
    %31 = tpu.dynamic_rotate %7 by %c1_i32 dim 1 : vector<32x32xf32>, i32 -> vector<32x32xf32>
    %c1_i32_26 = arith.constant 1 : i32
    %32 = vector.broadcast %c1_i32_26 : i32 to vector<1x32xi32>
    %33 = arith.cmpi sge, %2, %32 : vector<1x32xi32>
    %cst_27 = arith.constant 0.000000e+00 : f32
    %34 = vector.shape_cast %33 : vector<1x32xi1> to vector<1x32xi1>
    %35 = vector.broadcast %34 : vector<1x32xi1> to vector<32x32xi1>
    %36 = vector.broadcast %cst_27 : f32 to vector<32x32xf32>
    %37 = arith.select %35, %31, %36 : vector<32x32xi1>, vector<32x32xf32>
    %38 = arith.truncf %37 : vector<32x32xf32> to vector<32x32xbf16>
    %c1 = arith.constant 1 : index
    %c0_28 = arith.constant 0 : index
    %c0_29 = arith.constant 0 : index
    %39 = vector.load %arg7[%c1, %c0_28, %c0_29] : memref<5x32x32xbf16, #tpu.memory_space<vmem>>, vector<1x32x32xbf16>
    %40 = vector.shape_cast %39 : vector<1x32x32xbf16> to vector<32x32xbf16>
    %cst_30 = arith.constant dense<0.000000e+00> : vector<32x32xf32>
    %41 = tpu.matmul %40, %38, %cst_30 {dimension_numbers = #tpu.dot_dimension_numbers<[1], [0], [0], [1], [0, 0, 1, 1], [], []>} : vector<32x32xbf16>, vector<32x32xbf16>, vector<32x32xf32> -> vector<32x32xf32>
    %42 = arith.addf %30, %41 : vector<32x32xf32>
    %43 = arith.truncf %7 : vector<32x32xf32> to vector<32x32xbf16>
    %c2 = arith.constant 2 : index
    %c0_31 = arith.constant 0 : index
    %c0_32 = arith.constant 0 : index
    %44 = vector.load %arg7[%c2, %c0_31, %c0_32] : memref<5x32x32xbf16, #tpu.memory_space<vmem>>, vector<1x32x32xbf16>
    %45 = vector.shape_cast %44 : vector<1x32x32xbf16> to vector<32x32xbf16>
    %cst_33 = arith.constant dense<0.000000e+00> : vector<32x32xf32>
    %46 = tpu.matmul %45, %43, %cst_33 {dimension_numbers = #tpu.dot_dimension_numbers<[1], [0], [0], [1], [0, 0, 1, 1], [], []>} : vector<32x32xbf16>, vector<32x32xbf16>, vector<32x32xf32> -> vector<32x32xf32>
    %47 = arith.addf %42, %46 : vector<32x32xf32>
    %c31_i32 = arith.constant 31 : i32
    %48 = tpu.dynamic_rotate %7 by %c31_i32 dim 1 : vector<32x32xf32>, i32 -> vector<32x32xf32>
    %c31_i32_34 = arith.constant 31 : i32
    %49 = vector.broadcast %c31_i32_34 : i32 to vector<1x32xi32>
    %50 = arith.cmpi slt, %2, %49 : vector<1x32xi32>
    %cst_35 = arith.constant 0.000000e+00 : f32
    %51 = vector.shape_cast %50 : vector<1x32xi1> to vector<1x32xi1>
    %52 = vector.broadcast %51 : vector<1x32xi1> to vector<32x32xi1>
    %53 = vector.broadcast %cst_35 : f32 to vector<32x32xf32>
    %54 = arith.select %52, %48, %53 : vector<32x32xi1>, vector<32x32xf32>
    %55 = arith.truncf %54 : vector<32x32xf32> to vector<32x32xbf16>
    %c3 = arith.constant 3 : index
    %c0_36 = arith.constant 0 : index
    %c0_37 = arith.constant 0 : index
    %56 = vector.load %arg7[%c3, %c0_36, %c0_37] : memref<5x32x32xbf16, #tpu.memory_space<vmem>>, vector<1x32x32xbf16>
    %57 = vector.shape_cast %56 : vector<1x32x32xbf16> to vector<32x32xbf16>
    %cst_38 = arith.constant dense<0.000000e+00> : vector<32x32xf32>
    %58 = tpu.matmul %57, %55, %cst_38 {dimension_numbers = #tpu.dot_dimension_numbers<[1], [0], [0], [1], [0, 0, 1, 1], [], []>} : vector<32x32xbf16>, vector<32x32xbf16>, vector<32x32xf32> -> vector<32x32xf32>
    %59 = arith.addf %47, %58 : vector<32x32xf32>
    %c30_i32 = arith.constant 30 : i32
    %60 = tpu.dynamic_rotate %7 by %c30_i32 dim 1 : vector<32x32xf32>, i32 -> vector<32x32xf32>
    %c30_i32_39 = arith.constant 30 : i32
    %61 = vector.broadcast %c30_i32_39 : i32 to vector<1x32xi32>
    %62 = arith.cmpi slt, %2, %61 : vector<1x32xi32>
    %cst_40 = arith.constant 0.000000e+00 : f32
    %63 = vector.shape_cast %62 : vector<1x32xi1> to vector<1x32xi1>
    %64 = vector.broadcast %63 : vector<1x32xi1> to vector<32x32xi1>
    %65 = vector.broadcast %cst_40 : f32 to vector<32x32xf32>
    %66 = arith.select %64, %60, %65 : vector<32x32xi1>, vector<32x32xf32>
    %67 = arith.truncf %66 : vector<32x32xf32> to vector<32x32xbf16>
    %c4 = arith.constant 4 : index
    %c0_41 = arith.constant 0 : index
    %c0_42 = arith.constant 0 : index
    %68 = vector.load %arg7[%c4, %c0_41, %c0_42] : memref<5x32x32xbf16, #tpu.memory_space<vmem>>, vector<1x32x32xbf16>
    %69 = vector.shape_cast %68 : vector<1x32x32xbf16> to vector<32x32xbf16>
    %cst_43 = arith.constant dense<0.000000e+00> : vector<32x32xf32>
    %70 = tpu.matmul %69, %67, %cst_43 {dimension_numbers = #tpu.dot_dimension_numbers<[1], [0], [0], [1], [0, 0, 1, 1], [], []>} : vector<32x32xbf16>, vector<32x32xbf16>, vector<32x32xf32> -> vector<32x32xf32>
    %71 = arith.addf %59, %70 : vector<32x32xf32>
    %c2_i32_44 = arith.constant 2 : i32
    %72 = tpu.dynamic_rotate %1 by %c2_i32_44 dim 1 : vector<32x32xf32>, i32 -> vector<32x32xf32>
    %c2_i32_45 = arith.constant 2 : i32
    %73 = vector.broadcast %c2_i32_45 : i32 to vector<1x32xi32>
    %74 = arith.cmpi sge, %2, %73 : vector<1x32xi32>
    %cst_46 = arith.constant 0.000000e+00 : f32
    %75 = vector.shape_cast %74 : vector<1x32xi1> to vector<1x32xi1>
    %76 = vector.broadcast %75 : vector<1x32xi1> to vector<32x32xi1>
    %77 = vector.broadcast %cst_46 : f32 to vector<32x32xf32>
    %78 = arith.select %76, %72, %77 : vector<32x32xi1>, vector<32x32xf32>
    %79 = arith.truncf %78 : vector<32x32xf32> to vector<32x32xbf16>
    %c0_47 = arith.constant 0 : index
    %c0_48 = arith.constant 0 : index
    %c0_49 = arith.constant 0 : index
    %80 = vector.load %arg8[%c0_47, %c0_48, %c0_49] : memref<5x32x32xbf16, #tpu.memory_space<vmem>>, vector<1x32x32xbf16>
    %81 = vector.shape_cast %80 : vector<1x32x32xbf16> to vector<32x32xbf16>
    %cst_50 = arith.constant dense<0.000000e+00> : vector<32x32xf32>
    %82 = tpu.matmul %81, %79, %cst_50 {dimension_numbers = #tpu.dot_dimension_numbers<[1], [0], [0], [1], [0, 0, 1, 1], [], []>} : vector<32x32xbf16>, vector<32x32xbf16>, vector<32x32xf32> -> vector<32x32xf32>
    %83 = arith.addf %71, %82 : vector<32x32xf32>
    %c1_i32_51 = arith.constant 1 : i32
    %84 = tpu.dynamic_rotate %1 by %c1_i32_51 dim 1 : vector<32x32xf32>, i32 -> vector<32x32xf32>
    %c1_i32_52 = arith.constant 1 : i32
    %85 = vector.broadcast %c1_i32_52 : i32 to vector<1x32xi32>
    %86 = arith.cmpi sge, %2, %85 : vector<1x32xi32>
    %cst_53 = arith.constant 0.000000e+00 : f32
    %87 = vector.shape_cast %86 : vector<1x32xi1> to vector<1x32xi1>
    %88 = vector.broadcast %87 : vector<1x32xi1> to vector<32x32xi1>
    %89 = vector.broadcast %cst_53 : f32 to vector<32x32xf32>
    %90 = arith.select %88, %84, %89 : vector<32x32xi1>, vector<32x32xf32>
    %91 = arith.truncf %90 : vector<32x32xf32> to vector<32x32xbf16>
    %c1_54 = arith.constant 1 : index
    %c0_55 = arith.constant 0 : index
    %c0_56 = arith.constant 0 : index
    %92 = vector.load %arg8[%c1_54, %c0_55, %c0_56] : memref<5x32x32xbf16, #tpu.memory_space<vmem>>, vector<1x32x32xbf16>
    %93 = vector.shape_cast %92 : vector<1x32x32xbf16> to vector<32x32xbf16>
    %cst_57 = arith.constant dense<0.000000e+00> : vector<32x32xf32>
    %94 = tpu.matmul %93, %91, %cst_57 {dimension_numbers = #tpu.dot_dimension_numbers<[1], [0], [0], [1], [0, 0, 1, 1], [], []>} : vector<32x32xbf16>, vector<32x32xbf16>, vector<32x32xf32> -> vector<32x32xf32>
    %95 = arith.addf %83, %94 : vector<32x32xf32>
    %96 = arith.truncf %1 : vector<32x32xf32> to vector<32x32xbf16>
    %c2_58 = arith.constant 2 : index
    %c0_59 = arith.constant 0 : index
    %c0_60 = arith.constant 0 : index
    %97 = vector.load %arg8[%c2_58, %c0_59, %c0_60] : memref<5x32x32xbf16, #tpu.memory_space<vmem>>, vector<1x32x32xbf16>
    %98 = vector.shape_cast %97 : vector<1x32x32xbf16> to vector<32x32xbf16>
    %cst_61 = arith.constant dense<0.000000e+00> : vector<32x32xf32>
    %99 = tpu.matmul %98, %96, %cst_61 {dimension_numbers = #tpu.dot_dimension_numbers<[1], [0], [0], [1], [0, 0, 1, 1], [], []>} : vector<32x32xbf16>, vector<32x32xbf16>, vector<32x32xf32> -> vector<32x32xf32>
    %100 = arith.addf %95, %99 : vector<32x32xf32>
    %c31_i32_62 = arith.constant 31 : i32
    %101 = tpu.dynamic_rotate %1 by %c31_i32_62 dim 1 : vector<32x32xf32>, i32 -> vector<32x32xf32>
    %c31_i32_63 = arith.constant 31 : i32
    %102 = vector.broadcast %c31_i32_63 : i32 to vector<1x32xi32>
    %103 = arith.cmpi slt, %2, %102 : vector<1x32xi32>
    %cst_64 = arith.constant 0.000000e+00 : f32
    %104 = vector.shape_cast %103 : vector<1x32xi1> to vector<1x32xi1>
    %105 = vector.broadcast %104 : vector<1x32xi1> to vector<32x32xi1>
    %106 = vector.broadcast %cst_64 : f32 to vector<32x32xf32>
    %107 = arith.select %105, %101, %106 : vector<32x32xi1>, vector<32x32xf32>
    %108 = arith.truncf %107 : vector<32x32xf32> to vector<32x32xbf16>
    %c3_65 = arith.constant 3 : index
    %c0_66 = arith.constant 0 : index
    %c0_67 = arith.constant 0 : index
    %109 = vector.load %arg8[%c3_65, %c0_66, %c0_67] : memref<5x32x32xbf16, #tpu.memory_space<vmem>>, vector<1x32x32xbf16>
    %110 = vector.shape_cast %109 : vector<1x32x32xbf16> to vector<32x32xbf16>
    %cst_68 = arith.constant dense<0.000000e+00> : vector<32x32xf32>
    %111 = tpu.matmul %110, %108, %cst_68 {dimension_numbers = #tpu.dot_dimension_numbers<[1], [0], [0], [1], [0, 0, 1, 1], [], []>} : vector<32x32xbf16>, vector<32x32xbf16>, vector<32x32xf32> -> vector<32x32xf32>
    %112 = arith.addf %100, %111 : vector<32x32xf32>
    %c30_i32_69 = arith.constant 30 : i32
    %113 = tpu.dynamic_rotate %1 by %c30_i32_69 dim 1 : vector<32x32xf32>, i32 -> vector<32x32xf32>
    %c30_i32_70 = arith.constant 30 : i32
    %114 = vector.broadcast %c30_i32_70 : i32 to vector<1x32xi32>
    %115 = arith.cmpi slt, %2, %114 : vector<1x32xi32>
    %cst_71 = arith.constant 0.000000e+00 : f32
    %116 = vector.shape_cast %115 : vector<1x32xi1> to vector<1x32xi1>
    %117 = vector.broadcast %116 : vector<1x32xi1> to vector<32x32xi1>
    %118 = vector.broadcast %cst_71 : f32 to vector<32x32xf32>
    %119 = arith.select %117, %113, %118 : vector<32x32xi1>, vector<32x32xf32>
    %120 = arith.truncf %119 : vector<32x32xf32> to vector<32x32xbf16>
    %c4_72 = arith.constant 4 : index
    %c0_73 = arith.constant 0 : index
    %c0_74 = arith.constant 0 : index
    %121 = vector.load %arg8[%c4_72, %c0_73, %c0_74] : memref<5x32x32xbf16, #tpu.memory_space<vmem>>, vector<1x32x32xbf16>
    %122 = vector.shape_cast %121 : vector<1x32x32xbf16> to vector<32x32xbf16>
    %cst_75 = arith.constant dense<0.000000e+00> : vector<32x32xf32>
    %123 = tpu.matmul %122, %120, %cst_75 {dimension_numbers = #tpu.dot_dimension_numbers<[1], [0], [0], [1], [0, 0, 1, 1], [], []>} : vector<32x32xbf16>, vector<32x32xbf16>, vector<32x32xf32> -> vector<32x32xf32>
    %124 = arith.addf %112, %123 : vector<32x32xf32>
    %125 = vector.broadcast %19 : vector<32x1xf32> to vector<32x32xf32>
    %126 = arith.addf %124, %125 : vector<32x32xf32>
    %127 = vector.extract_strided_slice %10 {offsets = [0, 1], sizes = [32, 1], strides = [1, 1]} : vector<32x3xf32> to vector<32x1xf32>
    %128 = vector.extract_strided_slice %10 {offsets = [0, 2], sizes = [32, 1], strides = [1, 1]} : vector<32x3xf32> to vector<32x1xf32>
    %cst_76 = arith.constant dense<0.000000e+00> : vector<32xf32>
    %129 = vector.multi_reduction <add>, %126, %cst_76 [1] : vector<32x32xf32> to vector<32xf32>
    %130 = vector.shape_cast %129 : vector<32xf32> to vector<32x1xf32>
    %cst_77 = arith.constant dense<0.000000e+00> : vector<1xf32>
    %131 = vector.multi_reduction <add>, %130, %cst_77 [0] : vector<32x1xf32> to vector<1xf32>
    %132 = vector.shape_cast %131 : vector<1xf32> to vector<1x1xf32>
    %cst_78 = arith.constant 9.765625E-4 : f32
    %133 = vector.broadcast %cst_78 : f32 to vector<1x1xf32>
    %134 = arith.mulf %132, %133 : vector<1x1xf32>
    %135 = vector.broadcast %134 : vector<1x1xf32> to vector<32x32xf32>
    %136 = arith.subf %126, %135 : vector<32x32xf32>
    %137 = arith.mulf %136, %136 : vector<32x32xf32>
    %cst_79 = arith.constant dense<0.000000e+00> : vector<32xf32>
    %138 = vector.multi_reduction <add>, %137, %cst_79 [1] : vector<32x32xf32> to vector<32xf32>
    %139 = vector.shape_cast %138 : vector<32xf32> to vector<32x1xf32>
    %cst_80 = arith.constant dense<0.000000e+00> : vector<1xf32>
    %140 = vector.multi_reduction <add>, %139, %cst_80 [0] : vector<32x1xf32> to vector<1xf32>
    %141 = vector.shape_cast %140 : vector<1xf32> to vector<1x1xf32>
    %cst_81 = arith.constant 9.765625E-4 : f32
    %142 = vector.broadcast %cst_81 : f32 to vector<1x1xf32>
    %143 = arith.mulf %141, %142 : vector<1x1xf32>
    %cst_82 = arith.constant 9.99999974E-6 : f32
    %144 = vector.broadcast %cst_82 : f32 to vector<1x1xf32>
    %145 = arith.addf %143, %144 : vector<1x1xf32>
    %146 = math.rsqrt %145 : vector<1x1xf32>
    %147 = vector.broadcast %146 : vector<1x1xf32> to vector<32x1xf32>
    %148 = arith.mulf %147, %127 : vector<32x1xf32>
    %149 = vector.broadcast %148 : vector<32x1xf32> to vector<32x32xf32>
    %150 = arith.mulf %136, %149 : vector<32x32xf32>
    %151 = vector.broadcast %128 : vector<32x1xf32> to vector<32x32xf32>
    %152 = arith.addf %150, %151 : vector<32x32xf32>
    %153 = vector.extract_strided_slice %9 {offsets = [0, 0], sizes = [32, 1], strides = [1, 1]} : vector<96x1xf32> to vector<32x1xf32>
    %154 = vector.broadcast %153 : vector<32x1xf32> to vector<32x32xf32>
    %155 = arith.addf %152, %154 : vector<32x32xf32>
    %cst_83 = arith.constant 5.000000e-01 : f32
    %156 = vector.broadcast %cst_83 : f32 to vector<32x32xf32>
    %157 = arith.mulf %156, %155 : vector<32x32xf32>
    %cst_84 = arith.constant 0.707106769 : f32
    %158 = vector.broadcast %cst_84 : f32 to vector<32x32xf32>
    %159 = arith.mulf %155, %158 : vector<32x32xf32>
    %160 = math.erf %159 : vector<32x32xf32>
    %cst_85 = arith.constant 1.000000e+00 : f32
    %161 = vector.broadcast %cst_85 : f32 to vector<32x32xf32>
    %162 = arith.addf %161, %160 : vector<32x32xf32>
    %163 = arith.mulf %157, %162 : vector<32x32xf32>
    %164 = vector.extract_strided_slice %11 {offsets = [0, 0], sizes = [32, 1], strides = [1, 1]} : vector<32x3xf32> to vector<32x1xf32>
    %c2_i32_86 = arith.constant 2 : i32
    %165 = tpu.dynamic_rotate %163 by %c2_i32_86 dim 1 : vector<32x32xf32>, i32 -> vector<32x32xf32>
    %c2_i32_87 = arith.constant 2 : i32
    %166 = vector.broadcast %c2_i32_87 : i32 to vector<1x32xi32>
    %167 = arith.cmpi sge, %2, %166 : vector<1x32xi32>
    %cst_88 = arith.constant 0.000000e+00 : f32
    %168 = vector.shape_cast %167 : vector<1x32xi1> to vector<1x32xi1>
    %169 = vector.broadcast %168 : vector<1x32xi1> to vector<32x32xi1>
    %170 = vector.broadcast %cst_88 : f32 to vector<32x32xf32>
    %171 = arith.select %169, %165, %170 : vector<32x32xi1>, vector<32x32xf32>
    %172 = arith.truncf %171 : vector<32x32xf32> to vector<32x32xbf16>
    %c0_89 = arith.constant 0 : index
    %c0_90 = arith.constant 0 : index
    %c0_91 = arith.constant 0 : index
    %173 = vector.load %arg10[%c0_89, %c0_90, %c0_91] : memref<5x32x32xbf16, #tpu.memory_space<vmem>>, vector<1x32x32xbf16>
    %174 = vector.shape_cast %173 : vector<1x32x32xbf16> to vector<32x32xbf16>
    %cst_92 = arith.constant dense<0.000000e+00> : vector<32x32xf32>
    %175 = tpu.matmul %174, %172, %cst_92 {dimension_numbers = #tpu.dot_dimension_numbers<[1], [0], [0], [1], [0, 0, 1, 1], [], []>} : vector<32x32xbf16>, vector<32x32xbf16>, vector<32x32xf32> -> vector<32x32xf32>
    %c1_i32_93 = arith.constant 1 : i32
    %176 = tpu.dynamic_rotate %163 by %c1_i32_93 dim 1 : vector<32x32xf32>, i32 -> vector<32x32xf32>
    %c1_i32_94 = arith.constant 1 : i32
    %177 = vector.broadcast %c1_i32_94 : i32 to vector<1x32xi32>
    %178 = arith.cmpi sge, %2, %177 : vector<1x32xi32>
    %cst_95 = arith.constant 0.000000e+00 : f32
    %179 = vector.shape_cast %178 : vector<1x32xi1> to vector<1x32xi1>
    %180 = vector.broadcast %179 : vector<1x32xi1> to vector<32x32xi1>
    %181 = vector.broadcast %cst_95 : f32 to vector<32x32xf32>
    %182 = arith.select %180, %176, %181 : vector<32x32xi1>, vector<32x32xf32>
    %183 = arith.truncf %182 : vector<32x32xf32> to vector<32x32xbf16>
    %c1_96 = arith.constant 1 : index
    %c0_97 = arith.constant 0 : index
    %c0_98 = arith.constant 0 : index
    %184 = vector.load %arg10[%c1_96, %c0_97, %c0_98] : memref<5x32x32xbf16, #tpu.memory_space<vmem>>, vector<1x32x32xbf16>
    %185 = vector.shape_cast %184 : vector<1x32x32xbf16> to vector<32x32xbf16>
    %cst_99 = arith.constant dense<0.000000e+00> : vector<32x32xf32>
    %186 = tpu.matmul %185, %183, %cst_99 {dimension_numbers = #tpu.dot_dimension_numbers<[1], [0], [0], [1], [0, 0, 1, 1], [], []>} : vector<32x32xbf16>, vector<32x32xbf16>, vector<32x32xf32> -> vector<32x32xf32>
    %187 = arith.addf %175, %186 : vector<32x32xf32>
    %188 = arith.truncf %163 : vector<32x32xf32> to vector<32x32xbf16>
    %c2_100 = arith.constant 2 : index
    %c0_101 = arith.constant 0 : index
    %c0_102 = arith.constant 0 : index
    %189 = vector.load %arg10[%c2_100, %c0_101, %c0_102] : memref<5x32x32xbf16, #tpu.memory_space<vmem>>, vector<1x32x32xbf16>
    %190 = vector.shape_cast %189 : vector<1x32x32xbf16> to vector<32x32xbf16>
    %cst_103 = arith.constant dense<0.000000e+00> : vector<32x32xf32>
    %191 = tpu.matmul %190, %188, %cst_103 {dimension_numbers = #tpu.dot_dimension_numbers<[1], [0], [0], [1], [0, 0, 1, 1], [], []>} : vector<32x32xbf16>, vector<32x32xbf16>, vector<32x32xf32> -> vector<32x32xf32>
    %192 = arith.addf %187, %191 : vector<32x32xf32>
    %c31_i32_104 = arith.constant 31 : i32
    %193 = tpu.dynamic_rotate %163 by %c31_i32_104 dim 1 : vector<32x32xf32>, i32 -> vector<32x32xf32>
    %c31_i32_105 = arith.constant 31 : i32
    %194 = vector.broadcast %c31_i32_105 : i32 to vector<1x32xi32>
    %195 = arith.cmpi slt, %2, %194 : vector<1x32xi32>
    %cst_106 = arith.constant 0.000000e+00 : f32
    %196 = vector.shape_cast %195 : vector<1x32xi1> to vector<1x32xi1>
    %197 = vector.broadcast %196 : vector<1x32xi1> to vector<32x32xi1>
    %198 = vector.broadcast %cst_106 : f32 to vector<32x32xf32>
    %199 = arith.select %197, %193, %198 : vector<32x32xi1>, vector<32x32xf32>
    %200 = arith.truncf %199 : vector<32x32xf32> to vector<32x32xbf16>
    %c3_107 = arith.constant 3 : index
    %c0_108 = arith.constant 0 : index
    %c0_109 = arith.constant 0 : index
    %201 = vector.load %arg10[%c3_107, %c0_108, %c0_109] : memref<5x32x32xbf16, #tpu.memory_space<vmem>>, vector<1x32x32xbf16>
    %202 = vector.shape_cast %201 : vector<1x32x32xbf16> to vector<32x32xbf16>
    %cst_110 = arith.constant dense<0.000000e+00> : vector<32x32xf32>
    %203 = tpu.matmul %202, %200, %cst_110 {dimension_numbers = #tpu.dot_dimension_numbers<[1], [0], [0], [1], [0, 0, 1, 1], [], []>} : vector<32x32xbf16>, vector<32x32xbf16>, vector<32x32xf32> -> vector<32x32xf32>
    %204 = arith.addf %192, %203 : vector<32x32xf32>
    %c30_i32_111 = arith.constant 30 : i32
    %205 = tpu.dynamic_rotate %163 by %c30_i32_111 dim 1 : vector<32x32xf32>, i32 -> vector<32x32xf32>
    %c30_i32_112 = arith.constant 30 : i32
    %206 = vector.broadcast %c30_i32_112 : i32 to vector<1x32xi32>
    %207 = arith.cmpi slt, %2, %206 : vector<1x32xi32>
    %cst_113 = arith.constant 0.000000e+00 : f32
    %208 = vector.shape_cast %207 : vector<1x32xi1> to vector<1x32xi1>
    %209 = vector.broadcast %208 : vector<1x32xi1> to vector<32x32xi1>
    %210 = vector.broadcast %cst_113 : f32 to vector<32x32xf32>
    %211 = arith.select %209, %205, %210 : vector<32x32xi1>, vector<32x32xf32>
    %212 = arith.truncf %211 : vector<32x32xf32> to vector<32x32xbf16>
    %c4_114 = arith.constant 4 : index
    %c0_115 = arith.constant 0 : index
    %c0_116 = arith.constant 0 : index
    %213 = vector.load %arg10[%c4_114, %c0_115, %c0_116] : memref<5x32x32xbf16, #tpu.memory_space<vmem>>, vector<1x32x32xbf16>
    %214 = vector.shape_cast %213 : vector<1x32x32xbf16> to vector<32x32xbf16>
    %cst_117 = arith.constant dense<0.000000e+00> : vector<32x32xf32>
    %215 = tpu.matmul %214, %212, %cst_117 {dimension_numbers = #tpu.dot_dimension_numbers<[1], [0], [0], [1], [0, 0, 1, 1], [], []>} : vector<32x32xbf16>, vector<32x32xbf16>, vector<32x32xf32> -> vector<32x32xf32>
    %216 = arith.addf %204, %215 : vector<32x32xf32>
    %217 = vector.broadcast %164 : vector<32x1xf32> to vector<32x32xf32>
    %218 = arith.addf %216, %217 : vector<32x32xf32>
    %219 = vector.extract_strided_slice %11 {offsets = [0, 1], sizes = [32, 1], strides = [1, 1]} : vector<32x3xf32> to vector<32x1xf32>
    %220 = vector.extract_strided_slice %11 {offsets = [0, 2], sizes = [32, 1], strides = [1, 1]} : vector<32x3xf32> to vector<32x1xf32>
    %cst_118 = arith.constant dense<0.000000e+00> : vector<32xf32>
    %221 = vector.multi_reduction <add>, %218, %cst_118 [1] : vector<32x32xf32> to vector<32xf32>
    %222 = vector.shape_cast %221 : vector<32xf32> to vector<32x1xf32>
    %cst_119 = arith.constant dense<0.000000e+00> : vector<1xf32>
    %223 = vector.multi_reduction <add>, %222, %cst_119 [0] : vector<32x1xf32> to vector<1xf32>
    %224 = vector.shape_cast %223 : vector<1xf32> to vector<1x1xf32>
    %cst_120 = arith.constant 9.765625E-4 : f32
    %225 = vector.broadcast %cst_120 : f32 to vector<1x1xf32>
    %226 = arith.mulf %224, %225 : vector<1x1xf32>
    %227 = vector.broadcast %226 : vector<1x1xf32> to vector<32x32xf32>
    %228 = arith.subf %218, %227 : vector<32x32xf32>
    %229 = arith.mulf %228, %228 : vector<32x32xf32>
    %cst_121 = arith.constant dense<0.000000e+00> : vector<32xf32>
    %230 = vector.multi_reduction <add>, %229, %cst_121 [1] : vector<32x32xf32> to vector<32xf32>
    %231 = vector.shape_cast %230 : vector<32xf32> to vector<32x1xf32>
    %cst_122 = arith.constant dense<0.000000e+00> : vector<1xf32>
    %232 = vector.multi_reduction <add>, %231, %cst_122 [0] : vector<32x1xf32> to vector<1xf32>
    %233 = vector.shape_cast %232 : vector<1xf32> to vector<1x1xf32>
    %cst_123 = arith.constant 9.765625E-4 : f32
    %234 = vector.broadcast %cst_123 : f32 to vector<1x1xf32>
    %235 = arith.mulf %233, %234 : vector<1x1xf32>
    %cst_124 = arith.constant 9.99999974E-6 : f32
    %236 = vector.broadcast %cst_124 : f32 to vector<1x1xf32>
    %237 = arith.addf %235, %236 : vector<1x1xf32>
    %238 = math.rsqrt %237 : vector<1x1xf32>
    %239 = vector.broadcast %238 : vector<1x1xf32> to vector<32x1xf32>
    %240 = arith.mulf %239, %219 : vector<32x1xf32>
    %241 = vector.broadcast %240 : vector<32x1xf32> to vector<32x32xf32>
    %242 = arith.mulf %228, %241 : vector<32x32xf32>
    %243 = vector.broadcast %220 : vector<32x1xf32> to vector<32x32xf32>
    %244 = arith.addf %242, %243 : vector<32x32xf32>
    %cst_125 = arith.constant 5.000000e-01 : f32
    %245 = vector.broadcast %cst_125 : f32 to vector<32x32xf32>
    %246 = arith.mulf %245, %244 : vector<32x32xf32>
    %cst_126 = arith.constant 0.707106769 : f32
    %247 = vector.broadcast %cst_126 : f32 to vector<32x32xf32>
    %248 = arith.mulf %244, %247 : vector<32x32xf32>
    %249 = math.erf %248 : vector<32x32xf32>
    %cst_127 = arith.constant 1.000000e+00 : f32
    %250 = vector.broadcast %cst_127 : f32 to vector<32x32xf32>
    %251 = arith.addf %250, %249 : vector<32x32xf32>
    %252 = arith.mulf %246, %251 : vector<32x32xf32>
    %253 = arith.addf %252, %18 : vector<32x32xf32>
    %c0_128 = arith.constant 0 : index
    %c0_129 = arith.constant 0 : index
    %254 = vector.load %arg13[%c0_128, %c0_129] : memref<32x3xf32, #tpu.memory_space<vmem>>, vector<32x3xf32>
    %c0_130 = arith.constant 0 : index
    %c0_131 = arith.constant 0 : index
    %255 = vector.load %arg15[%c0_130, %c0_131] : memref<32x3xf32, #tpu.memory_space<vmem>>, vector<32x3xf32>
    %256 = vector.extract_strided_slice %254 {offsets = [0, 0], sizes = [32, 1], strides = [1, 1]} : vector<32x3xf32> to vector<32x1xf32>
    %c2_i32_132 = arith.constant 2 : i32
    %257 = tpu.dynamic_rotate %253 by %c2_i32_132 dim 1 : vector<32x32xf32>, i32 -> vector<32x32xf32>
    %c2_i32_133 = arith.constant 2 : i32
    %258 = vector.broadcast %c2_i32_133 : i32 to vector<1x32xi32>
    %259 = arith.cmpi sge, %2, %258 : vector<1x32xi32>
    %cst_134 = arith.constant 0.000000e+00 : f32
    %260 = vector.shape_cast %259 : vector<1x32xi1> to vector<1x32xi1>
    %261 = vector.broadcast %260 : vector<1x32xi1> to vector<32x32xi1>
    %262 = vector.broadcast %cst_134 : f32 to vector<32x32xf32>
    %263 = arith.select %261, %257, %262 : vector<32x32xi1>, vector<32x32xf32>
    %264 = arith.truncf %263 : vector<32x32xf32> to vector<32x32xbf16>
    %c0_135 = arith.constant 0 : index
    %c0_136 = arith.constant 0 : index
    %c0_137 = arith.constant 0 : index
    %265 = vector.load %arg12[%c0_135, %c0_136, %c0_137] : memref<5x32x32xbf16, #tpu.memory_space<vmem>>, vector<1x32x32xbf16>
    %266 = vector.shape_cast %265 : vector<1x32x32xbf16> to vector<32x32xbf16>
    %cst_138 = arith.constant dense<0.000000e+00> : vector<32x32xf32>
    %267 = tpu.matmul %266, %264, %cst_138 {dimension_numbers = #tpu.dot_dimension_numbers<[1], [0], [0], [1], [0, 0, 1, 1], [], []>} : vector<32x32xbf16>, vector<32x32xbf16>, vector<32x32xf32> -> vector<32x32xf32>
    %c1_i32_139 = arith.constant 1 : i32
    %268 = tpu.dynamic_rotate %253 by %c1_i32_139 dim 1 : vector<32x32xf32>, i32 -> vector<32x32xf32>
    %c1_i32_140 = arith.constant 1 : i32
    %269 = vector.broadcast %c1_i32_140 : i32 to vector<1x32xi32>
    %270 = arith.cmpi sge, %2, %269 : vector<1x32xi32>
    %cst_141 = arith.constant 0.000000e+00 : f32
    %271 = vector.shape_cast %270 : vector<1x32xi1> to vector<1x32xi1>
    %272 = vector.broadcast %271 : vector<1x32xi1> to vector<32x32xi1>
    %273 = vector.broadcast %cst_141 : f32 to vector<32x32xf32>
    %274 = arith.select %272, %268, %273 : vector<32x32xi1>, vector<32x32xf32>
    %275 = arith.truncf %274 : vector<32x32xf32> to vector<32x32xbf16>
    %c1_142 = arith.constant 1 : index
    %c0_143 = arith.constant 0 : index
    %c0_144 = arith.constant 0 : index
    %276 = vector.load %arg12[%c1_142, %c0_143, %c0_144] : memref<5x32x32xbf16, #tpu.memory_space<vmem>>, vector<1x32x32xbf16>
    %277 = vector.shape_cast %276 : vector<1x32x32xbf16> to vector<32x32xbf16>
    %cst_145 = arith.constant dense<0.000000e+00> : vector<32x32xf32>
    %278 = tpu.matmul %277, %275, %cst_145 {dimension_numbers = #tpu.dot_dimension_numbers<[1], [0], [0], [1], [0, 0, 1, 1], [], []>} : vector<32x32xbf16>, vector<32x32xbf16>, vector<32x32xf32> -> vector<32x32xf32>
    %279 = arith.addf %267, %278 : vector<32x32xf32>
    %280 = arith.truncf %253 : vector<32x32xf32> to vector<32x32xbf16>
    %c2_146 = arith.constant 2 : index
    %c0_147 = arith.constant 0 : index
    %c0_148 = arith.constant 0 : index
    %281 = vector.load %arg12[%c2_146, %c0_147, %c0_148] : memref<5x32x32xbf16, #tpu.memory_space<vmem>>, vector<1x32x32xbf16>
    %282 = vector.shape_cast %281 : vector<1x32x32xbf16> to vector<32x32xbf16>
    %cst_149 = arith.constant dense<0.000000e+00> : vector<32x32xf32>
    %283 = tpu.matmul %282, %280, %cst_149 {dimension_numbers = #tpu.dot_dimension_numbers<[1], [0], [0], [1], [0, 0, 1, 1], [], []>} : vector<32x32xbf16>, vector<32x32xbf16>, vector<32x32xf32> -> vector<32x32xf32>
    %284 = arith.addf %279, %283 : vector<32x32xf32>
    %c31_i32_150 = arith.constant 31 : i32
    %285 = tpu.dynamic_rotate %253 by %c31_i32_150 dim 1 : vector<32x32xf32>, i32 -> vector<32x32xf32>
    %c31_i32_151 = arith.constant 31 : i32
    %286 = vector.broadcast %c31_i32_151 : i32 to vector<1x32xi32>
    %287 = arith.cmpi slt, %2, %286 : vector<1x32xi32>
    %cst_152 = arith.constant 0.000000e+00 : f32
    %288 = vector.shape_cast %287 : vector<1x32xi1> to vector<1x32xi1>
    %289 = vector.broadcast %288 : vector<1x32xi1> to vector<32x32xi1>
    %290 = vector.broadcast %cst_152 : f32 to vector<32x32xf32>
    %291 = arith.select %289, %285, %290 : vector<32x32xi1>, vector<32x32xf32>
    %292 = arith.truncf %291 : vector<32x32xf32> to vector<32x32xbf16>
    %c3_153 = arith.constant 3 : index
    %c0_154 = arith.constant 0 : index
    %c0_155 = arith.constant 0 : index
    %293 = vector.load %arg12[%c3_153, %c0_154, %c0_155] : memref<5x32x32xbf16, #tpu.memory_space<vmem>>, vector<1x32x32xbf16>
    %294 = vector.shape_cast %293 : vector<1x32x32xbf16> to vector<32x32xbf16>
    %cst_156 = arith.constant dense<0.000000e+00> : vector<32x32xf32>
    %295 = tpu.matmul %294, %292, %cst_156 {dimension_numbers = #tpu.dot_dimension_numbers<[1], [0], [0], [1], [0, 0, 1, 1], [], []>} : vector<32x32xbf16>, vector<32x32xbf16>, vector<32x32xf32> -> vector<32x32xf32>
    %296 = arith.addf %284, %295 : vector<32x32xf32>
    %c30_i32_157 = arith.constant 30 : i32
    %297 = tpu.dynamic_rotate %253 by %c30_i32_157 dim 1 : vector<32x32xf32>, i32 -> vector<32x32xf32>
    %c30_i32_158 = arith.constant 30 : i32
    %298 = vector.broadcast %c30_i32_158 : i32 to vector<1x32xi32>
    %299 = arith.cmpi slt, %2, %298 : vector<1x32xi32>
    %cst_159 = arith.constant 0.000000e+00 : f32
    %300 = vector.shape_cast %299 : vector<1x32xi1> to vector<1x32xi1>
    %301 = vector.broadcast %300 : vector<1x32xi1> to vector<32x32xi1>
    %302 = vector.broadcast %cst_159 : f32 to vector<32x32xf32>
    %303 = arith.select %301, %297, %302 : vector<32x32xi1>, vector<32x32xf32>
    %304 = arith.truncf %303 : vector<32x32xf32> to vector<32x32xbf16>
    %c4_160 = arith.constant 4 : index
    %c0_161 = arith.constant 0 : index
    %c0_162 = arith.constant 0 : index
    %305 = vector.load %arg12[%c4_160, %c0_161, %c0_162] : memref<5x32x32xbf16, #tpu.memory_space<vmem>>, vector<1x32x32xbf16>
    %306 = vector.shape_cast %305 : vector<1x32x32xbf16> to vector<32x32xbf16>
    %cst_163 = arith.constant dense<0.000000e+00> : vector<32x32xf32>
    %307 = tpu.matmul %306, %304, %cst_163 {dimension_numbers = #tpu.dot_dimension_numbers<[1], [0], [0], [1], [0, 0, 1, 1], [], []>} : vector<32x32xbf16>, vector<32x32xbf16>, vector<32x32xf32> -> vector<32x32xf32>
    %308 = arith.addf %296, %307 : vector<32x32xf32>
    %309 = vector.broadcast %256 : vector<32x1xf32> to vector<32x32xf32>
    %310 = arith.addf %308, %309 : vector<32x32xf32>
    %311 = vector.extract_strided_slice %254 {offsets = [0, 1], sizes = [32, 1], strides = [1, 1]} : vector<32x3xf32> to vector<32x1xf32>
    %312 = vector.extract_strided_slice %254 {offsets = [0, 2], sizes = [32, 1], strides = [1, 1]} : vector<32x3xf32> to vector<32x1xf32>
    %cst_164 = arith.constant dense<0.000000e+00> : vector<32xf32>
    %313 = vector.multi_reduction <add>, %310, %cst_164 [1] : vector<32x32xf32> to vector<32xf32>
    %314 = vector.shape_cast %313 : vector<32xf32> to vector<32x1xf32>
    %cst_165 = arith.constant dense<0.000000e+00> : vector<1xf32>
    %315 = vector.multi_reduction <add>, %314, %cst_165 [0] : vector<32x1xf32> to vector<1xf32>
    %316 = vector.shape_cast %315 : vector<1xf32> to vector<1x1xf32>
    %cst_166 = arith.constant 9.765625E-4 : f32
    %317 = vector.broadcast %cst_166 : f32 to vector<1x1xf32>
    %318 = arith.mulf %316, %317 : vector<1x1xf32>
    %319 = vector.broadcast %318 : vector<1x1xf32> to vector<32x32xf32>
    %320 = arith.subf %310, %319 : vector<32x32xf32>
    %321 = arith.mulf %320, %320 : vector<32x32xf32>
    %cst_167 = arith.constant dense<0.000000e+00> : vector<32xf32>
    %322 = vector.multi_reduction <add>, %321, %cst_167 [1] : vector<32x32xf32> to vector<32xf32>
    %323 = vector.shape_cast %322 : vector<32xf32> to vector<32x1xf32>
    %cst_168 = arith.constant dense<0.000000e+00> : vector<1xf32>
    %324 = vector.multi_reduction <add>, %323, %cst_168 [0] : vector<32x1xf32> to vector<1xf32>
    %325 = vector.shape_cast %324 : vector<1xf32> to vector<1x1xf32>
    %cst_169 = arith.constant 9.765625E-4 : f32
    %326 = vector.broadcast %cst_169 : f32 to vector<1x1xf32>
    %327 = arith.mulf %325, %326 : vector<1x1xf32>
    %cst_170 = arith.constant 9.99999974E-6 : f32
    %328 = vector.broadcast %cst_170 : f32 to vector<1x1xf32>
    %329 = arith.addf %327, %328 : vector<1x1xf32>
    %330 = math.rsqrt %329 : vector<1x1xf32>
    %331 = vector.broadcast %330 : vector<1x1xf32> to vector<32x1xf32>
    %332 = arith.mulf %331, %311 : vector<32x1xf32>
    %333 = vector.broadcast %332 : vector<32x1xf32> to vector<32x32xf32>
    %334 = arith.mulf %320, %333 : vector<32x32xf32>
    %335 = vector.broadcast %312 : vector<32x1xf32> to vector<32x32xf32>
    %336 = arith.addf %334, %335 : vector<32x32xf32>
    %337 = vector.extract_strided_slice %9 {offsets = [32, 0], sizes = [32, 1], strides = [1, 1]} : vector<96x1xf32> to vector<32x1xf32>
    %338 = vector.broadcast %337 : vector<32x1xf32> to vector<32x32xf32>
    %339 = arith.addf %336, %338 : vector<32x32xf32>
    %cst_171 = arith.constant 5.000000e-01 : f32
    %340 = vector.broadcast %cst_171 : f32 to vector<32x32xf32>
    %341 = arith.mulf %340, %339 : vector<32x32xf32>
    %cst_172 = arith.constant 0.707106769 : f32
    %342 = vector.broadcast %cst_172 : f32 to vector<32x32xf32>
    %343 = arith.mulf %339, %342 : vector<32x32xf32>
    %344 = math.erf %343 : vector<32x32xf32>
    %cst_173 = arith.constant 1.000000e+00 : f32
    %345 = vector.broadcast %cst_173 : f32 to vector<32x32xf32>
    %346 = arith.addf %345, %344 : vector<32x32xf32>
    %347 = arith.mulf %341, %346 : vector<32x32xf32>
    %348 = vector.extract_strided_slice %255 {offsets = [0, 0], sizes = [32, 1], strides = [1, 1]} : vector<32x3xf32> to vector<32x1xf32>
    %c2_i32_174 = arith.constant 2 : i32
    %349 = tpu.dynamic_rotate %347 by %c2_i32_174 dim 1 : vector<32x32xf32>, i32 -> vector<32x32xf32>
    %c2_i32_175 = arith.constant 2 : i32
    %350 = vector.broadcast %c2_i32_175 : i32 to vector<1x32xi32>
    %351 = arith.cmpi sge, %2, %350 : vector<1x32xi32>
    %cst_176 = arith.constant 0.000000e+00 : f32
    %352 = vector.shape_cast %351 : vector<1x32xi1> to vector<1x32xi1>
    %353 = vector.broadcast %352 : vector<1x32xi1> to vector<32x32xi1>
    %354 = vector.broadcast %cst_176 : f32 to vector<32x32xf32>
    %355 = arith.select %353, %349, %354 : vector<32x32xi1>, vector<32x32xf32>
    %356 = arith.truncf %355 : vector<32x32xf32> to vector<32x32xbf16>
    %c0_177 = arith.constant 0 : index
    %c0_178 = arith.constant 0 : index
    %c0_179 = arith.constant 0 : index
    %357 = vector.load %arg14[%c0_177, %c0_178, %c0_179] : memref<5x32x32xbf16, #tpu.memory_space<vmem>>, vector<1x32x32xbf16>
    %358 = vector.shape_cast %357 : vector<1x32x32xbf16> to vector<32x32xbf16>
    %cst_180 = arith.constant dense<0.000000e+00> : vector<32x32xf32>
    %359 = tpu.matmul %358, %356, %cst_180 {dimension_numbers = #tpu.dot_dimension_numbers<[1], [0], [0], [1], [0, 0, 1, 1], [], []>} : vector<32x32xbf16>, vector<32x32xbf16>, vector<32x32xf32> -> vector<32x32xf32>
    %c1_i32_181 = arith.constant 1 : i32
    %360 = tpu.dynamic_rotate %347 by %c1_i32_181 dim 1 : vector<32x32xf32>, i32 -> vector<32x32xf32>
    %c1_i32_182 = arith.constant 1 : i32
    %361 = vector.broadcast %c1_i32_182 : i32 to vector<1x32xi32>
    %362 = arith.cmpi sge, %2, %361 : vector<1x32xi32>
    %cst_183 = arith.constant 0.000000e+00 : f32
    %363 = vector.shape_cast %362 : vector<1x32xi1> to vector<1x32xi1>
    %364 = vector.broadcast %363 : vector<1x32xi1> to vector<32x32xi1>
    %365 = vector.broadcast %cst_183 : f32 to vector<32x32xf32>
    %366 = arith.select %364, %360, %365 : vector<32x32xi1>, vector<32x32xf32>
    %367 = arith.truncf %366 : vector<32x32xf32> to vector<32x32xbf16>
    %c1_184 = arith.constant 1 : index
    %c0_185 = arith.constant 0 : index
    %c0_186 = arith.constant 0 : index
    %368 = vector.load %arg14[%c1_184, %c0_185, %c0_186] : memref<5x32x32xbf16, #tpu.memory_space<vmem>>, vector<1x32x32xbf16>
    %369 = vector.shape_cast %368 : vector<1x32x32xbf16> to vector<32x32xbf16>
    %cst_187 = arith.constant dense<0.000000e+00> : vector<32x32xf32>
    %370 = tpu.matmul %369, %367, %cst_187 {dimension_numbers = #tpu.dot_dimension_numbers<[1], [0], [0], [1], [0, 0, 1, 1], [], []>} : vector<32x32xbf16>, vector<32x32xbf16>, vector<32x32xf32> -> vector<32x32xf32>
    %371 = arith.addf %359, %370 : vector<32x32xf32>
    %372 = arith.truncf %347 : vector<32x32xf32> to vector<32x32xbf16>
    %c2_188 = arith.constant 2 : index
    %c0_189 = arith.constant 0 : index
    %c0_190 = arith.constant 0 : index
    %373 = vector.load %arg14[%c2_188, %c0_189, %c0_190] : memref<5x32x32xbf16, #tpu.memory_space<vmem>>, vector<1x32x32xbf16>
    %374 = vector.shape_cast %373 : vector<1x32x32xbf16> to vector<32x32xbf16>
    %cst_191 = arith.constant dense<0.000000e+00> : vector<32x32xf32>
    %375 = tpu.matmul %374, %372, %cst_191 {dimension_numbers = #tpu.dot_dimension_numbers<[1], [0], [0], [1], [0, 0, 1, 1], [], []>} : vector<32x32xbf16>, vector<32x32xbf16>, vector<32x32xf32> -> vector<32x32xf32>
    %376 = arith.addf %371, %375 : vector<32x32xf32>
    %c31_i32_192 = arith.constant 31 : i32
    %377 = tpu.dynamic_rotate %347 by %c31_i32_192 dim 1 : vector<32x32xf32>, i32 -> vector<32x32xf32>
    %c31_i32_193 = arith.constant 31 : i32
    %378 = vector.broadcast %c31_i32_193 : i32 to vector<1x32xi32>
    %379 = arith.cmpi slt, %2, %378 : vector<1x32xi32>
    %cst_194 = arith.constant 0.000000e+00 : f32
    %380 = vector.shape_cast %379 : vector<1x32xi1> to vector<1x32xi1>
    %381 = vector.broadcast %380 : vector<1x32xi1> to vector<32x32xi1>
    %382 = vector.broadcast %cst_194 : f32 to vector<32x32xf32>
    %383 = arith.select %381, %377, %382 : vector<32x32xi1>, vector<32x32xf32>
    %384 = arith.truncf %383 : vector<32x32xf32> to vector<32x32xbf16>
    %c3_195 = arith.constant 3 : index
    %c0_196 = arith.constant 0 : index
    %c0_197 = arith.constant 0 : index
    %385 = vector.load %arg14[%c3_195, %c0_196, %c0_197] : memref<5x32x32xbf16, #tpu.memory_space<vmem>>, vector<1x32x32xbf16>
    %386 = vector.shape_cast %385 : vector<1x32x32xbf16> to vector<32x32xbf16>
    %cst_198 = arith.constant dense<0.000000e+00> : vector<32x32xf32>
    %387 = tpu.matmul %386, %384, %cst_198 {dimension_numbers = #tpu.dot_dimension_numbers<[1], [0], [0], [1], [0, 0, 1, 1], [], []>} : vector<32x32xbf16>, vector<32x32xbf16>, vector<32x32xf32> -> vector<32x32xf32>
    %388 = arith.addf %376, %387 : vector<32x32xf32>
    %c30_i32_199 = arith.constant 30 : i32
    %389 = tpu.dynamic_rotate %347 by %c30_i32_199 dim 1 : vector<32x32xf32>, i32 -> vector<32x32xf32>
    %c30_i32_200 = arith.constant 30 : i32
    %390 = vector.broadcast %c30_i32_200 : i32 to vector<1x32xi32>
    %391 = arith.cmpi slt, %2, %390 : vector<1x32xi32>
    %cst_201 = arith.constant 0.000000e+00 : f32
    %392 = vector.shape_cast %391 : vector<1x32xi1> to vector<1x32xi1>
    %393 = vector.broadcast %392 : vector<1x32xi1> to vector<32x32xi1>
    %394 = vector.broadcast %cst_201 : f32 to vector<32x32xf32>
    %395 = arith.select %393, %389, %394 : vector<32x32xi1>, vector<32x32xf32>
    %396 = arith.truncf %395 : vector<32x32xf32> to vector<32x32xbf16>
    %c4_202 = arith.constant 4 : index
    %c0_203 = arith.constant 0 : index
    %c0_204 = arith.constant 0 : index
    %397 = vector.load %arg14[%c4_202, %c0_203, %c0_204] : memref<5x32x32xbf16, #tpu.memory_space<vmem>>, vector<1x32x32xbf16>
    %398 = vector.shape_cast %397 : vector<1x32x32xbf16> to vector<32x32xbf16>
    %cst_205 = arith.constant dense<0.000000e+00> : vector<32x32xf32>
    %399 = tpu.matmul %398, %396, %cst_205 {dimension_numbers = #tpu.dot_dimension_numbers<[1], [0], [0], [1], [0, 0, 1, 1], [], []>} : vector<32x32xbf16>, vector<32x32xbf16>, vector<32x32xf32> -> vector<32x32xf32>
    %400 = arith.addf %388, %399 : vector<32x32xf32>
    %401 = vector.broadcast %348 : vector<32x1xf32> to vector<32x32xf32>
    %402 = arith.addf %400, %401 : vector<32x32xf32>
    %403 = vector.extract_strided_slice %255 {offsets = [0, 1], sizes = [32, 1], strides = [1, 1]} : vector<32x3xf32> to vector<32x1xf32>
    %404 = vector.extract_strided_slice %255 {offsets = [0, 2], sizes = [32, 1], strides = [1, 1]} : vector<32x3xf32> to vector<32x1xf32>
    %cst_206 = arith.constant dense<0.000000e+00> : vector<32xf32>
    %405 = vector.multi_reduction <add>, %402, %cst_206 [1] : vector<32x32xf32> to vector<32xf32>
    %406 = vector.shape_cast %405 : vector<32xf32> to vector<32x1xf32>
    %cst_207 = arith.constant dense<0.000000e+00> : vector<1xf32>
    %407 = vector.multi_reduction <add>, %406, %cst_207 [0] : vector<32x1xf32> to vector<1xf32>
    %408 = vector.shape_cast %407 : vector<1xf32> to vector<1x1xf32>
    %cst_208 = arith.constant 9.765625E-4 : f32
    %409 = vector.broadcast %cst_208 : f32 to vector<1x1xf32>
    %410 = arith.mulf %408, %409 : vector<1x1xf32>
    %411 = vector.broadcast %410 : vector<1x1xf32> to vector<32x32xf32>
    %412 = arith.subf %402, %411 : vector<32x32xf32>
    %413 = arith.mulf %412, %412 : vector<32x32xf32>
    %cst_209 = arith.constant dense<0.000000e+00> : vector<32xf32>
    %414 = vector.multi_reduction <add>, %413, %cst_209 [1] : vector<32x32xf32> to vector<32xf32>
    %415 = vector.shape_cast %414 : vector<32xf32> to vector<32x1xf32>
    %cst_210 = arith.constant dense<0.000000e+00> : vector<1xf32>
    %416 = vector.multi_reduction <add>, %415, %cst_210 [0] : vector<32x1xf32> to vector<1xf32>
    %417 = vector.shape_cast %416 : vector<1xf32> to vector<1x1xf32>
    %cst_211 = arith.constant 9.765625E-4 : f32
    %418 = vector.broadcast %cst_211 : f32 to vector<1x1xf32>
    %419 = arith.mulf %417, %418 : vector<1x1xf32>
    %cst_212 = arith.constant 9.99999974E-6 : f32
    %420 = vector.broadcast %cst_212 : f32 to vector<1x1xf32>
    %421 = arith.addf %419, %420 : vector<1x1xf32>
    %422 = math.rsqrt %421 : vector<1x1xf32>
    %423 = vector.broadcast %422 : vector<1x1xf32> to vector<32x1xf32>
    %424 = arith.mulf %423, %403 : vector<32x1xf32>
    %425 = vector.broadcast %424 : vector<32x1xf32> to vector<32x32xf32>
    %426 = arith.mulf %412, %425 : vector<32x32xf32>
    %427 = vector.broadcast %404 : vector<32x1xf32> to vector<32x32xf32>
    %428 = arith.addf %426, %427 : vector<32x32xf32>
    %cst_213 = arith.constant 5.000000e-01 : f32
    %429 = vector.broadcast %cst_213 : f32 to vector<32x32xf32>
    %430 = arith.mulf %429, %428 : vector<32x32xf32>
    %cst_214 = arith.constant 0.707106769 : f32
    %431 = vector.broadcast %cst_214 : f32 to vector<32x32xf32>
    %432 = arith.mulf %428, %431 : vector<32x32xf32>
    %433 = math.erf %432 : vector<32x32xf32>
    %cst_215 = arith.constant 1.000000e+00 : f32
    %434 = vector.broadcast %cst_215 : f32 to vector<32x32xf32>
    %435 = arith.addf %434, %433 : vector<32x32xf32>
    %436 = arith.mulf %430, %435 : vector<32x32xf32>
    %437 = arith.addf %436, %253 : vector<32x32xf32>
    %c0_216 = arith.constant 0 : index
    %c0_217 = arith.constant 0 : index
    %438 = vector.load %arg17[%c0_216, %c0_217] : memref<32x3xf32, #tpu.memory_space<vmem>>, vector<32x3xf32>
    %c0_218 = arith.constant 0 : index
    %c0_219 = arith.constant 0 : index
    %439 = vector.load %arg19[%c0_218, %c0_219] : memref<32x3xf32, #tpu.memory_space<vmem>>, vector<32x3xf32>
    %440 = vector.extract_strided_slice %438 {offsets = [0, 0], sizes = [32, 1], strides = [1, 1]} : vector<32x3xf32> to vector<32x1xf32>
    %c2_i32_220 = arith.constant 2 : i32
    %441 = tpu.dynamic_rotate %437 by %c2_i32_220 dim 1 : vector<32x32xf32>, i32 -> vector<32x32xf32>
    %c2_i32_221 = arith.constant 2 : i32
    %442 = vector.broadcast %c2_i32_221 : i32 to vector<1x32xi32>
    %443 = arith.cmpi sge, %2, %442 : vector<1x32xi32>
    %cst_222 = arith.constant 0.000000e+00 : f32
    %444 = vector.shape_cast %443 : vector<1x32xi1> to vector<1x32xi1>
    %445 = vector.broadcast %444 : vector<1x32xi1> to vector<32x32xi1>
    %446 = vector.broadcast %cst_222 : f32 to vector<32x32xf32>
    %447 = arith.select %445, %441, %446 : vector<32x32xi1>, vector<32x32xf32>
    %448 = arith.truncf %447 : vector<32x32xf32> to vector<32x32xbf16>
    %c0_223 = arith.constant 0 : index
    %c0_224 = arith.constant 0 : index
    %c0_225 = arith.constant 0 : index
    %449 = vector.load %arg16[%c0_223, %c0_224, %c0_225] : memref<5x32x32xbf16, #tpu.memory_space<vmem>>, vector<1x32x32xbf16>
    %450 = vector.shape_cast %449 : vector<1x32x32xbf16> to vector<32x32xbf16>
    %cst_226 = arith.constant dense<0.000000e+00> : vector<32x32xf32>
    %451 = tpu.matmul %450, %448, %cst_226 {dimension_numbers = #tpu.dot_dimension_numbers<[1], [0], [0], [1], [0, 0, 1, 1], [], []>} : vector<32x32xbf16>, vector<32x32xbf16>, vector<32x32xf32> -> vector<32x32xf32>
    %c1_i32_227 = arith.constant 1 : i32
    %452 = tpu.dynamic_rotate %437 by %c1_i32_227 dim 1 : vector<32x32xf32>, i32 -> vector<32x32xf32>
    %c1_i32_228 = arith.constant 1 : i32
    %453 = vector.broadcast %c1_i32_228 : i32 to vector<1x32xi32>
    %454 = arith.cmpi sge, %2, %453 : vector<1x32xi32>
    %cst_229 = arith.constant 0.000000e+00 : f32
    %455 = vector.shape_cast %454 : vector<1x32xi1> to vector<1x32xi1>
    %456 = vector.broadcast %455 : vector<1x32xi1> to vector<32x32xi1>
    %457 = vector.broadcast %cst_229 : f32 to vector<32x32xf32>
    %458 = arith.select %456, %452, %457 : vector<32x32xi1>, vector<32x32xf32>
    %459 = arith.truncf %458 : vector<32x32xf32> to vector<32x32xbf16>
    %c1_230 = arith.constant 1 : index
    %c0_231 = arith.constant 0 : index
    %c0_232 = arith.constant 0 : index
    %460 = vector.load %arg16[%c1_230, %c0_231, %c0_232] : memref<5x32x32xbf16, #tpu.memory_space<vmem>>, vector<1x32x32xbf16>
    %461 = vector.shape_cast %460 : vector<1x32x32xbf16> to vector<32x32xbf16>
    %cst_233 = arith.constant dense<0.000000e+00> : vector<32x32xf32>
    %462 = tpu.matmul %461, %459, %cst_233 {dimension_numbers = #tpu.dot_dimension_numbers<[1], [0], [0], [1], [0, 0, 1, 1], [], []>} : vector<32x32xbf16>, vector<32x32xbf16>, vector<32x32xf32> -> vector<32x32xf32>
    %463 = arith.addf %451, %462 : vector<32x32xf32>
    %464 = arith.truncf %437 : vector<32x32xf32> to vector<32x32xbf16>
    %c2_234 = arith.constant 2 : index
    %c0_235 = arith.constant 0 : index
    %c0_236 = arith.constant 0 : index
    %465 = vector.load %arg16[%c2_234, %c0_235, %c0_236] : memref<5x32x32xbf16, #tpu.memory_space<vmem>>, vector<1x32x32xbf16>
    %466 = vector.shape_cast %465 : vector<1x32x32xbf16> to vector<32x32xbf16>
    %cst_237 = arith.constant dense<0.000000e+00> : vector<32x32xf32>
    %467 = tpu.matmul %466, %464, %cst_237 {dimension_numbers = #tpu.dot_dimension_numbers<[1], [0], [0], [1], [0, 0, 1, 1], [], []>} : vector<32x32xbf16>, vector<32x32xbf16>, vector<32x32xf32> -> vector<32x32xf32>
    %468 = arith.addf %463, %467 : vector<32x32xf32>
    %c31_i32_238 = arith.constant 31 : i32
    %469 = tpu.dynamic_rotate %437 by %c31_i32_238 dim 1 : vector<32x32xf32>, i32 -> vector<32x32xf32>
    %c31_i32_239 = arith.constant 31 : i32
    %470 = vector.broadcast %c31_i32_239 : i32 to vector<1x32xi32>
    %471 = arith.cmpi slt, %2, %470 : vector<1x32xi32>
    %cst_240 = arith.constant 0.000000e+00 : f32
    %472 = vector.shape_cast %471 : vector<1x32xi1> to vector<1x32xi1>
    %473 = vector.broadcast %472 : vector<1x32xi1> to vector<32x32xi1>
    %474 = vector.broadcast %cst_240 : f32 to vector<32x32xf32>
    %475 = arith.select %473, %469, %474 : vector<32x32xi1>, vector<32x32xf32>
    %476 = arith.truncf %475 : vector<32x32xf32> to vector<32x32xbf16>
    %c3_241 = arith.constant 3 : index
    %c0_242 = arith.constant 0 : index
    %c0_243 = arith.constant 0 : index
    %477 = vector.load %arg16[%c3_241, %c0_242, %c0_243] : memref<5x32x32xbf16, #tpu.memory_space<vmem>>, vector<1x32x32xbf16>
    %478 = vector.shape_cast %477 : vector<1x32x32xbf16> to vector<32x32xbf16>
    %cst_244 = arith.constant dense<0.000000e+00> : vector<32x32xf32>
    %479 = tpu.matmul %478, %476, %cst_244 {dimension_numbers = #tpu.dot_dimension_numbers<[1], [0], [0], [1], [0, 0, 1, 1], [], []>} : vector<32x32xbf16>, vector<32x32xbf16>, vector<32x32xf32> -> vector<32x32xf32>
    %480 = arith.addf %468, %479 : vector<32x32xf32>
    %c30_i32_245 = arith.constant 30 : i32
    %481 = tpu.dynamic_rotate %437 by %c30_i32_245 dim 1 : vector<32x32xf32>, i32 -> vector<32x32xf32>
    %c30_i32_246 = arith.constant 30 : i32
    %482 = vector.broadcast %c30_i32_246 : i32 to vector<1x32xi32>
    %483 = arith.cmpi slt, %2, %482 : vector<1x32xi32>
    %cst_247 = arith.constant 0.000000e+00 : f32
    %484 = vector.shape_cast %483 : vector<1x32xi1> to vector<1x32xi1>
    %485 = vector.broadcast %484 : vector<1x32xi1> to vector<32x32xi1>
    %486 = vector.broadcast %cst_247 : f32 to vector<32x32xf32>
    %487 = arith.select %485, %481, %486 : vector<32x32xi1>, vector<32x32xf32>
    %488 = arith.truncf %487 : vector<32x32xf32> to vector<32x32xbf16>
    %c4_248 = arith.constant 4 : index
    %c0_249 = arith.constant 0 : index
    %c0_250 = arith.constant 0 : index
    %489 = vector.load %arg16[%c4_248, %c0_249, %c0_250] : memref<5x32x32xbf16, #tpu.memory_space<vmem>>, vector<1x32x32xbf16>
    %490 = vector.shape_cast %489 : vector<1x32x32xbf16> to vector<32x32xbf16>
    %cst_251 = arith.constant dense<0.000000e+00> : vector<32x32xf32>
    %491 = tpu.matmul %490, %488, %cst_251 {dimension_numbers = #tpu.dot_dimension_numbers<[1], [0], [0], [1], [0, 0, 1, 1], [], []>} : vector<32x32xbf16>, vector<32x32xbf16>, vector<32x32xf32> -> vector<32x32xf32>
    %492 = arith.addf %480, %491 : vector<32x32xf32>
    %493 = vector.broadcast %440 : vector<32x1xf32> to vector<32x32xf32>
    %494 = arith.addf %492, %493 : vector<32x32xf32>
    %495 = vector.extract_strided_slice %438 {offsets = [0, 1], sizes = [32, 1], strides = [1, 1]} : vector<32x3xf32> to vector<32x1xf32>
    %496 = vector.extract_strided_slice %438 {offsets = [0, 2], sizes = [32, 1], strides = [1, 1]} : vector<32x3xf32> to vector<32x1xf32>
    %cst_252 = arith.constant dense<0.000000e+00> : vector<32xf32>
    %497 = vector.multi_reduction <add>, %494, %cst_252 [1] : vector<32x32xf32> to vector<32xf32>
    %498 = vector.shape_cast %497 : vector<32xf32> to vector<32x1xf32>
    %cst_253 = arith.constant dense<0.000000e+00> : vector<1xf32>
    %499 = vector.multi_reduction <add>, %498, %cst_253 [0] : vector<32x1xf32> to vector<1xf32>
    %500 = vector.shape_cast %499 : vector<1xf32> to vector<1x1xf32>
    %cst_254 = arith.constant 9.765625E-4 : f32
    %501 = vector.broadcast %cst_254 : f32 to vector<1x1xf32>
    %502 = arith.mulf %500, %501 : vector<1x1xf32>
    %503 = vector.broadcast %502 : vector<1x1xf32> to vector<32x32xf32>
    %504 = arith.subf %494, %503 : vector<32x32xf32>
    %505 = arith.mulf %504, %504 : vector<32x32xf32>
    %cst_255 = arith.constant dense<0.000000e+00> : vector<32xf32>
    %506 = vector.multi_reduction <add>, %505, %cst_255 [1] : vector<32x32xf32> to vector<32xf32>
    %507 = vector.shape_cast %506 : vector<32xf32> to vector<32x1xf32>
    %cst_256 = arith.constant dense<0.000000e+00> : vector<1xf32>
    %508 = vector.multi_reduction <add>, %507, %cst_256 [0] : vector<32x1xf32> to vector<1xf32>
    %509 = vector.shape_cast %508 : vector<1xf32> to vector<1x1xf32>
    %cst_257 = arith.constant 9.765625E-4 : f32
    %510 = vector.broadcast %cst_257 : f32 to vector<1x1xf32>
    %511 = arith.mulf %509, %510 : vector<1x1xf32>
    %cst_258 = arith.constant 9.99999974E-6 : f32
    %512 = vector.broadcast %cst_258 : f32 to vector<1x1xf32>
    %513 = arith.addf %511, %512 : vector<1x1xf32>
    %514 = math.rsqrt %513 : vector<1x1xf32>
    %515 = vector.broadcast %514 : vector<1x1xf32> to vector<32x1xf32>
    %516 = arith.mulf %515, %495 : vector<32x1xf32>
    %517 = vector.broadcast %516 : vector<32x1xf32> to vector<32x32xf32>
    %518 = arith.mulf %504, %517 : vector<32x32xf32>
    %519 = vector.broadcast %496 : vector<32x1xf32> to vector<32x32xf32>
    %520 = arith.addf %518, %519 : vector<32x32xf32>
    %521 = vector.extract_strided_slice %9 {offsets = [64, 0], sizes = [32, 1], strides = [1, 1]} : vector<96x1xf32> to vector<32x1xf32>
    %522 = vector.broadcast %521 : vector<32x1xf32> to vector<32x32xf32>
    %523 = arith.addf %520, %522 : vector<32x32xf32>
    %cst_259 = arith.constant 5.000000e-01 : f32
    %524 = vector.broadcast %cst_259 : f32 to vector<32x32xf32>
    %525 = arith.mulf %524, %523 : vector<32x32xf32>
    %cst_260 = arith.constant 0.707106769 : f32
    %526 = vector.broadcast %cst_260 : f32 to vector<32x32xf32>
    %527 = arith.mulf %523, %526 : vector<32x32xf32>
    %528 = math.erf %527 : vector<32x32xf32>
    %cst_261 = arith.constant 1.000000e+00 : f32
    %529 = vector.broadcast %cst_261 : f32 to vector<32x32xf32>
    %530 = arith.addf %529, %528 : vector<32x32xf32>
    %531 = arith.mulf %525, %530 : vector<32x32xf32>
    %532 = vector.extract_strided_slice %439 {offsets = [0, 0], sizes = [32, 1], strides = [1, 1]} : vector<32x3xf32> to vector<32x1xf32>
    %c2_i32_262 = arith.constant 2 : i32
    %533 = tpu.dynamic_rotate %531 by %c2_i32_262 dim 1 : vector<32x32xf32>, i32 -> vector<32x32xf32>
    %c2_i32_263 = arith.constant 2 : i32
    %534 = vector.broadcast %c2_i32_263 : i32 to vector<1x32xi32>
    %535 = arith.cmpi sge, %2, %534 : vector<1x32xi32>
    %cst_264 = arith.constant 0.000000e+00 : f32
    %536 = vector.shape_cast %535 : vector<1x32xi1> to vector<1x32xi1>
    %537 = vector.broadcast %536 : vector<1x32xi1> to vector<32x32xi1>
    %538 = vector.broadcast %cst_264 : f32 to vector<32x32xf32>
    %539 = arith.select %537, %533, %538 : vector<32x32xi1>, vector<32x32xf32>
    %540 = arith.truncf %539 : vector<32x32xf32> to vector<32x32xbf16>
    %c0_265 = arith.constant 0 : index
    %c0_266 = arith.constant 0 : index
    %c0_267 = arith.constant 0 : index
    %541 = vector.load %arg18[%c0_265, %c0_266, %c0_267] : memref<5x32x32xbf16, #tpu.memory_space<vmem>>, vector<1x32x32xbf16>
    %542 = vector.shape_cast %541 : vector<1x32x32xbf16> to vector<32x32xbf16>
    %cst_268 = arith.constant dense<0.000000e+00> : vector<32x32xf32>
    %543 = tpu.matmul %542, %540, %cst_268 {dimension_numbers = #tpu.dot_dimension_numbers<[1], [0], [0], [1], [0, 0, 1, 1], [], []>} : vector<32x32xbf16>, vector<32x32xbf16>, vector<32x32xf32> -> vector<32x32xf32>
    %c1_i32_269 = arith.constant 1 : i32
    %544 = tpu.dynamic_rotate %531 by %c1_i32_269 dim 1 : vector<32x32xf32>, i32 -> vector<32x32xf32>
    %c1_i32_270 = arith.constant 1 : i32
    %545 = vector.broadcast %c1_i32_270 : i32 to vector<1x32xi32>
    %546 = arith.cmpi sge, %2, %545 : vector<1x32xi32>
    %cst_271 = arith.constant 0.000000e+00 : f32
    %547 = vector.shape_cast %546 : vector<1x32xi1> to vector<1x32xi1>
    %548 = vector.broadcast %547 : vector<1x32xi1> to vector<32x32xi1>
    %549 = vector.broadcast %cst_271 : f32 to vector<32x32xf32>
    %550 = arith.select %548, %544, %549 : vector<32x32xi1>, vector<32x32xf32>
    %551 = arith.truncf %550 : vector<32x32xf32> to vector<32x32xbf16>
    %c1_272 = arith.constant 1 : index
    %c0_273 = arith.constant 0 : index
    %c0_274 = arith.constant 0 : index
    %552 = vector.load %arg18[%c1_272, %c0_273, %c0_274] : memref<5x32x32xbf16, #tpu.memory_space<vmem>>, vector<1x32x32xbf16>
    %553 = vector.shape_cast %552 : vector<1x32x32xbf16> to vector<32x32xbf16>
    %cst_275 = arith.constant dense<0.000000e+00> : vector<32x32xf32>
    %554 = tpu.matmul %553, %551, %cst_275 {dimension_numbers = #tpu.dot_dimension_numbers<[1], [0], [0], [1], [0, 0, 1, 1], [], []>} : vector<32x32xbf16>, vector<32x32xbf16>, vector<32x32xf32> -> vector<32x32xf32>
    %555 = arith.addf %543, %554 : vector<32x32xf32>
    %556 = arith.truncf %531 : vector<32x32xf32> to vector<32x32xbf16>
    %c2_276 = arith.constant 2 : index
    %c0_277 = arith.constant 0 : index
    %c0_278 = arith.constant 0 : index
    %557 = vector.load %arg18[%c2_276, %c0_277, %c0_278] : memref<5x32x32xbf16, #tpu.memory_space<vmem>>, vector<1x32x32xbf16>
    %558 = vector.shape_cast %557 : vector<1x32x32xbf16> to vector<32x32xbf16>
    %cst_279 = arith.constant dense<0.000000e+00> : vector<32x32xf32>
    %559 = tpu.matmul %558, %556, %cst_279 {dimension_numbers = #tpu.dot_dimension_numbers<[1], [0], [0], [1], [0, 0, 1, 1], [], []>} : vector<32x32xbf16>, vector<32x32xbf16>, vector<32x32xf32> -> vector<32x32xf32>
    %560 = arith.addf %555, %559 : vector<32x32xf32>
    %c31_i32_280 = arith.constant 31 : i32
    %561 = tpu.dynamic_rotate %531 by %c31_i32_280 dim 1 : vector<32x32xf32>, i32 -> vector<32x32xf32>
    %c31_i32_281 = arith.constant 31 : i32
    %562 = vector.broadcast %c31_i32_281 : i32 to vector<1x32xi32>
    %563 = arith.cmpi slt, %2, %562 : vector<1x32xi32>
    %cst_282 = arith.constant 0.000000e+00 : f32
    %564 = vector.shape_cast %563 : vector<1x32xi1> to vector<1x32xi1>
    %565 = vector.broadcast %564 : vector<1x32xi1> to vector<32x32xi1>
    %566 = vector.broadcast %cst_282 : f32 to vector<32x32xf32>
    %567 = arith.select %565, %561, %566 : vector<32x32xi1>, vector<32x32xf32>
    %568 = arith.truncf %567 : vector<32x32xf32> to vector<32x32xbf16>
    %c3_283 = arith.constant 3 : index
    %c0_284 = arith.constant 0 : index
    %c0_285 = arith.constant 0 : index
    %569 = vector.load %arg18[%c3_283, %c0_284, %c0_285] : memref<5x32x32xbf16, #tpu.memory_space<vmem>>, vector<1x32x32xbf16>
    %570 = vector.shape_cast %569 : vector<1x32x32xbf16> to vector<32x32xbf16>
    %cst_286 = arith.constant dense<0.000000e+00> : vector<32x32xf32>
    %571 = tpu.matmul %570, %568, %cst_286 {dimension_numbers = #tpu.dot_dimension_numbers<[1], [0], [0], [1], [0, 0, 1, 1], [], []>} : vector<32x32xbf16>, vector<32x32xbf16>, vector<32x32xf32> -> vector<32x32xf32>
    %572 = arith.addf %560, %571 : vector<32x32xf32>
    %c30_i32_287 = arith.constant 30 : i32
    %573 = tpu.dynamic_rotate %531 by %c30_i32_287 dim 1 : vector<32x32xf32>, i32 -> vector<32x32xf32>
    %c30_i32_288 = arith.constant 30 : i32
    %574 = vector.broadcast %c30_i32_288 : i32 to vector<1x32xi32>
    %575 = arith.cmpi slt, %2, %574 : vector<1x32xi32>
    %cst_289 = arith.constant 0.000000e+00 : f32
    %576 = vector.shape_cast %575 : vector<1x32xi1> to vector<1x32xi1>
    %577 = vector.broadcast %576 : vector<1x32xi1> to vector<32x32xi1>
    %578 = vector.broadcast %cst_289 : f32 to vector<32x32xf32>
    %579 = arith.select %577, %573, %578 : vector<32x32xi1>, vector<32x32xf32>
    %580 = arith.truncf %579 : vector<32x32xf32> to vector<32x32xbf16>
    %c4_290 = arith.constant 4 : index
    %c0_291 = arith.constant 0 : index
    %c0_292 = arith.constant 0 : index
    %581 = vector.load %arg18[%c4_290, %c0_291, %c0_292] : memref<5x32x32xbf16, #tpu.memory_space<vmem>>, vector<1x32x32xbf16>
    %582 = vector.shape_cast %581 : vector<1x32x32xbf16> to vector<32x32xbf16>
    %cst_293 = arith.constant dense<0.000000e+00> : vector<32x32xf32>
    %583 = tpu.matmul %582, %580, %cst_293 {dimension_numbers = #tpu.dot_dimension_numbers<[1], [0], [0], [1], [0, 0, 1, 1], [], []>} : vector<32x32xbf16>, vector<32x32xbf16>, vector<32x32xf32> -> vector<32x32xf32>
    %584 = arith.addf %572, %583 : vector<32x32xf32>
    %585 = vector.broadcast %532 : vector<32x1xf32> to vector<32x32xf32>
    %586 = arith.addf %584, %585 : vector<32x32xf32>
    %587 = vector.extract_strided_slice %439 {offsets = [0, 1], sizes = [32, 1], strides = [1, 1]} : vector<32x3xf32> to vector<32x1xf32>
    %588 = vector.extract_strided_slice %439 {offsets = [0, 2], sizes = [32, 1], strides = [1, 1]} : vector<32x3xf32> to vector<32x1xf32>
    %cst_294 = arith.constant dense<0.000000e+00> : vector<32xf32>
    %589 = vector.multi_reduction <add>, %586, %cst_294 [1] : vector<32x32xf32> to vector<32xf32>
    %590 = vector.shape_cast %589 : vector<32xf32> to vector<32x1xf32>
    %cst_295 = arith.constant dense<0.000000e+00> : vector<1xf32>
    %591 = vector.multi_reduction <add>, %590, %cst_295 [0] : vector<32x1xf32> to vector<1xf32>
    %592 = vector.shape_cast %591 : vector<1xf32> to vector<1x1xf32>
    %cst_296 = arith.constant 9.765625E-4 : f32
    %593 = vector.broadcast %cst_296 : f32 to vector<1x1xf32>
    %594 = arith.mulf %592, %593 : vector<1x1xf32>
    %595 = vector.broadcast %594 : vector<1x1xf32> to vector<32x32xf32>
    %596 = arith.subf %586, %595 : vector<32x32xf32>
    %597 = arith.mulf %596, %596 : vector<32x32xf32>
    %cst_297 = arith.constant dense<0.000000e+00> : vector<32xf32>
    %598 = vector.multi_reduction <add>, %597, %cst_297 [1] : vector<32x32xf32> to vector<32xf32>
    %599 = vector.shape_cast %598 : vector<32xf32> to vector<32x1xf32>
    %cst_298 = arith.constant dense<0.000000e+00> : vector<1xf32>
    %600 = vector.multi_reduction <add>, %599, %cst_298 [0] : vector<32x1xf32> to vector<1xf32>
    %601 = vector.shape_cast %600 : vector<1xf32> to vector<1x1xf32>
    %cst_299 = arith.constant 9.765625E-4 : f32
    %602 = vector.broadcast %cst_299 : f32 to vector<1x1xf32>
    %603 = arith.mulf %601, %602 : vector<1x1xf32>
    %cst_300 = arith.constant 9.99999974E-6 : f32
    %604 = vector.broadcast %cst_300 : f32 to vector<1x1xf32>
    %605 = arith.addf %603, %604 : vector<1x1xf32>
    %606 = math.rsqrt %605 : vector<1x1xf32>
    %607 = vector.broadcast %606 : vector<1x1xf32> to vector<32x1xf32>
    %608 = arith.mulf %607, %587 : vector<32x1xf32>
    %609 = vector.broadcast %608 : vector<32x1xf32> to vector<32x32xf32>
    %610 = arith.mulf %596, %609 : vector<32x32xf32>
    %611 = vector.broadcast %588 : vector<32x1xf32> to vector<32x32xf32>
    %612 = arith.addf %610, %611 : vector<32x32xf32>
    %cst_301 = arith.constant 5.000000e-01 : f32
    %613 = vector.broadcast %cst_301 : f32 to vector<32x32xf32>
    %614 = arith.mulf %613, %612 : vector<32x32xf32>
    %cst_302 = arith.constant 0.707106769 : f32
    %615 = vector.broadcast %cst_302 : f32 to vector<32x32xf32>
    %616 = arith.mulf %612, %615 : vector<32x32xf32>
    %617 = math.erf %616 : vector<32x32xf32>
    %cst_303 = arith.constant 1.000000e+00 : f32
    %618 = vector.broadcast %cst_303 : f32 to vector<32x32xf32>
    %619 = arith.addf %618, %617 : vector<32x32xf32>
    %620 = arith.mulf %614, %619 : vector<32x32xf32>
    %621 = arith.addf %620, %437 : vector<32x32xf32>
    %c0_304 = arith.constant 0 : index
    %c0_305 = arith.constant 0 : index
    %c0_306 = arith.constant 0 : index
    %622 = vector.load %arg20[%c0_304, %c0_305, %c0_306] : memref<1x32x32xf32, #tpu.memory_space<vmem>>, vector<1x32x32xf32>
    %623 = vector.shape_cast %622 : vector<1x32x32xf32> to vector<32x32xf32>
    %624 = vector.shape_cast %621 : vector<32x32xf32> to vector<1x32x32xf32>
    tpu.vector_store %arg20[%c0_304, %c0_305, %c0_306], %624 {strides = array<i32>} : memref<1x32x32xf32, #tpu.memory_space<vmem>>, vector<1x32x32xf32>,
    return
  }
  func.func @transform_0(%arg0: i32) -> (i32, i32, i32) {
    %c0_i32 = arith.constant 0 : i32
    %c0_i32_0 = arith.constant 0 : i32
    %c0_i32_1 = arith.constant 0 : i32
    return %arg0, %c0_i32, %c0_i32_0 : i32, i32, i32
  }
  func.func @transform_1(%arg0: i32) -> (i32, i32, i32) {
    %c0_i32 = arith.constant 0 : i32
    %c0_i32_0 = arith.constant 0 : i32
    %c0_i32_1 = arith.constant 0 : i32
    return %arg0, %c0_i32, %c0_i32_0 : i32, i32, i32
  }
  func.func @transform_2(%arg0: i32) -> (i32, i32) {
    %c0_i32 = arith.constant 0 : i32
    %c0_i32_0 = arith.constant 0 : i32
    %c0_i32_1 = arith.constant 0 : i32
    return %c0_i32, %c0_i32_0 : i32, i32
  }
  func.func @transform_3(%arg0: i32) -> (i32, i32, i32) {
    %c0_i32 = arith.constant 0 : i32
    %c0_i32_0 = arith.constant 0 : i32
    %c0_i32_1 = arith.constant 0 : i32
    return %arg0, %c0_i32, %c0_i32_0 : i32, i32, i32
  }
  func.func @transform_4(%arg0: i32) -> (i32, i32) {
    %c0_i32 = arith.constant 0 : i32
    %c0_i32_0 = arith.constant 0 : i32
    %c0_i32_1 = arith.constant 0 : i32
    return %c0_i32, %c0_i32_0 : i32, i32
  }
  func.func @transform_5(%arg0: i32) -> (i32, i32) {
    %c0_i32 = arith.constant 0 : i32
    %c0_i32_0 = arith.constant 0 : i32
    %c0_i32_1 = arith.constant 0 : i32
    return %c0_i32, %c0_i32_0 : i32, i32
  }
  func.func @transform_6(%arg0: i32) -> (i32, i32, i32) {
    %c0_i32 = arith.constant 0 : i32
    %c0_i32_0 = arith.constant 0 : i32
    %c0_i32_1 = arith.constant 0 : i32
    %c0_i32_2 = arith.constant 0 : i32
    return %c0_i32, %c0_i32_0, %c0_i32_1 : i32, i32, i32
  }
  func.func @transform_7(%arg0: i32) -> (i32, i32, i32) {
    %c0_i32 = arith.constant 0 : i32
    %c0_i32_0 = arith.constant 0 : i32
    %c0_i32_1 = arith.constant 0 : i32
    %c0_i32_2 = arith.constant 0 : i32
    return %c0_i32, %c0_i32_0, %c0_i32_1 : i32, i32, i32
  }
  func.func @transform_8(%arg0: i32) -> (i32, i32) {
    %c0_i32 = arith.constant 0 : i32
    %c0_i32_0 = arith.constant 0 : i32
    %c0_i32_1 = arith.constant 0 : i32
    return %c0_i32, %c0_i32_0 : i32, i32
  }
  func.func @transform_9(%arg0: i32) -> (i32, i32, i32) {
    %c0_i32 = arith.constant 0 : i32
    %c0_i32_0 = arith.constant 0 : i32
    %c0_i32_1 = arith.constant 0 : i32
    %c0_i32_2 = arith.constant 0 : i32
    return %c0_i32, %c0_i32_0, %c0_i32_1 : i32, i32, i32
  }
  func.func @transform_10(%arg0: i32) -> (i32, i32) {
    %c0_i32 = arith.constant 0 : i32
    %c0_i32_0 = arith.constant 0 : i32
    %c0_i32_1 = arith.constant 0 : i32
    return %c0_i32, %c0_i32_0 : i32, i32
  }
  func.func @transform_11(%arg0: i32) -> (i32, i32, i32) {
    %c0_i32 = arith.constant 0 : i32
    %c0_i32_0 = arith.constant 0 : i32
    %c0_i32_1 = arith.constant 0 : i32
    %c0_i32_2 = arith.constant 0 : i32
    return %c0_i32, %c0_i32_0, %c0_i32_1 : i32, i32, i32
  }
  func.func @transform_12(%arg0: i32) -> (i32, i32) {
    %c0_i32 = arith.constant 0 : i32
    %c0_i32_0 = arith.constant 0 : i32
    %c0_i32_1 = arith.constant 0 : i32
    return %c0_i32, %c0_i32_0 : i32, i32
  }
  func.func @transform_13(%arg0: i32) -> (i32, i32, i32) {
    %c0_i32 = arith.constant 0 : i32
    %c0_i32_0 = arith.constant 0 : i32
    %c0_i32_1 = arith.constant 0 : i32
    %c0_i32_2 = arith.constant 0 : i32
    return %c0_i32, %c0_i32_0, %c0_i32_1 : i32, i32, i32
  }
  func.func @transform_14(%arg0: i32) -> (i32, i32) {
    %c0_i32 = arith.constant 0 : i32
    %c0_i32_0 = arith.constant 0 : i32
    %c0_i32_1 = arith.constant 0 : i32
    return %c0_i32, %c0_i32_0 : i32, i32
  }
  func.func @transform_15(%arg0: i32) -> (i32, i32, i32) {
    %c0_i32 = arith.constant 0 : i32
    %c0_i32_0 = arith.constant 0 : i32
    %c0_i32_1 = arith.constant 0 : i32
    %c0_i32_2 = arith.constant 0 : i32
    return %c0_i32, %c0_i32_0, %c0_i32_1 : i32, i32, i32
  }
  func.func @transform_16(%arg0: i32) -> (i32, i32) {
    %c0_i32 = arith.constant 0 : i32
    %c0_i32_0 = arith.constant 0 : i32
    %c0_i32_1 = arith.constant 0 : i32
    return %c0_i32, %c0_i32_0 : i32, i32
  }
  func.func @transform_17(%arg0: i32) -> (i32, i32, i32) {
    %c0_i32 = arith.constant 0 : i32
    %c0_i32_0 = arith.constant 0 : i32
    %c0_i32_1 = arith.constant 0 : i32
    %c0_i32_2 = arith.constant 0 : i32
    return %c0_i32, %c0_i32_0, %c0_i32_1 : i32, i32, i32
  }
  func.func @transform_18(%arg0: i32) -> (i32, i32) {
    %c0_i32 = arith.constant 0 : i32
    %c0_i32_0 = arith.constant 0 : i32
    %c0_i32_1 = arith.constant 0 : i32
    return %c0_i32, %c0_i32_0 : i32, i32
  }
  func.func @transform_19(%arg0: i32) -> (i32, i32, i32) {
    %c0_i32 = arith.constant 0 : i32
    %c0_i32_0 = arith.constant 0 : i32
    %c0_i32_1 = arith.constant 0 : i32
    return %arg0, %c0_i32, %c0_i32_0 : i32, i32, i32
  }
}

</mosaic_0001>

<bundles_post_ra>
// kernel: block_up_1d.1
= control target key start
LH: loop header
LB: loop body
LE: loop exit
PB: predicated region body
PF: predicated region fallthrough
CT: control target
= control target key end

     0   :  { %s8413_s0 = inlined_call_operand.vmem [shape: f32[2,32,16], index: 0, kind: input, shape index: {}]   ;;  %s8414_s1 = inlined_call_operand.vmem [shape: f32[2,32,32], index: 1, kind: input, shape index: {}]   ;;  %s8415_s2 = inlined_call_operand.vmem [shape: bf16[16,32], index: 2, kind: input, shape index: {}]   ;;  %s8416_s3 = inlined_call_operand.vmem [shape: f32[2,96,1], index: 3, kind: input, shape index: {}]   ;;  %s8417_s4 = inlined_call_operand.vmem [shape: bf16[32,32], index: 4, kind: input, shape index: {}]   ;;  %s8418_s5 = inlined_call_operand.vmem [shape: bf16[32,32], index: 5, kind: input, shape index: {}]   ;;  %s8419_s6 = inlined_call_operand.vmem [shape: bf16[5,32,32], index: 6, kind: input, shape index: {}]   ;;  %s8420_s7 = inlined_call_operand.vmem [shape: bf16[5,32,32], index: 7, kind: input, shape index: {}]   ;;  %s8421_s8 = inlined_call_operand.vmem [shape: f32[32,3], index: 8, kind: input, shape index: {}]   ;;  %s8422_s9 = inlined_call_operand.vmem [shape: bf16[5,32,32], index: 9, kind: input, shape index: {}]   ;;  %s8423_s10 = inlined_call_operand.vmem [shape: f32[32,3], index: 10, kind: input, shape index: {}]   ;;  %s8424_s11 = inlined_call_operand.vmem [shape: bf16[5,32,32], index: 11, kind: input, shape index: {}]   ;;  %s8425_s12 = inlined_call_operand.vmem [shape: f32[32,3], index: 12, kind: input, shape index: {}]   ;;  %s8426_s13 = inlined_call_operand.vmem [shape: bf16[5,32,32], index: 13, kind: input, shape index: {}]   ;;  %s8427_s14 = inlined_call_operand.vmem [shape: f32[32,3], index: 14, kind: input, shape index: {}]   ;;  %s8428_s15 = inlined_call_operand.vmem [shape: bf16[5,32,32], index: 15, kind: input, shape index: {}]   ;;  %s8429_s16 = inlined_call_operand.vmem [shape: f32[32,3], index: 16, kind: input, shape index: {}]   ;;  %s8430_s17 = inlined_call_operand.vmem [shape: bf16[5,32,32], index: 17, kind: input, shape index: {}]   ;;  %s8431_s18 = inlined_call_operand.vmem [shape: f32[32,3], index: 18, kind: input, shape index: {}]   ;;  %s8432_s19 = inlined_call_operand.hbm [shape: f32[2,32,32], index: 19, kind: output, shape index: {}]  }
   0x1   :  { %8447 = sst [smem:[#allocation9_spill]] %s8413_s0 }
   0x2   :  { %8448 = sst [smem:[#allocation10_spill]] %s8414_s1 }
   0x3   :  { %8449 = sst [smem:[#allocation11_spill]] %s8415_s2 }
   0x4   :  { %8450 = sst [smem:[#allocation12_spill]] %s8416_s3 }
   0x5   :  { %8451 = sst [smem:[#allocation13_spill]] %s8417_s4 }
   0x6   :  { %8452 = sst [smem:[#allocation14_spill]] %s8418_s5 }
   0x7   :  { %8453 = sst [smem:[#allocation15_spill]] %s8419_s6 }
   0x8   :  { %8454 = sst [smem:[#allocation16_spill]] %s8420_s7 }
   0x9   :  { %8455 = sst [smem:[#allocation17_spill]] %s8421_s8 }
   0xa   :  { %8456 = sst [smem:[#allocation18_spill]] %s8422_s9 }
   0xb   :  { %24 = vsyncpa [#allocation3], 0 }
   0xc   :  { %26 = vsyncpa [#allocation3 + $0x1], 0  ;;  %s6611_s0 = smov 0   ;;  %s6613_s30 = smov 0  }
   0xd   :  { %s6615_s20 = smov 0   ;;  %s6617_s21 = smov 0  }
   0xe LB: > { %8457 = sst [smem:[#allocation5_spill]] %s6495_s20  ;;  %s6632_s1 = sadd.s32 4294967295, %s6499_s21   ;;  %s6499_s21 = sphi %s6617_s21, %s8493_s21   ;;  %s6495_s20 = sphi %s6615_s20, %s8495_s20   ;;  %s6491_s30 = sphi %s6613_s30, %s8497_s30   ;;  %s6487_s0 = sphi %s6611_s0, %s8496_s0  }
   0xf   : > { %s5071_s22 = sadd.s32 4294967294, %s6499_s21   ;;  %s6636_s2 = sadd.s32 1, %s6499_s21  }
  0x10   : > { %8458 = sst [smem:[#allocation6_spill]] %s6636_s2  ;;  %s453_s23 = sadd.s32 1, %s6495_s20 }
  0x11   : > { %s450_s24 = ssub.s32 %s6499_s21, %s6636_s2  ;;  %p463_p0 = scmp.ne.s32.totalorder %s6495_s20, %s6491_s30 }
  0x12   : > { %p451_p1 = scmp.eq.s32.totalorder %s450_s24, 0  ;;  %p464_p2 = scmp.eq.s32.totalorder %s6632_s1, 1 }
  0x13   : > { %p469_p3 = scmp.ne.s32.totalorder %s6491_s30, %s6487_s0  ;;  %p470_p4 = scmp.eq.s32.totalorder %s5071_s22, 1 }
  0x14   : > { %s6647_s25 = scalar_select %p451_p1, %s6495_s20, %s453_s23  }
  0x15   : > { %p6649_p5 = por %p464_p2, %p463_p0  ;;  %p6653_p6 = por %p470_p4, %p469_p3 }
  0x16   : > { %8459 = sst [smem:[#allocation7_spill]] %s6647_s25  ;;  %p5074_p7 = scmp.ge.s32.totalorder %s6499_s21, 1 }
  0x17   : > { %s8461_s26 = scalar_select %p6653_p6, 1, 0 }
  0x18   : > { %p560_p8 = scmp.lt.s32.totalorder %s6499_s21, 3 }
  0x19   : > { %8462 = sst [smem:[#allocation8_spill]] %s8461_s26 }
  0x1a   : > { %p561_p9 = pnand %p5074_p7, %p560_p8 }
  0x1b   : > { %s8463_s29 = sld [smem:[#allocation11_spill]] (!%p561_p9)  ;;  %p626_p10 = scmp.lt.s32.totalorder (!%p561_p9), %s6632_s1, 1 }
  0x1c   : > { %564 = sbr.rel (%p561_p9) target bundleno = 6460 (0x193c), region = 96  ;;  %s8464_s20 = sld [smem:[#allocation9_spill]] (!%p561_p9) }
  0x1d   : > { %s8443_s25 = smov (!%p561_p9), 98   ;;  %s8466_s5 = sld [smem:[#allocation14_spill]] (!%p561_p9) }
  0x1e   : > { %s8467_s4 = sld [smem:[#allocation13_spill]] (!%p561_p9)  ;;  %s623_s28 = sand.u32 (!%p561_p9), 1, %s6491_s30  }
  0x1f   : > { %s8470_s6 = sld [smem:[#allocation15_spill]] (!%p561_p9) }
  0x20   : > { %s8477_s7 = sld [smem:[#allocation16_spill]] (!%p561_p9) }
  0x21   : > { %v5768_v0 = vld [vmem:[%s8463_s29] sm:$0xff]  ;;  %s6664_s22 = scalar_select %p626_p10, %s6632_s1, 1  ;;  %vm662_vm0 = vcmask 130048   ;;  %vm791_vm1 = vcmask 1047808   ;;  %vm730_vm2 = vcmask 261120   ;;  %v646_v60 = vlaneseq }
  0x22   : > { %5844 = vmatpush.bf16.msra.mxu3 %v5768_v0  ;;  %676 = vmatpush.bf16.msra.mxu0 %v5768_v0  ;;  %s8465_s29 = sld [smem:[#allocation10_spill]] }
  0x23   : > { %s5766_s23 = sshll.u32 %s6664_s22, 5  ;;  %v5772_v59 = vld [vmem:[%s8466_s5 + $0x8] sm:$0xff]  ;;  %v6733_v62 = vand.u32 127, %v646_v60  ;;  %s8478_s8 = sld [smem:[#allocation17_spill]] }
  0x24   : > { %s630_s2 = scalar_lea.vmem %s8464_s20, %s5766_s23  ;;  %s8445_s20 = smov 32  }
  0x25   : > { %v650_v1 = vld [vmem:[%s630_s2 + $0x10] sm:$0xff]  ;;  %v651_v2 = vld [vmem:[%s630_s2 + $0x18] sm:$0xff]  ;;  %v648_v3 = vld [vmem:[%s630_s2] sm:$0xff]  ;;  %vm845_vm3 = vcmp.ge.s32.totalorder %v6733_v62, 1  ;;  %vm816_vm5 = vcmp.ge.s32.totalorder %v6733_v62, 2  ;;  %vm985_vm6 = vcmp.lt.s32.totalorder %v6733_v62, 31 }
  0x26   : > { %v653_v4 = vpack.c.bf16 %v651_v2, %v650_v1  ;;  %v649_v5 = vld [vmem:[%s630_s2 + $0x8] sm:$0xff]  ;;  %s8439_s2 = smov 97   ;;  %v5769_v2 = vld [vmem:[%s8467_s4] sm:$0xff]  ;;  %vm6739_vm4 = vmpackc.low %vm845_vm3, %vm845_vm3  ;;  %vm1050_vm9 = vcmp.lt.s32.totalorder %v6733_v62, 30  ;;  %s5847_s24 = smul.u32 96, %s6664_s22 }
  0x27   : > { %v652_v6 = vpack.c.bf16 %v649_v5, %v648_v3  ;;  %vm6772_vm7 = vmpackc.low %vm816_vm5, %vm816_vm5  ;;  %s8480_s22 = smov 98   ;;  %s8484_s9 = sld [smem:[#allocation18_spill]]  ;;  %v5836_v3 = vld [vmem:[%s8430_s17 + $0x18] sm:$0xff] }
  0x28   : > { %5086 = vmatmul.msk.bf16.vlgmr.msra.gmra.mxu3 %vm662_vm0, %v653_v4  ;;  %s635_s26 = scalar_lea.vmem %s8465_s29, %s5766_s23  ;;  %s8441_s23 = smov 126   ;;  %v5771_v4 = vld [vmem:[%s8466_s5] sm:$0xff]  ;;  %vm6776_vm8 = vmpackc.low %vm985_vm6, %vm985_vm6 }
  0x29   : > { %5085 = vmatmul.msk.bf16.vlgmr.msra.gmra.mxu0 %vm662_vm0, %v652_v6  ;;  %v6673_v7 = vld [vmem:[%s635_s26 + $0x10] sm:$0xff]  ;;  %v6675_v8 = vld [vmem:[%s635_s26 + $0x18] sm:$0xff]  ;;  %v6683_v10 = vld [vmem:[%s635_s26] sm:$0xff]  ;;  %s8479_s29 = sld [smem:[#allocation12_spill]]  ;;  %s8487_s5 = smov 32  }
  0x2a   : > { %v6679_v9 = vpack.c.bf16 %v6675_v8, %v6673_v7  ;;  %v6685_v11 = vld [vmem:[%s635_s26 + $0x8] sm:$0xff]  ;;  %v5912_v30 = vpack.i.bf16 %v6675_v8, %v6673_v7  ;;  %s8437_s26 = smov 127   ;;  %vm6803_vm10 = vmpackc.low %vm1050_vm9, %vm1050_vm9 }
  0x2b   : > { %v6689_v12 = vpack.c.bf16 %v6685_v11, %v6683_v10  ;;  %v5922_v34 = vpack.i.bf16 %v6685_v11, %v6683_v10 }
  0x2c   : > { %743 = vmatpush.bf16.msra.mxu1 %v6679_v9  ;;  %5845 = vmatpush.bf16.msra.mxu2 %v6679_v9 }
  0x30   : > { %744 = vmatpush.bf16.msra.mxu1 %v6689_v12  ;;  %5846 = vmatpush.bf16.msra.mxu2 %v6689_v12 }
  0x33   : > { %5096 = vmatmul.msk.bf16.vlgmr.msra.gmra.mxu2 %vm730_vm2, %v5772_v59  ;;  %5095 = vmatmul.msk.bf16.vlgmr.msra.gmra.mxu1 %vm730_vm2, %v5771_v4  ;;  %v5787_v59 = vld [vmem:[%s8477_s7 + $0x20] sm:$0xff] }
  0xa6   : > { %v678_v14 = vpop.f32.mrf.mxu0 }
  0xab   : > { %v683_v13 = vpop.f32.mrf.mxu3 }
  0xae   : > { %v680_v18 = vpop.f32.mrf.mxu0 }
  0xaf   : > { %v712_v19 = vpack.c.bf16 %v680_v18, %v678_v14  ;;  %v5902_v20 = vpack.i.bf16 %v680_v18, %v678_v14 }
  0xb3   : > { %v685_v15 = vpop.f32.mrf.mxu3 }
  0xb4   : > { %v5897_v16 = vpack.i.bf16 %v685_v15, %v683_v13  ;;  %v713_v17 = vpack.c.bf16 %v685_v15, %v683_v13 }
  0xb6   : > { %5898 = vrot.lane.b32.xlu0 %v5897_v16, %s8445_s20  ;;  %778 = vmatpush.bf16.msrb.mxu2 %v713_v17 }
  0xb7   : > { %968 = vmatpush.bf16.msrb.mxu1 %v713_v17 }
  0xba   : > { %779 = vmatpush.bf16.msrb.mxu2 %v712_v19 }
  0xbb   : > { %969 = vmatpush.bf16.msrb.mxu1 %v712_v19 }
  0xbd   : > { %5105 = vmatmul.msk.bf16.vlgmr.msrb.gmra.mxu2 %vm730_vm2, %v5769_v2 }
  0xbe   : > { %5903 = vrot.lane.b32.xlu0 %v5902_v20, %s8445_s20 }
 0x128   : > { %v5899_v21 = vpop.permute.xlu0 %5898 }
 0x129   : > { %v5901_v22 = vunpack.i.h.bf16 %v5899_v21  ;;  %v5900_v23 = vunpack.i.l.bf16 %v5899_v21 }
 0x12b   : > { %v800_v24 = vsel %vm791_vm1, %v5900_v23, %v683_v13  ;;  %v803_v25 = vsel %vm791_vm1, %v5901_v22, %v685_v15 }
 0x12c   : > { %v5907_v26 = vpack.i.bf16 %v803_v25, %v800_v24 }
 0x12e   : > { %5908 = vrot.lane.b32.xlu1 %v5907_v26, %s8445_s20 }
 0x130   : > { %v5904_v27 = vpop.permute.xlu0 %5903 }
 0x131   : > { %v5906_v28 = vunpack.i.h.bf16 %v5904_v27  ;;  %v5905_v29 = vunpack.i.l.bf16 %v5904_v27 }
 0x133   : > { %v794_v31 = vsel %vm791_vm1, %v5905_v29, %v678_v14  ;;  %v797_v32 = vsel %vm791_vm1, %v5906_v28, %v680_v18 }
 0x134   : > { %v5917_v33 = vpack.i.bf16 %v797_v32, %v794_v31 }
 0x136   : > { %5913 = vrot.lane.b32.xlu1 %v5912_v30, %s8445_s20  ;;  %5918 = vrot.lane.b32.xlu2 %v5917_v33, %s8445_s20  ;;  %v5841_v33 = vld [vmem:[%s8430_s17 + $0x40] sm:$0xff] }
 0x13e   : > { %5923 = vrot.lane.b32.xlu2 %v5922_v34, %s8445_s20 }
 0x190   : > { %v5919_v35 = vpop.permute.xlu2 %5918 }
 0x191   : > { %v5921_v36 = vunpack.i.h.bf16 %v5919_v35  ;;  %v5920_v37 = vunpack.i.l.bf16 %v5919_v35 }
 0x193   : > { %v812_v38 = vsel %vm791_vm1, %v5920_v37, %v678_v14  ;;  %v813_v39 = vsel %vm791_vm1, %v5921_v36, %v680_v18  ;;  %v5775_v18 = vld [vmem:[%s8470_s6 + $0x10] sm:$0xff]  ;;  %v5834_v37 = vld [vmem:[%s8430_s17 + $0x8] sm:$0xff] }
 0x194   : > { %v5932_v40 = vpack.i.bf16 %v813_v39, %v812_v38 }
 0x196   : > { %5933 = vrot.lane.b32.xlu2 %v5932_v40, %s8439_s2 }
 0x198   : > { %v5924_v42 = vpop.permute.xlu2 %5923 }
 0x199   : > { %v5926_v47 = vunpack.i.h.bf16 %v5924_v42  ;;  %v5925_v48 = vunpack.i.l.bf16 %v5924_v42 }
 0x19b   : > { %v1117_v50 = vsel %vm791_vm1, %v5925_v48, %v6683_v10  ;;  %v1120_v51 = vsel %vm791_vm1, %v5926_v47, %v6685_v11  ;;  %v5773_v47 = vld [vmem:[%s8470_s6] sm:$0xff] }
 0x19c   : > { %v5942_v55 = vpack.i.bf16 %v1120_v51, %v1117_v50  ;;  %v5842_v50 = vld [vmem:[%s8430_s17 + $0x48] sm:$0xff] }
 0x19e   : > { %5953 = vrot.lane.b32.xlu2 %v5932_v40, %s8443_s25 }
 0x1a0   : > { %v5909_v41 = vpop.permute.xlu1 %5908 }
 0x1a1   : > { %v5911_v43 = vunpack.i.h.bf16 %v5909_v41  ;;  %v5910_v44 = vunpack.i.l.bf16 %v5909_v41  ;;  %v5770_v41 = vld [vmem:[%s8467_s4 + $0x8] sm:$0xff]  ;;  %s5075_s4 = sshll.u32 %s623_s28, 5 }
 0x1a2   : > { %5106 = vmatmul.msk.bf16.gmra.mxu2 %vm730_vm2, %v5770_v41  ;;  %v5784_v41 = vld [vmem:[%s8477_s7 + $0x8] sm:$0xff] }
 0x1a3   : > { %v814_v45 = vsel %vm791_vm1, %v5910_v44, %v683_v13  ;;  %v815_v46 = vsel %vm791_vm1, %v5911_v43, %v685_v15 }
 0x1a4   : > { %v5937_v49 = vpack.i.bf16 %v815_v46, %v814_v45  ;;  %v5776_v46 = vld [vmem:[%s8470_s6 + $0x18] sm:$0xff] }
 0x1a6   : > { %5938 = vrot.lane.b32.xlu0 %v5937_v49, %s8439_s2  ;;  %5958 = vrot.lane.b32.xlu2 %v5932_v40, %s8437_s26 }
 0x1a8   : > { %v5914_v52 = vpop.permute.xlu1 %5913 }
 0x1a9   : > { %v5916_v53 = vunpack.i.h.bf16 %v5914_v52  ;;  %v5915_v54 = vunpack.i.l.bf16 %v5914_v52 }
 0x1ab   : > { %v1123_v56 = vsel %vm791_vm1, %v5915_v54, %v6673_v7  ;;  %v1126_v57 = vsel %vm791_vm1, %v5916_v53, %v6675_v8 }
 0x1ac   : > { %v5927_v58 = vpack.i.bf16 %v1126_v57, %v1123_v56  ;;  %v5780_v56 = vld [vmem:[%s8470_s6 + $0x38] sm:$0xff]  ;;  %v5782_v57 = vld [vmem:[%s8470_s6 + $0x48] sm:$0xff] }
 0x1ae   : > { %5928 = vrot.lane.b32.xlu1 %v5927_v58, %s8445_s20  ;;  %5943 = vrot.lane.b32.xlu0 %v5942_v55, %s8445_s20  ;;  %v5781_v55 = vld [vmem:[%s8470_s6 + $0x40] sm:$0xff]  ;;  %v5778_v58 = vld [vmem:[%s8470_s6 + $0x28] sm:$0xff] }
 0x1b6   : > { %5948 = vrot.lane.b32.xlu1 %v5937_v49, %s8443_s25  ;;  %5963 = vrot.lane.b32.xlu0 %v5937_v49, %s8437_s26 }
 0x1be   : > { %5973 = vrot.lane.b32.xlu1 %v5937_v49, %s8441_s23  ;;  %5968 = vrot.lane.b32.xlu0 %v5932_v40, %s8441_s23 }
 0x1f0   : > { %v5934_v61 = vpop.permute.xlu2 %5933 }
 0x1f1   : > { %v5936_v5 = vunpack.i.h.bf16 %v5934_v61  ;;  %v5935_v6 = vunpack.i.l.bf16 %v5934_v61  ;;  %v5788_v61 = vld [vmem:[%s8477_s7 + $0x28] sm:$0xff] }
 0x1f3   : > { %v5123_v15 = vpack.c.bf16 %v5936_v5, %v5935_v6 }
 0x1f8   : > { %v5954_v14 = vpop.permute.xlu2 %5953 }
 0x1f9   : > { %v5956_v34 = vunpack.i.h.bf16 %v5954_v14  ;;  %v5955_v35 = vunpack.i.l.bf16 %v5954_v14 }
 0x1fb   : > { %v5139_v43 = vpack.c.bf16 %v5956_v34, %v5955_v35 }
 0x218   : > { %v5939_v63 = vpop.permute.xlu0 %5938 }
 0x219   : > { %v5941_v0 = vunpack.i.h.bf16 %v5939_v63  ;;  %v5940_v1 = vunpack.i.l.bf16 %v5939_v63 }
 0x21b   : > { %v5120_v13 = vpack.c.bf16 %v5941_v0, %v5940_v1 }
 0x21d   : > { %5121 = vmatpush.bf16.msk.msrb.mxu3 %vm6739_vm4, %v5120_v13 }
 0x220   : > { %v5929_v16 = vpop.permute.xlu1 %5928  ;;  %v5944_v17 = vpop.permute.xlu0 %5943 }
 0x221   : > { %v5931_v19 = vunpack.i.h.bf16 %v5929_v16  ;;  %v5930_v20 = vunpack.i.l.bf16 %v5929_v16  ;;  %v5946_v21 = vunpack.i.h.bf16 %v5944_v17  ;;  %v5945_v22 = vunpack.i.l.bf16 %v5944_v17  ;;  %5124 = vmatpush.bf16.msk.msrb.mxu3 %vm6739_vm4, %v5123_v15 }
 0x223   : > { %v1137_v23 = vsel %vm791_vm1, %v5930_v20, %v6673_v7  ;;  %v1138_v24 = vsel %vm791_vm1, %v5931_v19, %v6675_v8  ;;  %v1135_v25 = vsel %vm791_vm1, %v5945_v22, %v6683_v10  ;;  %v1136_v26 = vsel %vm791_vm1, %v5946_v21, %v6685_v11  ;;  %v5959_v7 = vpop.permute.xlu2 %5958  ;;  %v5777_v11 = vld [vmem:[%s8470_s6 + $0x20] sm:$0xff] }
 0x224   : > { %v5977_v27 = vpack.i.bf16 %v1138_v24, %v1137_v23  ;;  %5125 = vmatmul.msk.bf16.vlgmr.msrb.gmra.mxu3 %vm730_vm2, %v5775_v18  ;;  %v5982_v28 = vpack.i.bf16 %v1136_v26, %v1135_v25  ;;  %v5961_v36 = vunpack.i.h.bf16 %v5959_v7  ;;  %v5960_v38 = vunpack.i.l.bf16 %v5959_v7  ;;  %5155 = vmatmul.msk.bf16.vlgmr.msrb.gmra.mxu1 %vm730_vm2, %v5777_v11  ;;  %v5783_v22 = vld [vmem:[%s8477_s7] sm:$0xff]  ;;  %v5789_v23 = vld [vmem:[%s8477_s7 + $0x30] sm:$0xff]  ;;  %v751_v7 = vpop.f32.mrf.mxu2 }
 0x225   : > { %v6506_v11 = vmov 0  }
 0x226   : > { %5978 = vrot.lane.b32.xlu1 %v5977_v27, %s8443_s25  ;;  %5988 = vrot.lane.b32.xlu0 %v5977_v27, %s8437_s26  ;;  %v5173_v42 = vpack.c.bf16 %v5961_v36, %v5960_v38 }
 0x227   : > { %5983 = vrot.lane.b32.xlu2 %v5982_v28, %s8443_s25  ;;  %6017 = vset.pattern.permute.xlu0 %v6506_v11  ;;  %s8482_s25 = smov 126  }
 0x228   : > { %v5949_v8 = vpop.permute.xlu1 %5948  ;;  %v5964_v10 = vpop.permute.xlu0 %5963  ;;  %6018 = vset.pattern.permute.xlu1 %v6506_v11  ;;  %6019 = vset.pattern.permute.xlu2 %v6506_v11 }
 0x229   : > { %v5951_v29 = vunpack.i.h.bf16 %v5949_v8  ;;  %v5950_v30 = vunpack.i.l.bf16 %v5949_v8  ;;  %v5966_v31 = vunpack.i.h.bf16 %v5964_v10  ;;  %v5965_v32 = vunpack.i.l.bf16 %v5964_v10  ;;  %v6868_v8 = vld [vmem:[%s8478_s8] sm:$0xff] }
 0x22b   : > { %v5170_v39 = vpack.c.bf16 %v5966_v31, %v5965_v32  ;;  %v5136_v40 = vpack.c.bf16 %v5951_v29, %v5950_v30  ;;  %v5785_v31 = vld [vmem:[%s8477_s7 + $0x10] sm:$0xff] }
 0x22d   : > { %5137 = vmatpush.bf16.msk.msrb.mxu0 %vm6772_vm7, %v5136_v40  ;;  %5171 = vmatpush.bf16.msk.msra.mxu2 %vm6776_vm8, %v5170_v39  ;;  %v6882_v39 = vpop.f32.mrf.mxu2 }
 0x22e   : > { %5993 = vrot.lane.b32.xlu1 %v5977_v27, %s8439_s2  ;;  %6003 = vrot.lane.b32.xlu0 %v5982_v28, %s8439_s2  ;;  %s6968_s2 = scalar_lea.vmem %s8479_s29, %s5847_s24  ;;  %s8483_s29 = smov 127  }
 0x22f   : > { %5998 = vrot.lane.b32.xlu2 %v5982_v28, %s8437_s26  ;;  %s8481_s26 = smov 97  }
 0x230   : > { %v5974_v44 = vpop.permute.xlu1 %5973  ;;  %v5969_v45 = vpop.permute.xlu0 %5968 }
 0x231   : > { %v5976_v48 = vunpack.i.h.bf16 %v5974_v44  ;;  %v5975_v49 = vunpack.i.l.bf16 %v5974_v44  ;;  %5140 = vmatpush.bf16.msk.msrb.mxu0 %vm6772_vm7, %v5139_v43  ;;  %5174 = vmatpush.bf16.msk.msra.mxu2 %vm6776_vm8, %v5173_v42  ;;  %v5971_v52 = vunpack.i.h.bf16 %v5969_v45  ;;  %v5970_v53 = vunpack.i.l.bf16 %v5969_v45  ;;  %v5790_v42 = vld [vmem:[%s8477_s7 + $0x38] sm:$0xff]  ;;  %v6899_v44 = vld [vmem:[%s8478_s8 + $0x8] sm:$0xff]  ;;  %v6904_v45 = vld [vmem:[%s8478_s8 + $0x10] sm:$0xff] }
 0x233   : > { %v5190_v51 = vpack.c.bf16 %v5976_v48, %v5975_v49  ;;  %v5193_v54 = vpack.c.bf16 %v5971_v52, %v5970_v53  ;;  %v5786_v48 = vld [vmem:[%s8477_s7 + $0x18] sm:$0xff]  ;;  %v5791_v52 = vld [vmem:[%s8477_s7 + $0x40] sm:$0xff] }
 0x234   : > { %5126 = vmatmul.msk.bf16.gmra.mxu3 %vm730_vm2, %v5776_v46  ;;  %5141 = vmatmul.msk.bf16.vlgmr.msrb.gmra.mxu0 %vm730_vm2, %v5773_v47  ;;  %v746_v46 = vpop.f32.mrf.mxu1  ;;  %v6916_v49 = vld [vmem:[%s8478_s8 + $0x18] sm:$0xff] }
 0x235   : > { %1293 = vmatpush.bf16.msrb.mxu2 %v6679_v9  ;;  %5191 = vmatpush.bf16.msk.msra.mxu3 %vm6803_vm10, %v5190_v51  ;;  %v5779_v9 = vld [vmem:[%s8470_s6 + $0x30] sm:$0xff]  ;;  %v781_v43 = vpop.f32.mrf.mxu2 }
 0x236   : > { %6008 = vrot.lane.b32.xlu1 %v5977_v27, %s8441_s23  ;;  %5175 = vmatmul.msk.bf16.vlgmr.msra.gmra.mxu2 %vm730_vm2, %v5779_v9  ;;  %v6908_v47 = vadd.f32 %v781_v43, %v746_v46  ;;  %v5792_v9 = vld [vmem:[%s8477_s7 + $0x48] sm:$0xff]  ;;  %s5843_s7 = sshll.u32 %s6632_s1, 5 }
 0x237   : > { %6013 = vrot.lane.b32.xlu2 %v5982_v28, %s8441_s23  ;;  %5156 = vmatmul.msk.bf16.gmra.mxu1 %vm730_vm2, %v5778_v58  ;;  %s4981_s8 = scalar_lea.hbm %s8432_s19, %s5843_s7  ;;  %s6457_s23 = scalar_lea.hbm %s8432_s19, 64 }
 0x238   : > { %1436 = vperm.xlu0 %6017, %v6868_v8  }
 0x239   : > { %1294 = vmatpush.bf16.msrb.mxu2 %v6689_v12  ;;  %5194 = vmatpush.bf16.msk.msra.mxu3 %vm6803_vm10, %v5193_v54  ;;  %v5774_v12 = vld [vmem:[%s8470_s6 + $0x8] sm:$0xff]  ;;  %s8360_s6 = scalar_lea.vmem [#allocation2], %s5075_s4 }
 0x23a   : > { %s4982_s1 = sshll.u32 %s8360_s6, 4  ;;  %s4983_s1 = int_to_ptr.vmem [resolvable:$true] %s4982_s1 }
 0x23c   : > { %v6932_v58 = vpop.f32.mrf.mxu1 }
 0x23d   : > { %v6919_v51 = vpop.f32.mrf.mxu2 }
 0x23e   : > { %1441 = vperm.xlu1 %6018, %v6899_v44  }
 0x23f   : > { %1446 = vperm.xlu2 %6019, %v6904_v45  }
 0x244   : > { %5195 = vmatmul.msk.bf16.vlgmr.msra.gmra.mxu3 %vm730_vm2, %v5781_v55  ;;  %5142 = vmatmul.msk.bf16.gmra.mxu0 %vm730_vm2, %v5774_v12 }
 0x245   : > { %v786_v53 = vpop.f32.mrf.mxu2 }
 0x246   : > { %5176 = vmatmul.msk.bf16.gmra.mxu2 %vm730_vm2, %v5780_v56  ;;  %1451 = vperm.xlu1 %6018, %v6916_v49   ;;  %v6926_v54 = vadd.f32 %v786_v53, %v751_v7 }
 0x254   : > { %5196 = vmatmul.msk.bf16.gmra.mxu3 %vm730_vm2, %v5782_v57 }
 0x256   : > { %5245 = vmatmul.msk.bf16.vlgmr.msrb.gmra.mxu2 %vm730_vm2, %v5787_v59  ;;  %v6934_v59 = vpop.f32.mrf.mxu2 }
 0x266   : > { %5246 = vmatmul.msk.bf16.gmra.mxu2 %vm730_vm2, %v5788_v61 }
 0x281   : > { %v5984_v60 = vpop.permute.xlu2 %5983 }
 0x282   : > { %v5986_v63 = vunpack.i.h.bf16 %v5984_v60  ;;  %v5985_v0 = vunpack.i.l.bf16 %v5984_v60 }
 0x284   : > { %v5209_v18 = vpack.c.bf16 %v5986_v63, %v5985_v0 }
 0x289   : > { %v5999_v62 = vpop.permute.xlu2 %5998 }
 0x28a   : > { %v6001_v1 = vunpack.i.h.bf16 %v5999_v62  ;;  %v6000_v2 = vunpack.i.l.bf16 %v5999_v62 }
 0x28c   : > { %v5263_v19 = vpack.c.bf16 %v6001_v1, %v6000_v2 }
 0x291   : > { %v6014_v29 = vpop.permute.xlu2 %6013 }
 0x292   : > { %v6016_v35 = vunpack.i.h.bf16 %v6014_v29  ;;  %v6015_v36 = vunpack.i.l.bf16 %v6014_v29 }
 0x294   : > { %v5283_v40 = vpack.c.bf16 %v6016_v35, %v6015_v36 }
 0x298   : > { %v5979_v4 = vpop.permute.xlu1 %5978  ;;  %v5989_v5 = vpop.permute.xlu0 %5988 }
 0x299   : > { %v5981_v6 = vunpack.i.h.bf16 %v5979_v4  ;;  %v5980_v13 = vunpack.i.l.bf16 %v5979_v4  ;;  %v5991_v14 = vunpack.i.h.bf16 %v5989_v5  ;;  %v5990_v15 = vunpack.i.l.bf16 %v5989_v5 }
 0x29b   : > { %v5206_v16 = vpack.c.bf16 %v5981_v6, %v5980_v13  ;;  %v5260_v17 = vpack.c.bf16 %v5991_v14, %v5990_v15 }
 0x29d   : > { %5207 = vmatpush.bf16.msk.msra.mxu0 %vm6772_vm7, %v5206_v16  ;;  %5261 = vmatpush.bf16.msk.msrb.mxu3 %vm6776_vm8, %v5260_v17 }
 0x2a0   : > { %v5994_v20 = vpop.permute.xlu1 %5993  ;;  %v6004_v21 = vpop.permute.xlu0 %6003 }
 0x2a1   : > { %v5996_v24 = vunpack.i.h.bf16 %v5994_v20  ;;  %v5995_v25 = vunpack.i.l.bf16 %v5994_v20  ;;  %5210 = vmatpush.bf16.msk.msra.mxu0 %vm6772_vm7, %v5209_v18  ;;  %5264 = vmatpush.bf16.msk.msrb.mxu3 %vm6776_vm8, %v5263_v19  ;;  %v6006_v26 = vunpack.i.h.bf16 %v6004_v21  ;;  %v6005_v27 = vunpack.i.l.bf16 %v6004_v21  ;;  %v971_v62 = vpop.f32.mrf.mxu1 }
 0x2a3   : > { %v5226_v28 = vpack.c.bf16 %v5996_v24, %v5995_v25  ;;  %v5229_v10 = vpack.c.bf16 %v6006_v26, %v6005_v27 }
 0x2a4   : > { %5211 = vmatmul.msk.bf16.vlgmr.msra.gmra.mxu0 %vm730_vm2, %v5783_v22  ;;  %5265 = vmatmul.msk.bf16.vlgmr.msrb.gmra.mxu3 %vm730_vm2, %v5789_v23 }
 0x2a5   : > { %5227 = vmatpush.bf16.msk.msra.mxu1 %vm6739_vm4, %v5226_v28 }
 0x2a7   : > { %v896_v55 = vpop.f32.mrf.mxu3 }
 0x2a8   : > { %v6009_v30 = vpop.permute.xlu1 %6008 }
 0x2a9   : > { %v6011_v32 = vunpack.i.h.bf16 %v6009_v30  ;;  %v6010_v34 = vunpack.i.l.bf16 %v6009_v30  ;;  %5230 = vmatpush.bf16.msk.msra.mxu1 %vm6739_vm4, %v5229_v10  ;;  %v973_v2 = vpop.f32.mrf.mxu1 }
 0x2aa   : > { %v1437_v53 = vpop.permute.xlu0 %1436 }
 0x2ab   : > { %v5280_v38 = vpack.c.bf16 %v6011_v32, %v6010_v34 }
 0x2ac   : > { %5231 = vmatmul.msk.bf16.vlgmr.msra.gmra.mxu1 %vm730_vm2, %v5785_v31 }
 0x2ad   : > { %5281 = vmatpush.bf16.msk.msrb.mxu0 %vm6803_vm10, %v5280_v38 }
 0x2af   : > { %v898_v12 = vpop.f32.mrf.mxu3 }
 0x2b1   : > { %5284 = vmatpush.bf16.msk.msrb.mxu0 %vm6803_vm10, %v5283_v40  ;;  %v931_v56 = vpop.f32.mrf.mxu0 }
 0x2b2   : > { %v932_v18 = vadd.f32 %v931_v56, %v896_v55 }
 0x2b4   : > { %5212 = vmatmul.msk.bf16.gmra.mxu0 %vm730_vm2, %v5784_v41  ;;  %5266 = vmatmul.msk.bf16.gmra.mxu3 %vm730_vm2, %v5790_v42  ;;  %v976_v13 = vpop.f32.mrf.mxu1  ;;  %v981_v21 = vadd.f32 %v971_v62, %v932_v18 }
 0x2b7   : > { %v901_v57 = vpop.f32.mrf.mxu3 }
 0x2b9   : > { %v933_v60 = vpop.f32.mrf.mxu0  ;;  %v1036_v63 = vpop.f32.mrf.mxu2 }
 0x2ba   : > { %v1046_v24 = vadd.f32 %v1036_v63, %v981_v21  ;;  %v934_v25 = vadd.f32 %v933_v60, %v898_v12 }
 0x2bc   : > { %5232 = vmatmul.msk.bf16.gmra.mxu1 %vm730_vm2, %v5786_v48  ;;  %v978_v17 = vpop.f32.mrf.mxu1  ;;  %v982_v7 = vadd.f32 %v973_v2, %v934_v25 }
 0x2bf   : > { %v903_v61 = vpop.f32.mrf.mxu3 }
 0x2c1   : > { %v936_v0 = vpop.f32.mrf.mxu0  ;;  %v1038_v4 = vpop.f32.mrf.mxu2 }
 0x2c2   : > { %v1047_v30 = vadd.f32 %v1038_v4, %v982_v7  ;;  %v937_v31 = vadd.f32 %v936_v0, %v901_v57 }
 0x2c4   : > { %5285 = vmatmul.msk.bf16.vlgmr.msrb.gmra.mxu0 %vm730_vm2, %v5791_v52  ;;  %v983_v38 = vadd.f32 %v976_v13, %v937_v31 }
 0x2c7   : > { %v1101_v1 = vpop.f32.mrf.mxu3 }
 0x2c8   : > { %v1111_v28 = vadd.f32 %v1101_v1, %v1046_v24 }
 0x2c9   : > { %v938_v5 = vpop.f32.mrf.mxu0  ;;  %v1041_v14 = vpop.f32.mrf.mxu2 }
 0x2ca   : > { %v1048_v43 = vadd.f32 %v1041_v14, %v983_v38  ;;  %v939_v46 = vadd.f32 %v938_v5, %v903_v61  ;;  %v1442_v5 = vpop.permute.xlu1 %1441 }
 0x2cc   : > { %v984_v62 = vadd.f32 %v978_v17, %v939_v46 }
 0x2cf   : > { %v1103_v6 = vpop.f32.mrf.mxu3 }
 0x2d0   : > { %v1112_v36 = vadd.f32 %v1103_v6, %v1047_v30 }
 0x2d1   : > { %v1043_v20 = vpop.f32.mrf.mxu2 }
 0x2d2   : > { %v1049_v4 = vadd.f32 %v1043_v20, %v984_v62 }
 0x2d4   : > { %5286 = vmatmul.msk.bf16.gmra.mxu0 %vm730_vm2, %v5792_v9 }
 0x2d7   : > { %v1106_v16 = vpop.f32.mrf.mxu3 }
 0x2d8   : > { %v1113_v60 = vadd.f32 %v1106_v16, %v1048_v43 }
 0x2d9   : > { %v1296_v27 = vpop.f32.mrf.mxu2 }
 0x2df   : > { %v1108_v22 = vpop.f32.mrf.mxu3 }
 0x2e0   : > { %v1114_v18 = vadd.f32 %v1108_v22, %v1049_v4 }
 0x2e1   : > { %v1298_v41 = vpop.f32.mrf.mxu2 }
 0x2e9   : > { %v1301_v1 = vpop.f32.mrf.mxu2 }
 0x321   : > { %v1190_v15 = vpop.f32.mrf.mxu0 }
 0x322   : > { %v1200_v10 = vadd.f32 %v1190_v15, %v1111_v28  ;;  %v1447_v28 = vpop.permute.xlu2 %1446 }
 0x327   : > { %v1358_v29 = vpop.f32.mrf.mxu3 }
 0x329   : > { %v1192_v19 = vpop.f32.mrf.mxu0  ;;  %v1252_v23 = vpop.f32.mrf.mxu1 }
 0x32a   : > { %v1262_v32 = vadd.f32 %v1252_v23, %v1200_v10  ;;  %v1201_v42 = vadd.f32 %v1192_v19, %v1112_v36 }
 0x32c   : > { %v1306_v40 = vadd.f32 %v1296_v27, %v1262_v32 }
 0x32e   : > { %v1368_v48 = vadd.f32 %v1358_v29, %v1306_v40 }
 0x32f   : > { %v1360_v9 = vpop.f32.mrf.mxu3 }
 0x331   : > { %v1195_v26 = vpop.f32.mrf.mxu0  ;;  %v1254_v34 = vpop.f32.mrf.mxu1 }
 0x332   : > { %v1263_v52 = vadd.f32 %v1254_v34, %v1201_v42  ;;  %v1202_v0 = vadd.f32 %v1195_v26, %v1113_v60  ;;  %v1303_v26 = vpop.f32.mrf.mxu2  ;;  %v1452_v34 = vpop.permute.xlu1 %1451 }
 0x334   : > { %v1307_v57 = vadd.f32 %v1298_v41, %v1263_v52 }
 0x336   : > { %v1369_v6 = vadd.f32 %v1360_v9, %v1307_v57 }
 0x337   : > { %v1363_v15 = vpop.f32.mrf.mxu3 }
 0x339   : > { %v1197_v35 = vpop.f32.mrf.mxu0  ;;  %v1257_v56 = vpop.f32.mrf.mxu1 }
 0x33a   : > { %v1264_v13 = vadd.f32 %v1257_v56, %v1202_v0  ;;  %v1203_v16 = vadd.f32 %v1197_v35, %v1114_v18  ;;  %v690_v18 = vld [vmem:[%s6968_s2 + $0x10] sm:$0xff] }
 0x33c   : > { %v1308_v19 = vadd.f32 %v1301_v1, %v1264_v13 }
 0x33e   : > { %v1370_v24 = vadd.f32 %v1363_v15, %v1308_v19  ;;  %v6507_v15 = vmov 2  }
 0x33f   : > { %v1365_v29 = vpop.f32.mrf.mxu3  ;;  %6021 = vset.pattern.permute.xlu1 %v6507_v15  ;;  %6020 = vset.pattern.permute.xlu2 %v6507_v15 }
 0x341   : > { %v1420_v55 = vpop.f32.mrf.mxu0  ;;  %v1259_v23 = vpop.f32.mrf.mxu1 }
 0x342   : > { %v1430_v12 = vadd.f32 %v1420_v55, %v1368_v48  ;;  %v1265_v25 = vadd.f32 %v1259_v23, %v1203_v16  ;;  %v6508_v16 = vmov 1  }
 0x343   : > { %6023 = vset.pattern.permute.xlu0 %v6508_v16 }
 0x344   : > { %v1454_v63 = vadd.f32 %v1437_v53, %v1430_v12  ;;  %v1309_v7 = vadd.f32 %v1303_v26, %v1265_v25 }
 0x346   : > { %v1458_v2 = vsel %vm730_vm2, %v1454_v63, 0.0  ;;  %v1371_v22 = vadd.f32 %v1365_v29, %v1309_v7 }
 0x347   : > { %1459 = vadd.xlane.f32.xlu2 %v1458_v2 }
 0x349   : > { %v1422_v61 = vpop.f32.mrf.mxu0 }
 0x34a   : > { %v1431_v14 = vadd.f32 %v1422_v61, %v1369_v6 }
 0x34c   : > { %v1455_v21 = vadd.f32 %v1442_v5, %v1431_v14 }
 0x34e   : > { %v1461_v17 = vsel %vm730_vm2, %v1455_v21, 0.0 }
 0x34f   : > { %1462 = vadd.xlane.f32.xlu0 %v1461_v17 }
 0x351   : > { %v1425_v27 = vpop.f32.mrf.mxu0 }
 0x352   : > { %v1432_v20 = vadd.f32 %v1425_v27, %v1370_v24 }
 0x354   : > { %v1456_v10 = vadd.f32 %v1447_v28, %v1432_v20 }
 0x356   : > { %v1464_v30 = vsel %vm730_vm2, %v1456_v10, 0.0 }
 0x357   : > { %1465 = vadd.xlane.f32.xlu1 %v1464_v30 }
 0x359   : > { %v1427_v31 = vpop.f32.mrf.mxu0 }
 0x35a   : > { %v1433_v32 = vadd.f32 %v1427_v31, %v1371_v22 }
 0x35c   : > { %v1457_v35 = vadd.f32 %v1452_v34, %v1433_v32 }
 0x35e   : > { %v1467_v36 = vsel %vm730_vm2, %v1457_v35, 0.0 }
 0x35f   : > { %1468 = vadd.xlane.f32.xlu2 %v1467_v36 }
 0x3ba   : > { %v1460_v38 = vpop.xlane.xlu2 %1459 }
 0x3c2   : > { %v1463_v40 = vpop.xlane.xlu0 %1462 }
 0x3c3   : > { %v1470_v42 = vadd.f32 %v1463_v40, %v1460_v38 }
 0x3ca   : > { %v1466_v41 = vpop.xlane.xlu1 %1465 }
 0x3cb   : > { %v1471_v43 = vadd.f32 %v1470_v42, %v1466_v41 }
 0x3d2   : > { %v1469_v46 = vpop.xlane.xlu2 %1468 }
 0x3d3   : > { %v1472_v48 = vadd.f32 %v1471_v43, %v1469_v46 }
 0x3d5   : > { %v1473_v52 = vrot.slane %v1472_v48, 4 }
 0x3d7   : > { %v1474_v53 = vadd.f32 %v1473_v52, %v1472_v48  ;;  %v691_v48 = vld [vmem:[%s6968_s2 + $0x18] sm:$0xff]  ;;  %v689_v52 = vld [vmem:[%s6968_s2 + $0x8] sm:$0xff] }
 0x3d9   : > { %v1475_v9 = vrot.slane %v1474_v53, 2 }
 0x3db   : > { %v1476_v55 = vadd.f32 %v1475_v9, %v1474_v53  ;;  %v688_v53 = vld [vmem:[%s6968_s2] sm:$0xff] }
 0x3dd   : > { %v1477_v12 = vrot.slane %v1476_v55, 1 }
 0x3df   : > { %v1478_v56 = vadd.f32 %v1477_v12, %v1476_v55 }
 0x3e1   : > { %v1479_v60 = vmul.f32 0.0009765625, %v1478_v56 }
 0x3e3   : > { %v6940_v62 = vsub.f32 %v1456_v10, %v1479_v60  ;;  %v6942_v57 = vsub.f32 %v1455_v21, %v1479_v60  ;;  %v6944_v0 = vsub.f32 %v1454_v63, %v1479_v60  ;;  %v6955_v63 = vsub.f32 %v1457_v35, %v1479_v60 }
 0x3e5   : > { %v1486_v1 = vmul.f32 %v6940_v62, %v6940_v62  ;;  %v1485_v2 = vmul.f32 %v6942_v57, %v6942_v57  ;;  %v1484_v4 = vmul.f32 %v6944_v0, %v6944_v0  ;;  %v1487_v5 = vmul.f32 %v6955_v63, %v6955_v63 }
 0x3e7   : > { %v1494_v6 = vsel %vm730_vm2, %v1486_v1, 0.0  ;;  %v1491_v13 = vsel %vm730_vm2, %v1485_v2, 0.0  ;;  %v1488_v61 = vsel %vm730_vm2, %v1484_v4, 0.0  ;;  %v1497_v14 = vsel %vm730_vm2, %v1487_v5, 0.0 }
 0x3e8   : > { %1495 = vadd.xlane.f32.xlu1 %v1494_v6  ;;  %1492 = vadd.xlane.f32.xlu0 %v1491_v13 }
 0x3e9   : > { %1489 = vadd.xlane.f32.xlu2 %v1488_v61 }
 0x3f1   : > { %1498 = vadd.xlane.f32.xlu2 %v1497_v14 }
 0x401   : > { %1562 = vperm.xlu1 %6021, %v6916_v49  }
 0x409   : > { %1558 = vperm.xlu2 %6020, %v6904_v45   ;;  %1550 = vperm.xlu1 %6021, %v6868_v8  }
 0x411   : > { %6022 = vset.pattern.permute.xlu2 %v6506_v11  ;;  %6026 = vset.pattern.permute.xlu1 %v6508_v16 }
 0x412   : > { %1581 = vperm.xlu2 %6022, %v690_v18  }
 0x41a   : > { %6025 = vset.pattern.permute.xlu2 %v6507_v15 }
 0x41b   : > { %1554 = vperm.xlu2 %6025, %v6899_v44  }
 0x423   : > { %6027 = vset.pattern.permute.xlu2 %v6508_v16 }
 0x45b   : > { %v1493_v19 = vpop.xlane.xlu0 %1492  ;;  %v1496_v17 = vpop.xlane.xlu1 %1495 }
 0x45c   : > { %v1490_v21 = vpop.xlane.xlu2 %1489 }
 0x45d   : > { %v1500_v23 = vadd.f32 %v1493_v19, %v1490_v21 }
 0x45f   : > { %v1501_v24 = vadd.f32 %v1500_v23, %v1496_v17 }
 0x464   : > { %v1499_v25 = vpop.xlane.xlu2 %1498 }
 0x465   : > { %v1502_v26 = vadd.f32 %v1501_v24, %v1499_v25 }
 0x467   : > { %v1503_v27 = vrot.slane %v1502_v26, 4 }
 0x469   : > { %v1504_v28 = vadd.f32 %v1503_v27, %v1502_v26 }
 0x46b   : > { %v1505_v20 = vrot.slane %v1504_v28, 2 }
 0x46d   : > { %v1506_v7 = vadd.f32 %v1505_v20, %v1504_v28 }
 0x46f   : > { %v1507_v10 = vrot.slane %v1506_v7, 1 }
 0x471   : > { %v1508_v29 = vadd.f32 %v1507_v10, %v1506_v7 }
 0x473   : > { %v1509_v30 = vmul.f32 0.0009765625, %v1508_v29 }
 0x475   : > { %v1510_v22 = vadd.f32 1e-05, %v1509_v30 }
 0x477   : > { %6377 = vrsqrt.f32 %v1510_v22  ;;  %vm1517_vm12 = vweird.f32 %v1510_v22 }
 0x47d   : > { %v6378_v31 = vpop.eup %6377 }
 0x47e   : > { %v1512_v32 = vmul.f32 %v6378_v31, %v1510_v22  ;;  %vm1518_vm11 = vweird.f32 %v6378_v31 }
 0x47f   : > { %vm1519_vm13 = vmor %vm1517_vm12, %vm1518_vm11 }
 0x480   : > { %v1513_v34 = vmul.f32 %v6378_v31, %v1512_v32 }
 0x482   : > { %v1514_v35 = vmul.f32 0.5, %v1513_v34 }
 0x484   : > { %v1515_v36 = vsub.f32 1.5, %v1514_v35 }
 0x486   : > { %v1516_v38 = vmul.f32 %v6378_v31, %v1515_v36 }
 0x488   : > { %v1520_v40 = vsel %vm1519_vm13, %v6378_v31, %v1516_v38 }
 0x489   : > { %v1524_v41 = vmul.f32 %v1520_v40, %v6916_v49  ;;  %v1523_v42 = vmul.f32 %v1520_v40, %v6904_v45  ;;  %v1521_v43 = vmul.f32 %v1520_v40, %v6868_v8  ;;  %v1522_v46 = vmul.f32 %v1520_v40, %v6899_v44  ;;  %v1559_v45 = vpop.permute.xlu2 %1558  ;;  %v1563_v49 = vpop.permute.xlu1 %1562 }
 0x48b   : > { %1542 = vperm.xlu1 %6026, %v1524_v41   ;;  %1537 = vperm.xlu0 %6023, %v1523_v42  }
 0x48c   : > { %1527 = vperm.xlu2 %6027, %v1521_v43  }
 0x491   : > { %v1582_v8 = vpop.permute.xlu2 %1581  ;;  %v1551_v55 = vpop.permute.xlu1 %1550 }
 0x493   : > { %6024 = vset.pattern.permute.xlu0 %v6506_v11  ;;  %1532 = vperm.xlu1 %6026, %v1522_v46  }
 0x494   : > { %1586 = vperm.xlu0 %6024, %v691_v48   ;;  %6029 = vset.pattern.permute.xlu2 %v6506_v11 }
 0x495   : > { %1576 = vperm.xlu2 %6029, %v689_v52  }
 0x499   : > { %v1555_v9 = vpop.permute.xlu2 %1554 }
 0x49b   : > { %6028 = vset.pattern.permute.xlu1 %v6506_v11 }
 0x49c   : > { %1571 = vperm.xlu1 %6028, %v688_v53  }
 0x4e6   : > { %v1528_v60 = vpop.permute.xlu2 %1527 }
 0x4fd   : > { %v1543_v12 = vpop.permute.xlu1 %1542  ;;  %v1538_v44 = vpop.permute.xlu0 %1537 }
 0x4fe   : > { %v1547_v56 = vmul.f32 %v1538_v44, %v6940_v62  ;;  %v1548_v2 = vmul.f32 %v1543_v12, %v6955_v63  ;;  %v1577_v62 = vpop.permute.xlu2 %1576  ;;  %v1545_v63 = vmul.f32 %v1528_v60, %v6944_v0 }
 0x500   : > { %v1567_v1 = vadd.f32 %v1559_v45, %v1547_v56  ;;  %v1568_v61 = vadd.f32 %v1563_v49, %v1548_v2  ;;  %v1565_v20 = vadd.f32 %v1551_v55, %v1545_v63 }
 0x502   : > { %v6990_v4 = vadd.f32 %v1582_v8, %v1567_v1 }
 0x504   : > { %v6993_v6 = vmul.f32 0.70710677, %v6990_v4 }
 0x505   : > { %v1533_v13 = vpop.permute.xlu1 %1532 }
 0x506   : > { %v1681_v5 = vmul.f32 %v6993_v6, %v6993_v6  ;;  %v1546_v14 = vmul.f32 %v1533_v13, %v6942_v57  ;;  %v1587_v18 = vpop.permute.xlu0 %1586 }
 0x507   : > { %v6998_v19 = vadd.f32 %v1587_v18, %v1568_v61 }
 0x508   : > { %v7000_v21 = vmin.f32 %v1681_v5, 16.0  ;;  %v1566_v23 = vadd.f32 %v1555_v9, %v1546_v14 }
 0x509   : > { %v7004_v17 = vmul.f32 0.70710677, %v6998_v19 }
 0x50a   : > { %v1683_v24 = vmul.f32 2.1237322e-06, %v7000_v21  ;;  %v1694_v25 = vmul.f32 3.8918573e-05, %v7000_v21  ;;  %v7008_v26 = vadd.f32 %v1577_v62, %v1566_v23 }
 0x50b   : > { %v1721_v57 = vmul.f32 %v7004_v17, %v7004_v17 }
 0x50c   : > { %v1684_v27 = vadd.f32 0.00028619796, %v1683_v24  ;;  %v1695_v28 = vadd.f32 0.001143296, %v1694_v25  ;;  %v7015_v10 = vmul.f32 0.70710677, %v7008_v26 }
 0x50d   : > { %v7012_v7 = vmin.f32 %v1721_v57, 16.0 }
 0x50e   : > { %v1685_v0 = vmul.f32 %v1684_v27, %v7000_v21  ;;  %v1696_v29 = vmul.f32 %v1695_v28, %v7000_v21  ;;  %v1572_v30 = vpop.permute.xlu1 %1571  ;;  %v1641_v32 = vmul.f32 %v7015_v10, %v7015_v10 }
 0x50f   : > { %v1723_v22 = vmul.f32 2.1237322e-06, %v7012_v7  ;;  %v1734_v31 = vmul.f32 3.8918573e-05, %v7012_v7  ;;  %v7023_v34 = vadd.f32 %v1572_v30, %v1565_v20 }
 0x510   : > { %v1686_v35 = vadd.f32 0.0036580483, %v1685_v0  ;;  %v1697_v36 = vadd.f32 0.014752088, %v1696_v29  ;;  %v7025_v41 = vmin.f32 %v1641_v32, 16.0 }
 0x511   : > { %v1724_v38 = vadd.f32 0.00028619796, %v1723_v22  ;;  %v1735_v40 = vadd.f32 0.001143296, %v1734_v31  ;;  %v7030_v46 = vmul.f32 0.70710677, %v7023_v34 }
 0x512   : > { %v1687_v42 = vmul.f32 %v1686_v35, %v7000_v21  ;;  %v1698_v43 = vmul.f32 %v1697_v36, %v7000_v21  ;;  %v1654_v53 = vmul.f32 3.8918573e-05, %v7025_v41  ;;  %v1643_v44 = vmul.f32 2.1237322e-06, %v7025_v41 }
 0x513   : > { %v1725_v48 = vmul.f32 %v1724_v38, %v7012_v7  ;;  %v1736_v52 = vmul.f32 %v1735_v40, %v7012_v7  ;;  %v1601_v8 = vmul.f32 %v7030_v46, %v7030_v46 }
 0x514   : > { %v1699_v45 = vadd.f32 0.112945676, %v1698_v43  ;;  %v1688_v55 = vadd.f32 0.05243302, %v1687_v42  ;;  %v1655_v56 = vadd.f32 0.001143296, %v1654_v53 }
 0x515   : > { %v1726_v49 = vadd.f32 0.0036580483, %v1725_v48  ;;  %v1737_v9 = vadd.f32 0.014752088, %v1736_v52  ;;  %v7041_v13 = vmin.f32 %v1601_v8, 16.0 }
 0x516   : > { %v1700_v12 = vmul.f32 %v1699_v45, %v7000_v21  ;;  %v1656_v2 = vmul.f32 %v1655_v56, %v7025_v41  ;;  %v1689_v14 = vmul.f32 %v1688_v55, %v7000_v21  ;;  %v1644_v62 = vadd.f32 0.00028619796, %v1643_v44 }
 0x517   : > { %v1738_v60 = vmul.f32 %v1737_v9, %v7012_v7  ;;  %v1727_v61 = vmul.f32 %v1726_v49, %v7012_v7  ;;  %v1603_v57 = vmul.f32 2.1237322e-06, %v7041_v13  ;;  %v1614_v29 = vmul.f32 3.8918573e-05, %v7041_v13 }
 0x518   : > { %v1701_v1 = vadd.f32 0.4994258, %v1700_v12  ;;  %v1657_v23 = vadd.f32 0.014752088, %v1656_v2  ;;  %v1690_v20 = vadd.f32 0.18741608, %v1689_v14  ;;  %v1645_v0 = vmul.f32 %v1644_v62, %v7025_v41 }
 0x519   : > { %v1739_v5 = vadd.f32 0.112945676, %v1738_v60  ;;  %v1728_v27 = vadd.f32 0.05243302, %v1727_v61  ;;  %v1604_v31 = vadd.f32 0.00028619796, %v1603_v57 }
 0x51a   : > { %v1702_v18 = vmul.f32 %v1701_v1, %v7000_v21  ;;  %v1658_v25 = vmul.f32 %v1657_v23, %v7025_v41  ;;  %v1691_v36 = vmul.f32 %v1690_v20, %v7000_v21  ;;  %v1646_v38 = vadd.f32 0.0036580483, %v1645_v0 }
 0x51b   : > { %v1740_v63 = vmul.f32 %v1739_v5, %v7012_v7  ;;  %v1729_v32 = vmul.f32 %v1728_v27, %v7012_v7  ;;  %v1615_v42 = vadd.f32 0.001143296, %v1614_v29  ;;  %v1605_v52 = vmul.f32 %v1604_v31, %v7041_v13 }
 0x51c   : > { %v1703_v24 = vadd.f32 1.0, %v1702_v18  ;;  %v1659_v22 = vadd.f32 0.112945676, %v1658_v25  ;;  %v1692_v49 = vadd.f32 1.1283791, %v1691_v36  ;;  %v1647_v9 = vmul.f32 %v1646_v38, %v7025_v41 }
 0x51d   : > { %v1741_v28 = vadd.f32 0.4994258, %v1740_v63  ;;  %v1730_v45 = vadd.f32 0.18741608, %v1729_v32  ;;  %v1616_v8 = vmul.f32 %v1615_v42, %v7041_v13  ;;  %v1606_v1 = vadd.f32 0.0036580483, %v1605_v52 }
 0x51e   : > { %6379 = vrcp.f32 %v1703_v24  ;;  %v1660_v40 = vmul.f32 %v1659_v22, %v7025_v41  ;;  %v1713_v21 = vand.u32 2147483647, %v1703_v24  ;;  %v1715_v56 = vand.u32 2147483648, %v1703_v24 }
 0x51f   : > { %v1742_v30 = vmul.f32 %v1741_v28, %v7012_v7  ;;  %v1617_v44 = vadd.f32 0.014752088, %v1616_v8  ;;  %v1731_v5 = vmul.f32 %v1730_v45, %v7012_v7  ;;  %v1648_v62 = vadd.f32 0.05243302, %v1647_v9 }
 0x520   : > { %v1661_v48 = vadd.f32 0.4994258, %v1660_v40  ;;  %v1693_v23 = vmul.f32 %v1692_v49, %v6993_v6  ;;  %vm1709_vm15 = vweird.f32 %v1703_v24  ;;  %vm1714_vm0 = vcmp.eq.f32.partialorder %v1713_v21, 8.507059e+37 }
 0x521   : > { %v1743_v35 = vadd.f32 1.0, %v1742_v30  ;;  %v1618_v14 = vmul.f32 %v1617_v44, %v7041_v13  ;;  %v1716_v25 = vor.u32 1.1754944e-38, %v1715_v56  ;;  %v1607_v27 = vmul.f32 %v1606_v1, %v7041_v13 }
 0x522   : > { %v1662_v55 = vmul.f32 %v1661_v48, %v7025_v41  ;;  %v1732_v0 = vadd.f32 1.1283791, %v1731_v5  ;;  %v1649_v6 = vmul.f32 %v1648_v62, %v7025_v41 }
 0x523   : > { %6381 = vrcp.f32 %v1743_v35  ;;  %v1619_v28 = vadd.f32 0.112945676, %v1618_v14  ;;  %v1753_v7 = vand.u32 2147483647, %v1743_v35  ;;  %v1755_v29 = vand.u32 2147483648, %v1743_v35 }
 0x524   : > { %v6380_v43 = vpop.eup %6379  ;;  %v7059_v60 = vadd.f32 1.0, %v1662_v55  ;;  %vm1749_vm6 = vweird.f32 %v1743_v35  ;;  %v1608_v38 = vadd.f32 0.05243302, %v1607_v27  ;;  %v1733_v42 = vmul.f32 %v1732_v0, %v7004_v17 }
 0x525   : > { %v1705_v53 = vmul.f32 %v6380_v43, %v1703_v24  ;;  %vm1710_vm14 = vweird.f32 %v6380_v43  ;;  %v1620_v31 = vmul.f32 %v1619_v28, %v7041_v13  ;;  %vm1754_vm11 = vcmp.eq.f32.partialorder %v1753_v7, 8.507059e+37 }
 0x526   : > { %6383 = vrcp.f32 %v7059_v60  ;;  %vm1711_vm3 = vmor %vm1709_vm15, %vm1710_vm14  ;;  %v1650_v49 = vadd.f32 0.18741608, %v1649_v6  ;;  %v1595_v17 = vmul.f32 0.5, %v6990_v4  ;;  %v1675_v14 = vand.u32 2147483648, %v7059_v60 }
 0x527   : > { %v1706_v12 = vsub.f32 1.0, %v1705_v53  ;;  %v1621_v40 = vadd.f32 0.4994258, %v1620_v31  ;;  %vm1669_vm13 = vweird.f32 %v7059_v60  ;;  %v1673_v62 = vand.u32 2147483647, %v7059_v60 }
 0x528   : > { %v1651_v1 = vmul.f32 %v1650_v49, %v7025_v41  ;;  %v1676_v27 = vor.u32 1.1754944e-38, %v1675_v14 }
 0x529   : > { %v6382_v2 = vpop.eup %6381  ;;  %v1707_v61 = vmul.f32 %v6380_v43, %v1706_v12  ;;  %v1622_v45 = vmul.f32 %v1621_v40, %v7041_v13  ;;  %v1609_v12 = vmul.f32 %v1608_v38, %v7041_v13  ;;  %vm1674_vm15 = vcmp.eq.f32.partialorder %v1673_v62, 8.507059e+37 }
 0x52a   : > { %v1745_v18 = vmul.f32 %v6382_v2, %v1743_v35  ;;  %vm1750_vm5 = vweird.f32 %v6382_v2 }
 0x52b   : > { %v1708_v63 = vadd.f32 %v6380_v43, %v1707_v61  ;;  %vm1751_vm9 = vmor %vm1749_vm6, %vm1750_vm5  ;;  %v1623_v35 = vadd.f32 1.0, %v1622_v45 }
 0x52c   : > { %v1746_v57 = vsub.f32 1.0, %v1745_v18  ;;  %v6384_v24 = vpop.eup %6383  ;;  %v1610_v18 = vadd.f32 0.18741608, %v1609_v12 }
 0x52d   : > { %v1712_v20 = vsel %vm1711_vm3, %v6380_v43, %v1708_v63  ;;  %v1756_v43 = vor.u32 1.1754944e-38, %v1755_v29  ;;  %v1665_v48 = vmul.f32 %v6384_v24, %v7059_v60  ;;  %6385 = vrcp.f32 %v1623_v35 }
 0x52e   : > { %v1717_v30 = vsel %vm1714_vm0, %v1716_v25, %v1712_v20  ;;  %v1747_v22 = vmul.f32 %v6382_v2, %v1746_v57  ;;  %vm1670_vm12 = vweird.f32 %v6384_v24  ;;  %v1652_v25 = vadd.f32 1.1283791, %v1651_v1 }
 0x52f   : > { %v1718_v32 = vmul.f32 %v1717_v30, %v1693_v23  ;;  %v1666_v9 = vsub.f32 1.0, %v1665_v48  ;;  %vm1671_vm14 = vmor %vm1669_vm13, %vm1670_vm12  ;;  %v1611_v41 = vmul.f32 %v1610_v18, %v7041_v13  ;;  %v1635_v30 = vand.u32 2147483648, %v1623_v35 }
 0x530   : > { %v1748_v36 = vadd.f32 %v6382_v2, %v1747_v22  ;;  %v1653_v7 = vmul.f32 %v1652_v25, %v7015_v10  ;;  %vm1629_vm3 = vweird.f32 %v1623_v35  ;;  %v1594_v48 = vmul.f32 0.5, %v7008_v26 }
 0x531   : > { %v5289_v52 = vclamps-f32 %v1718_v32, 1.0  ;;  %v1667_v21 = vmul.f32 %v6384_v24, %v1666_v9  ;;  %v1612_v29 = vadd.f32 1.1283791, %v1611_v41  ;;  %v1633_v32 = vand.u32 2147483647, %v1623_v35 }
 0x532   : > { %v1752_v53 = vsel %vm1751_vm9, %v6382_v2, %v1748_v36  ;;  %v1596_v2 = vmul.f32 0.5, %v6998_v19  ;;  %v1636_v13 = vor.u32 1.1754944e-38, %v1635_v30 }
 0x533   : > { %v1757_v8 = vsel %vm1754_vm11, %v1756_v43, %v1752_v53  ;;  %v1763_v44 = vadd.f32 1.0, %v5289_v52  ;;  %v1668_v61 = vadd.f32 %v6384_v24, %v1667_v21  ;;  %v6386_v4 = vpop.eup %6385  ;;  %v1613_v36 = vmul.f32 %v1612_v29, %v7030_v46 }
 0x534   : > { %v1758_v55 = vmul.f32 %v1757_v8, %v1733_v42  ;;  %v1625_v19 = vmul.f32 %v6386_v4, %v1623_v35  ;;  %vm1630_vm0 = vweird.f32 %v6386_v4  ;;  %vm1634_vm6 = vcmp.eq.f32.partialorder %v1633_v32, 8.507059e+37 }
 0x535   : > { %v1767_v23 = vmul.f32 %v1763_v44, %v1595_v17  ;;  %v1672_v57 = vsel %vm1671_vm14, %v6384_v24, %v1668_v61  ;;  %vm1631_vm5 = vmor %vm1629_vm3, %vm1630_vm0  ;;  %v1593_v52 = vmul.f32 0.5, %v7023_v34 }
 0x536   : > { %v5290_v56 = vclamps-f32 %v1758_v55, 1.0  ;;  %v1677_v0 = vsel %vm1674_vm15, %v1676_v27, %v1672_v57  ;;  %v1626_v60 = vsub.f32 1.0, %v1625_v19  ;;  %v7099_v57 = vld [vmem:[%s8423_s10] sm:$0xff]  ;;  %v7118_v19 = vld [vmem:[%s8423_s10 + $0x8] sm:$0xff] }
 0x537   : > { %v1678_v22 = vmul.f32 %v1677_v0, %v1653_v7  ;;  %v7125_v0 = vld [vmem:[%s8423_s10 + $0x10] sm:$0xff] }
 0x538   : > { %v1764_v5 = vadd.f32 1.0, %v5290_v56  ;;  %v1627_v31 = vmul.f32 %v6386_v4, %v1626_v60 }
 0x539   : > { %v5288_v24 = vclamps-f32 %v1678_v22, 1.0 }
 0x53a   : > { %v1768_v63 = vmul.f32 %v1764_v5, %v1596_v2  ;;  %v1628_v6 = vadd.f32 %v6386_v4, %v1627_v31 }
 0x53b   : > { %v1762_v43 = vadd.f32 1.0, %v5288_v24 }
 0x53c   : > { %v6030_v28 = vpack.i.bf16 %v1768_v63, %v1767_v23  ;;  %v1913_v20 = vpack.c.bf16 %v1768_v63, %v1767_v23  ;;  %v1632_v38 = vsel %vm1631_vm5, %v6386_v4, %v1628_v6 }
 0x53d   : > { %v1637_v40 = vsel %vm1634_vm6, %v1636_v13, %v1632_v38  ;;  %v1766_v45 = vmul.f32 %v1762_v43, %v1594_v48  ;;  %v5797_v13 = vld [vmem:[%s8484_s9 + $0x20] sm:$0xff] }
 0x53e   : > { %6031 = vrot.lane.b32.xlu0 %v6030_v28, %s8445_s20  ;;  %1941 = vmatpush.bf16.msra.mxu3 %v1913_v20  ;;  %v1638_v42 = vmul.f32 %v1637_v40, %v1613_v36 }
 0x540   : > { %v5287_v10 = vclamps-f32 %v1638_v42, 1.0 }
 0x542   : > { %v1761_v53 = vadd.f32 1.0, %v5287_v10 }
 0x544   : > { %v1765_v8 = vmul.f32 %v1761_v53, %v1593_v52  ;;  %v5795_v52 = vld [vmem:[%s8484_s9 + $0x10] sm:$0xff] }
 0x546   : > { %v6035_v49 = vpack.i.bf16 %v1766_v45, %v1765_v8  ;;  %v1912_v9 = vpack.c.bf16 %v1766_v45, %v1765_v8 }
 0x548   : > { %6036 = vrot.lane.b32.xlu1 %v6035_v49, %s8445_s20  ;;  %1942 = vmatpush.bf16.msra.mxu3 %v1912_v9 }
 0x54b   : > { %5339 = vmatmul.msk.bf16.vlgmr.msra.gmra.mxu3 %vm730_vm2, %v5797_v13 }
 0x5b0   : > { %v6032_v55 = vpop.permute.xlu0 %6031 }
 0x5b1   : > { %v6034_v46 = vunpack.i.h.bf16 %v6032_v55  ;;  %v6033_v12 = vunpack.i.l.bf16 %v6032_v55 }
 0x5b3   : > { %v1777_v35 = vsel %vm791_vm1, %v6033_v12, %v1767_v23  ;;  %v1780_v21 = vsel %vm791_vm1, %v6034_v46, %v1768_v63 }
 0x5b4   : > { %v6040_v44 = vpack.i.bf16 %v1780_v21, %v1777_v35  ;;  %v5796_v21 = vld [vmem:[%s8484_s9 + $0x18] sm:$0xff] }
 0x5b6   : > { %6041 = vrot.lane.b32.xlu2 %v6040_v44, %s8445_s20 }
 0x5ba   : > { %v6037_v26 = vpop.permute.xlu1 %6036 }
 0x5bb   : > { %v6039_v34 = vunpack.i.h.bf16 %v6037_v26  ;;  %v6038_v56 = vunpack.i.l.bf16 %v6037_v26 }
 0x5bd   : > { %v1771_v17 = vsel %vm791_vm1, %v6038_v56, %v1765_v8  ;;  %v1774_v1 = vsel %vm791_vm1, %v6039_v34, %v1766_v45 }
 0x5be   : > { %v6045_v61 = vpack.i.bf16 %v1774_v1, %v1771_v17  ;;  %v5793_v17 = vld [vmem:[%s8484_s9] sm:$0xff] }
 0x5c0   : > { %6046 = vrot.lane.b32.xlu0 %v6045_v61, %s8445_s20 }
 0x610   : > { %v6042_v2 = vpop.permute.xlu2 %6041 }
 0x611   : > { %v6044_v5 = vunpack.i.h.bf16 %v6042_v2  ;;  %v6043_v14 = vunpack.i.l.bf16 %v6042_v2 }
 0x613   : > { %v1791_v18 = vsel %vm791_vm1, %v6043_v14, %v1767_v23  ;;  %v1792_v62 = vsel %vm791_vm1, %v6044_v5, %v1768_v63  ;;  %v7105_v23 = vld [vmem:[%s8423_s10 + $0x18] sm:$0xff]  ;;  %v5799_v14 = vld [vmem:[%s8484_s9 + $0x30] sm:$0xff] }
 0x614   : > { %v6060_v25 = vpack.i.bf16 %v1792_v62, %v1791_v18  ;;  %v5801_v18 = vld [vmem:[%s8484_s9 + $0x40] sm:$0xff]  ;;  %v5794_v62 = vld [vmem:[%s8484_s9 + $0x8] sm:$0xff] }
 0x616   : > { %6061 = vrot.lane.b32.xlu0 %v6060_v25, %s8480_s22  ;;  %6051 = vrot.lane.b32.xlu1 %v6060_v25, %s8481_s26 }
 0x61e   : > { %6076 = vrot.lane.b32.xlu0 %v6060_v25, %s8482_s25 }
 0x626   : > { %2084 = vperm.xlu0 %6024, %v7099_v57  }
 0x62e   : > { %2099 = vperm.xlu0 %6024, %v7105_v23  }
 0x632   : > { %v6047_v63 = vpop.permute.xlu0 %6046 }
 0x633   : > { %v6049_v4 = vunpack.i.h.bf16 %v6047_v63  ;;  %v6048_v27 = vunpack.i.l.bf16 %v6047_v63  ;;  %v5802_v63 = vld [vmem:[%s8484_s9 + $0x48] sm:$0xff] }
 0x635   : > { %v1790_v41 = vsel %vm791_vm1, %v6049_v4, %v1766_v45  ;;  %v1789_v28 = vsel %vm791_vm1, %v6048_v27, %v1765_v8  ;;  %v5798_v45 = vld [vmem:[%s8484_s9 + $0x28] sm:$0xff] }
 0x636   : > { %6092 = vset.pattern.permute.xlu0 %v6508_v16  ;;  %v6055_v20 = vpack.i.bf16 %v1790_v41, %v1789_v28  ;;  %5340 = vmatmul.msk.bf16.gmra.mxu3 %vm730_vm2, %v5798_v45 }
 0x638   : > { %6056 = vrot.lane.b32.xlu2 %v6055_v20, %s8481_s26  ;;  %6066 = vrot.lane.b32.xlu1 %v6055_v20, %s8480_s22 }
 0x640   : > { %6071 = vrot.lane.b32.xlu2 %v6060_v25, %s8483_s29  ;;  %6081 = vrot.lane.b32.xlu1 %v6055_v20, %s8483_s29  ;;  %v5800_v25 = vld [vmem:[%s8484_s9 + $0x38] sm:$0xff]  ;;  %s4984_s9 = sshll.u32 %s4981_s8, 4  ;;  %s4985_s9 = int_to_ptr.hbm [resolvable:$true] %s4984_s9 }
 0x648   : > { %6086 = vrot.lane.b32.xlu2 %v6055_v20, %s8482_s25  ;;  %2089 = vperm.xlu1 %6028, %v7118_v19   ;;  %v1944_v20 = vpop.f32.mrf.mxu3 }
 0x650   : > { %2094 = vperm.xlu2 %6029, %v7125_v0   ;;  %6091 = vset.pattern.permute.xlu1 %v6507_v15 }
 0x658   : > { %6090 = vset.pattern.permute.xlu2 %v6507_v15 }
 0x688   : > { %v6062_v7 = vpop.permute.xlu0 %6061  ;;  %v6052_v60 = vpop.permute.xlu1 %6051 }
 0x689   : > { %v6064_v29 = vunpack.i.h.bf16 %v6062_v7  ;;  %v6063_v30 = vunpack.i.l.bf16 %v6062_v7  ;;  %v6054_v22 = vunpack.i.h.bf16 %v6052_v60  ;;  %v6053_v31 = vunpack.i.l.bf16 %v6052_v60 }
 0x68b   : > { %v5320_v32 = vpack.c.bf16 %v6064_v29, %v6063_v30  ;;  %v5304_v6 = vpack.c.bf16 %v6054_v22, %v6053_v31 }
 0x68d   : > { %5305 = vmatpush.bf16.msk.msrb.mxu1 %vm6739_vm4, %v5304_v6  ;;  %5321 = vmatpush.bf16.msk.msra.mxu2 %vm6772_vm7, %v5320_v32  ;;  %v1946_v32 = vpop.f32.mrf.mxu3 }
 0x690   : > { %v6077_v24 = vpop.permute.xlu0 %6076 }
 0x691   : > { %v6079_v36 = vunpack.i.h.bf16 %v6077_v24  ;;  %v6078_v38 = vunpack.i.l.bf16 %v6077_v24 }
 0x692   : > { %v6057_v40 = vpop.permute.xlu2 %6056 }
 0x693   : > { %v6059_v42 = vunpack.i.h.bf16 %v6057_v40  ;;  %v6058_v43 = vunpack.i.l.bf16 %v6057_v40  ;;  %v5374_v10 = vpack.c.bf16 %v6079_v36, %v6078_v38 }
 0x695   : > { %v5307_v48 = vpack.c.bf16 %v6059_v42, %v6058_v43 }
 0x697   : > { %5308 = vmatpush.bf16.msk.msrb.mxu1 %vm6739_vm4, %v5307_v48 }
 0x698   : > { %v2085_v13 = vpop.permute.xlu0 %2084 }
 0x69a   : > { %v6072_v53 = vpop.permute.xlu2 %6071  ;;  %5309 = vmatmul.msk.bf16.vlgmr.msrb.gmra.mxu1 %vm730_vm2, %v5795_v52 }
 0x69b   : > { %5375 = vmatpush.bf16.msk.msra.mxu1 %vm6803_vm10, %v5374_v10  ;;  %v6074_v8 = vunpack.i.h.bf16 %v6072_v53  ;;  %v6073_v49 = vunpack.i.l.bf16 %v6072_v53 }
 0x69d   : > { %v5354_v9 = vpack.c.bf16 %v6074_v8, %v6073_v49 }
 0x69f   : > { %5355 = vmatpush.bf16.msk.msra.mxu0 %vm6776_vm8, %v5354_v9 }
 0x6a2   : > { %v6087_v55 = vpop.permute.xlu2 %6086 }
 0x6a3   : > { %v6089_v46 = vunpack.i.h.bf16 %v6087_v55  ;;  %v6088_v12 = vunpack.i.l.bf16 %v6087_v55 }
 0x6a5   : > { %v5377_v35 = vpack.c.bf16 %v6089_v46, %v6088_v12 }
 0x6a7   : > { %5378 = vmatpush.bf16.msk.msra.mxu1 %vm6803_vm10, %v5377_v35 }
 0x6aa   : > { %v6067_v44 = vpop.permute.xlu1 %6066  ;;  %5310 = vmatmul.msk.bf16.gmra.mxu1 %vm730_vm2, %v5796_v21 }
 0x6ab   : > { %v6069_v26 = vunpack.i.h.bf16 %v6067_v44  ;;  %v6068_v34 = vunpack.i.l.bf16 %v6067_v44 }
 0x6ad   : > { %v5323_v56 = vpack.c.bf16 %v6069_v26, %v6068_v34  ;;  %v2095_v26 = vpop.permute.xlu2 %2094 }
 0x6af   : > { %5324 = vmatpush.bf16.msk.msra.mxu2 %vm6772_vm7, %v5323_v56 }
 0x6b2   : > { %v6082_v1 = vpop.permute.xlu1 %6081  ;;  %5325 = vmatmul.msk.bf16.vlgmr.msra.gmra.mxu2 %vm730_vm2, %v5793_v17 }
 0x6b3   : > { %v6084_v61 = vunpack.i.h.bf16 %v6082_v1  ;;  %v6083_v2 = vunpack.i.l.bf16 %v6082_v1 }
 0x6b5   : > { %v5357_v5 = vpack.c.bf16 %v6084_v61, %v6083_v2 }
 0x6b7   : > { %5358 = vmatpush.bf16.msk.msra.mxu0 %vm6776_vm8, %v5357_v5 }
 0x6b9   : > { %v1949_v45 = vpop.f32.mrf.mxu3 }
 0x6ba   : > { %5359 = vmatmul.msk.bf16.vlgmr.msra.gmra.mxu0 %vm730_vm2, %v5799_v14  ;;  %5379 = vmatmul.msk.bf16.vlgmr.msra.gmra.mxu1 %vm730_vm2, %v5801_v18  ;;  %v2090_v52 = vpop.permute.xlu1 %2089 }
 0x6c1   : > { %v1951_v1 = vpop.f32.mrf.mxu3 }
 0x6c2   : > { %5326 = vmatmul.msk.bf16.gmra.mxu2 %vm730_vm2, %v5794_v62 }
 0x6ca   : > { %5360 = vmatmul.msk.bf16.gmra.mxu0 %vm730_vm2, %v5800_v25  ;;  %5380 = vmatmul.msk.bf16.gmra.mxu1 %vm730_vm2, %v5802_v63  ;;  %v2100_v25 = vpop.permute.xlu0 %2099 }
 0x717   : > { %v1867_v4 = vpop.f32.mrf.mxu1 }
 0x71f   : > { %v1869_v27 = vpop.f32.mrf.mxu1 }
 0x727   : > { %v1872_v41 = vpop.f32.mrf.mxu1 }
 0x72f   : > { %v1874_v28 = vpop.f32.mrf.mxu1 }
 0x735   : > { %v1902_v7 = vpop.f32.mrf.mxu2 }
 0x736   : > { %v1903_v60 = vadd.f32 %v1902_v7, %v1867_v4 }
 0x737   : > { %v2006_v29 = vpop.f32.mrf.mxu0  ;;  %v2068_v30 = vpop.f32.mrf.mxu1 }
 0x738   : > { %v1954_v22 = vadd.f32 %v1944_v20, %v1903_v60 }
 0x73a   : > { %v2016_v31 = vadd.f32 %v2006_v29, %v1954_v22 }
 0x73c   : > { %v2078_v6 = vadd.f32 %v2068_v30, %v2016_v31 }
 0x73d   : > { %v1904_v24 = vpop.f32.mrf.mxu2 }
 0x73e   : > { %v1905_v36 = vadd.f32 %v1904_v24, %v1869_v27  ;;  %v2102_v38 = vadd.f32 %v2085_v13, %v2078_v6 }
 0x73f   : > { %v2008_v40 = vpop.f32.mrf.mxu0  ;;  %v2070_v42 = vpop.f32.mrf.mxu1 }
 0x740   : > { %v1955_v43 = vadd.f32 %v1946_v32, %v1905_v36  ;;  %v2106_v10 = vsel %vm730_vm2, %v2102_v38, 0.0 }
 0x741   : > { %2107 = vadd.xlane.f32.xlu1 %v2106_v10 }
 0x742   : > { %v2017_v48 = vadd.f32 %v2008_v40, %v1955_v43 }
 0x744   : > { %v2079_v53 = vadd.f32 %v2070_v42, %v2017_v48 }
 0x745   : > { %v1907_v8 = vpop.f32.mrf.mxu2 }
 0x746   : > { %v1908_v49 = vadd.f32 %v1907_v8, %v1872_v41  ;;  %v2103_v9 = vadd.f32 %v2090_v52, %v2079_v53 }
 0x747   : > { %v2011_v55 = vpop.f32.mrf.mxu0  ;;  %v2073_v35 = vpop.f32.mrf.mxu1 }
 0x748   : > { %v1956_v46 = vadd.f32 %v1949_v45, %v1908_v49  ;;  %v2109_v12 = vsel %vm730_vm2, %v2103_v9, 0.0 }
 0x749   : > { %2110 = vadd.xlane.f32.xlu2 %v2109_v12 }
 0x74a   : > { %v2018_v21 = vadd.f32 %v2011_v55, %v1956_v46 }
 0x74c   : > { %v2080_v44 = vadd.f32 %v2073_v35, %v2018_v21 }
 0x74d   : > { %v1909_v34 = vpop.f32.mrf.mxu2 }
 0x74e   : > { %v1910_v56 = vadd.f32 %v1909_v34, %v1874_v28  ;;  %v2104_v17 = vadd.f32 %v2095_v26, %v2080_v44 }
 0x74f   : > { %v2013_v5 = vpop.f32.mrf.mxu0  ;;  %v2075_v18 = vpop.f32.mrf.mxu1 }
 0x750   : > { %v1957_v61 = vadd.f32 %v1951_v1, %v1910_v56  ;;  %v2112_v2 = vsel %vm730_vm2, %v2104_v17, 0.0 }
 0x751   : > { %2113 = vadd.xlane.f32.xlu0 %v2112_v2 }
 0x752   : > { %v2019_v14 = vadd.f32 %v2013_v5, %v1957_v61 }
 0x754   : > { %v2081_v62 = vadd.f32 %v2075_v18, %v2019_v14 }
 0x756   : > { %v2105_v63 = vadd.f32 %v2100_v25, %v2081_v62 }
 0x758   : > { %v2115_v4 = vsel %vm730_vm2, %v2105_v63, 0.0 }
 0x759   : > { %2116 = vadd.xlane.f32.xlu1 %v2115_v4 }
 0x7b4   : > { %v2108_v27 = vpop.xlane.xlu1 %2107 }
 0x7bc   : > { %v2111_v41 = vpop.xlane.xlu2 %2110 }
 0x7bd   : > { %v2118_v7 = vadd.f32 %v2111_v41, %v2108_v27 }
 0x7c4   : > { %v2114_v20 = vpop.xlane.xlu0 %2113 }
 0x7c5   : > { %v2119_v28 = vadd.f32 %v2118_v7, %v2114_v20 }
 0x7cc   : > { %v2117_v60 = vpop.xlane.xlu1 %2116 }
 0x7cd   : > { %v2120_v29 = vadd.f32 %v2119_v28, %v2117_v60 }
 0x7cf   : > { %v2121_v30 = vrot.slane %v2120_v29, 4 }
 0x7d1   : > { %v2122_v22 = vadd.f32 %v2121_v30, %v2120_v29 }
 0x7d3   : > { %v2123_v31 = vrot.slane %v2122_v22, 2 }
 0x7d5   : > { %v2124_v32 = vadd.f32 %v2123_v31, %v2122_v22 }
 0x7d7   : > { %v2125_v6 = vrot.slane %v2124_v32, 1 }
 0x7d9   : > { %v2126_v13 = vadd.f32 %v2125_v6, %v2124_v32 }
 0x7db   : > { %v2127_v24 = vmul.f32 0.0009765625, %v2126_v13 }
 0x7dd   : > { %v7190_v36 = vsub.f32 %v2104_v17, %v2127_v24  ;;  %v7192_v40 = vsub.f32 %v2103_v9, %v2127_v24  ;;  %v2128_v42 = vsub.f32 %v2102_v38, %v2127_v24  ;;  %v7201_v8 = vsub.f32 %v2105_v63, %v2127_v24 }
 0x7df   : > { %v2134_v43 = vmul.f32 %v7190_v36, %v7190_v36  ;;  %v2133_v10 = vmul.f32 %v7192_v40, %v7192_v40  ;;  %v2132_v48 = vmul.f32 %v2128_v42, %v2128_v42  ;;  %v2135_v38 = vmul.f32 %v7201_v8, %v7201_v8 }
 0x7e1   : > { %v2142_v52 = vsel %vm730_vm2, %v2134_v43, 0.0  ;;  %v2139_v53 = vsel %vm730_vm2, %v2133_v10, 0.0  ;;  %v2136_v45 = vsel %vm730_vm2, %v2132_v48, 0.0  ;;  %v2145_v49 = vsel %vm730_vm2, %v2135_v38, 0.0 }
 0x7e2   : > { %2143 = vadd.xlane.f32.xlu1 %v2142_v52  ;;  %2140 = vadd.xlane.f32.xlu0 %v2139_v53 }
 0x7e3   : > { %2137 = vadd.xlane.f32.xlu2 %v2136_v45 }
 0x7eb   : > { %2146 = vadd.xlane.f32.xlu2 %v2145_v49 }
 0x7fb   : > { %2210 = vperm.xlu1 %6091, %v7105_v23  }
 0x803   : > { %2206 = vperm.xlu2 %6090, %v7125_v0   ;;  %6093 = vset.pattern.permute.xlu1 %v6508_v16 }
 0x80b   : > { %6094 = vset.pattern.permute.xlu2 %v6508_v16 }
 0x855   : > { %v2141_v9 = vpop.xlane.xlu0 %2140  ;;  %v2144_v12 = vpop.xlane.xlu1 %2143 }
 0x856   : > { %v2138_v55 = vpop.xlane.xlu2 %2137 }
 0x857   : > { %v2148_v46 = vadd.f32 %v2141_v9, %v2138_v55 }
 0x859   : > { %v2149_v35 = vadd.f32 %v2148_v46, %v2144_v12 }
 0x85e   : > { %v2147_v21 = vpop.xlane.xlu2 %2146 }
 0x85f   : > { %v2150_v44 = vadd.f32 %v2149_v35, %v2147_v21 }
 0x861   : > { %v2151_v26 = vrot.slane %v2150_v44, 4 }
 0x863   : > { %v2152_v34 = vadd.f32 %v2151_v26, %v2150_v44 }
 0x865   : > { %v2153_v56 = vrot.slane %v2152_v34, 2 }
 0x867   : > { %v2154_v17 = vadd.f32 %v2153_v56, %v2152_v34 }
 0x869   : > { %v2155_v1 = vrot.slane %v2154_v17, 1 }
 0x86b   : > { %v2156_v61 = vadd.f32 %v2155_v1, %v2154_v17 }
 0x86d   : > { %v2157_v2 = vmul.f32 0.0009765625, %v2156_v61  ;;  %v2211_v31 = vpop.permute.xlu1 %2210 }
 0x86f   : > { %v2158_v5 = vadd.f32 1e-05, %v2157_v2 }
 0x871   : > { %6387 = vrsqrt.f32 %v2158_v5  ;;  %vm2165_vm11 = vweird.f32 %v2158_v5 }
 0x877   : > { %v6388_v14 = vpop.eup %6387 }
 0x878   : > { %v2160_v18 = vmul.f32 %v6388_v14, %v2158_v5  ;;  %vm2166_vm9 = vweird.f32 %v6388_v14 }
 0x879   : > { %vm2167_vm12 = vmor %vm2165_vm11, %vm2166_vm9 }
 0x87a   : > { %v2161_v62 = vmul.f32 %v6388_v14, %v2160_v18 }
 0x87c   : > { %v2162_v25 = vmul.f32 0.5, %v2161_v62 }
 0x87e   : > { %v2163_v63 = vsub.f32 1.5, %v2162_v25 }
 0x880   : > { %v2164_v4 = vmul.f32 %v6388_v14, %v2163_v63 }
 0x882   : > { %v2168_v27 = vsel %vm2167_vm12, %v6388_v14, %v2164_v4 }
 0x883   : > { %v2172_v41 = vmul.f32 %v2168_v27, %v7105_v23  ;;  %v2171_v20 = vmul.f32 %v2168_v27, %v7125_v0  ;;  %v2169_v7 = vmul.f32 %v2168_v27, %v7099_v57  ;;  %v2170_v28 = vmul.f32 %v2168_v27, %v7118_v19  ;;  %v2207_v23 = vpop.permute.xlu2 %2206 }
 0x885   : > { %2190 = vperm.xlu1 %6093, %v2172_v41   ;;  %2185 = vperm.xlu0 %6092, %v2171_v20  }
 0x886   : > { %2175 = vperm.xlu2 %6094, %v2169_v7  }
 0x88d   : > { %2180 = vperm.xlu1 %6093, %v2170_v28   ;;  %6096 = vset.pattern.permute.xlu0 %v6507_v15 }
 0x88e   : > { %6095 = vset.pattern.permute.xlu2 %v6507_v15  ;;  %2202 = vperm.xlu0 %6096, %v7118_v19  }
 0x88f   : > { %2198 = vperm.xlu2 %6095, %v7099_v57  }
 0x895   : > { %6159 = vset.pattern.permute.xlu1 %v6506_v11 }
 0x896   : > { %6158 = vset.pattern.permute.xlu0 %v6506_v11 }
 0x897   : > { %6157 = vset.pattern.permute.xlu2 %v6506_v11 }
 0x8e0   : > { %v2176_v0 = vpop.permute.xlu2 %2175 }
 0x8e1   : > { %v2193_v60 = vmul.f32 %v2176_v0, %v2128_v42 }
 0x8e9   : > { %v2199_v29 = vpop.permute.xlu2 %2198 }
 0x8ea   : > { %v7221_v30 = vadd.f32 %v2199_v29, %v2193_v60 }
 0x8ec   : > { %v7224_v22 = vmul.f32 0.70710677, %v7221_v30 }
 0x8ee   : > { %v2225_v19 = vmul.f32 %v7224_v22, %v7224_v22 }
 0x8f0   : > { %v7228_v57 = vmin.f32 %v2225_v19, 16.0 }
 0x8f2   : > { %v2238_v32 = vmul.f32 3.8918573e-05, %v7228_v57  ;;  %v2227_v55 = vmul.f32 2.1237322e-06, %v7228_v57 }
 0x8f4   : > { %v2239_v6 = vadd.f32 0.001143296, %v2238_v32  ;;  %v2228_v34 = vadd.f32 0.00028619796, %v2227_v55 }
 0x8f6   : > { %v2240_v13 = vmul.f32 %v2239_v6, %v7228_v57  ;;  %v2229_v25 = vmul.f32 %v2228_v34, %v7228_v57 }
 0x8f7   : > { %v2191_v24 = vpop.permute.xlu1 %2190  ;;  %v2186_v43 = vpop.permute.xlu0 %2185 }
 0x8f8   : > { %v2241_v42 = vadd.f32 0.014752088, %v2240_v13  ;;  %v2196_v10 = vmul.f32 %v2191_v24, %v7201_v8  ;;  %v2195_v48 = vmul.f32 %v2186_v43, %v7190_v36  ;;  %v2230_v29 = vadd.f32 0.0036580483, %v2229_v25 }
 0x8fa   : > { %v2242_v52 = vmul.f32 %v2241_v42, %v7228_v57  ;;  %v7235_v53 = vadd.f32 %v2211_v31, %v2196_v10  ;;  %v7237_v45 = vadd.f32 %v2207_v23, %v2195_v48  ;;  %v2231_v48 = vmul.f32 %v2230_v29, %v7228_v57 }
 0x8fc   : > { %v2243_v38 = vadd.f32 0.112945676, %v2242_v52  ;;  %v7240_v49 = vmul.f32 0.70710677, %v7235_v53  ;;  %v7243_v9 = vmul.f32 0.70710677, %v7237_v45 }
 0x8fd   : > { %v2232_v34 = vadd.f32 0.05243302, %v2231_v48 }
 0x8fe   : > { %v2244_v46 = vmul.f32 %v2243_v38, %v7228_v57  ;;  %v2345_v36 = vmul.f32 %v7240_v49, %v7240_v49  ;;  %v2305_v8 = vmul.f32 %v7243_v9, %v7243_v9 }
 0x8ff   : > { %v2181_v12 = vpop.permute.xlu1 %2180  ;;  %v2233_v25 = vmul.f32 %v2232_v34, %v7228_v57 }
 0x900   : > { %v2194_v35 = vmul.f32 %v2181_v12, %v7192_v40  ;;  %v7252_v21 = vmin.f32 %v2345_v36, 16.0  ;;  %v7254_v44 = vmin.f32 %v2305_v8, 16.0  ;;  %v2203_v26 = vpop.permute.xlu0 %2202  ;;  %v2245_v56 = vadd.f32 0.4994258, %v2244_v46 }
 0x902   : > { %v2347_v17 = vmul.f32 2.1237322e-06, %v7252_v21  ;;  %v2358_v1 = vmul.f32 3.8918573e-05, %v7252_v21  ;;  %v2307_v61 = vmul.f32 2.1237322e-06, %v7254_v44  ;;  %v7260_v5 = vadd.f32 %v2203_v26, %v2194_v35 }
 0x903   : > { %v2318_v2 = vmul.f32 3.8918573e-05, %v7254_v44  ;;  %v2246_v62 = vmul.f32 %v2245_v56, %v7228_v57 }
 0x904   : > { %v2348_v14 = vadd.f32 0.00028619796, %v2347_v17  ;;  %v2359_v18 = vadd.f32 0.001143296, %v2358_v1  ;;  %v2308_v40 = vadd.f32 0.00028619796, %v2307_v61 }
 0x905   : > { %v2319_v41 = vadd.f32 0.001143296, %v2318_v2  ;;  %v7268_v20 = vmul.f32 0.70710677, %v7260_v5  ;;  %v7270_v23 = vadd.f32 1.0, %v2246_v62 }
 0x906   : > { %v2349_v63 = vmul.f32 %v2348_v14, %v7252_v21  ;;  %v2360_v4 = vmul.f32 %v2359_v18, %v7252_v21  ;;  %v2309_v27 = vmul.f32 %v2308_v40, %v7254_v44 }
 0x907   : > { %v2320_v0 = vmul.f32 %v2319_v41, %v7254_v44  ;;  %v2265_v60 = vmul.f32 %v7268_v20, %v7268_v20  ;;  %6389 = vrcp.f32 %v7270_v23  ;;  %vm2253_vm13 = vweird.f32 %v7270_v23 }
 0x908   : > { %v2350_v7 = vadd.f32 0.0036580483, %v2349_v63  ;;  %v2361_v28 = vadd.f32 0.014752088, %v2360_v4  ;;  %v2310_v19 = vadd.f32 0.0036580483, %v2309_v27 }
 0x909   : > { %v2321_v32 = vadd.f32 0.014752088, %v2320_v0  ;;  %v7276_v6 = vmin.f32 %v2265_v60, 16.0  ;;  %v2234_v0 = vadd.f32 0.18741608, %v2233_v25 }
 0x90a   : > { %v2362_v31 = vmul.f32 %v2361_v28, %v7252_v21  ;;  %v2351_v13 = vmul.f32 %v2350_v7, %v7252_v21  ;;  %v2311_v38 = vmul.f32 %v2310_v19, %v7254_v44 }
 0x90b   : > { %v2322_v43 = vmul.f32 %v2321_v32, %v7254_v44  ;;  %v2267_v42 = vmul.f32 2.1237322e-06, %v7276_v6  ;;  %v2278_v10 = vmul.f32 3.8918573e-05, %v7276_v6 }
 0x90c   : > { %v2363_v24 = vadd.f32 0.112945676, %v2362_v31  ;;  %v2352_v8 = vadd.f32 0.05243302, %v2351_v13  ;;  %v2312_v17 = vadd.f32 0.05243302, %v2311_v38 }
 0x90d   : > { %v2323_v55 = vadd.f32 0.112945676, %v2322_v43  ;;  %v2268_v46 = vadd.f32 0.00028619796, %v2267_v42  ;;  %v2279_v36 = vadd.f32 0.001143296, %v2278_v10  ;;  %v7289_v1 = vpop.eup %6389  ;;  %v2235_v42 = vmul.f32 %v2234_v0, %v7228_v57 }
 0x90e   : > { %v2364_v52 = vmul.f32 %v2363_v24, %v7252_v21  ;;  %v2353_v14 = vmul.f32 %v2352_v8, %v7252_v21  ;;  %v2249_v63 = vmul.f32 %v7289_v1, %v7270_v23  ;;  %v2313_v4 = vmul.f32 %v2312_v17, %v7254_v44 }
 0x90f   : > { %v2324_v35 = vmul.f32 %v2323_v55, %v7254_v44  ;;  %v2280_v26 = vmul.f32 %v2279_v36, %v7276_v6  ;;  %v2269_v2 = vmul.f32 %v2268_v46, %v7276_v6  ;;  %v2259_v38 = vand.u32 2147483648, %v7270_v23 }
 0x910   : > { %v2365_v12 = vadd.f32 0.4994258, %v2364_v52  ;;  %v2354_v7 = vadd.f32 0.18741608, %v2353_v14  ;;  %v2250_v60 = vsub.f32 1.0, %v2249_v63  ;;  %vm2254_vm14 = vweird.f32 %v7289_v1 }
 0x911   : > { %v2325_v61 = vadd.f32 0.4994258, %v2324_v35  ;;  %v2281_v40 = vadd.f32 0.014752088, %v2280_v26  ;;  %v2270_v41 = vadd.f32 0.0036580483, %v2269_v2  ;;  %vm7316_vm9 = vmor %vm2253_vm13, %vm2254_vm14 }
 0x912   : > { %v2366_v56 = vmul.f32 %v2365_v12, %v7252_v21  ;;  %v2314_v29 = vadd.f32 0.18741608, %v2313_v4  ;;  %v2355_v13 = vmul.f32 %v2354_v7, %v7252_v21  ;;  %v2251_v10 = vmul.f32 %v7289_v1, %v2250_v60 }
 0x913   : > { %v2326_v62 = vmul.f32 %v2325_v61, %v7254_v44  ;;  %v2282_v28 = vmul.f32 %v2281_v40, %v7276_v6  ;;  %v2271_v31 = vmul.f32 %v2270_v41, %v7276_v6  ;;  %v2257_v41 = vand.u32 2147483647, %v7270_v23 }
 0x914   : > { %v2367_v18 = vadd.f32 1.0, %v2366_v56  ;;  %v2315_v48 = vmul.f32 %v2314_v29, %v7254_v44  ;;  %v2356_v21 = vadd.f32 1.1283791, %v2355_v13  ;;  %v2252_v34 = vadd.f32 %v7289_v1, %v2251_v10 }
 0x915   : > { %v2327_v27 = vadd.f32 1.0, %v2326_v62  ;;  %v2283_v19 = vadd.f32 0.112945676, %v2282_v28  ;;  %v2272_v46 = vadd.f32 0.05243302, %v2271_v31  ;;  %v2260_v13 = vor.u32 1.1754944e-38, %v2259_v38 }
 0x916   : > { %6391 = vrcp.f32 %v2367_v18  ;;  %v2379_v8 = vand.u32 2147483648, %v2367_v18  ;;  %v2377_v57 = vand.u32 2147483647, %v2367_v18  ;;  %vm2373_vm0 = vweird.f32 %v2367_v18 }
 0x917   : > { %6393 = vrcp.f32 %v2327_v27  ;;  %v2284_v43 = vmul.f32 %v2283_v19, %v7276_v6  ;;  %v2316_v44 = vadd.f32 1.1283791, %v2315_v48  ;;  %v2339_v61 = vand.u32 2147483648, %v2327_v27 }
 0x918   : > { %v2273_v2 = vmul.f32 %v2272_v46, %v7276_v6  ;;  %v2380_v40 = vor.u32 1.1754944e-38, %v2379_v8  ;;  %v2337_v25 = vand.u32 2147483647, %v2327_v27  ;;  %v2357_v63 = vmul.f32 %v2356_v21, %v7240_v49 }
 0x919   : > { %v2285_v36 = vadd.f32 0.4994258, %v2284_v43  ;;  %vm2378_vm6 = vcmp.eq.f32.partialorder %v2377_v57, 8.507059e+37  ;;  %vm2333_vm11 = vweird.f32 %v2327_v27  ;;  %v2236_v0 = vadd.f32 1.1283791, %v2235_v42 }
 0x91a   : > { %v2340_v49 = vor.u32 1.1754944e-38, %v2339_v61  ;;  %v2274_v29 = vadd.f32 0.18741608, %v2273_v2  ;;  %v2256_v31 = vsel %vm7316_vm9, %v7289_v1, %v2252_v34  ;;  %v2317_v19 = vmul.f32 %v2316_v44, %v7243_v9 }
 0x91b   : > { %v2286_v26 = vmul.f32 %v2285_v36, %v7276_v6  ;;  %vm2338_vm13 = vcmp.eq.f32.partialorder %v2337_v25, 8.507059e+37  ;;  %vm2258_vm14 = vcmp.eq.f32.partialorder %v2257_v41, 8.507059e+37  ;;  %v2220_v42 = vmul.f32 0.5, %v7235_v53 }
 0x91c   : > { %v6392_v32 = vpop.eup %6391  ;;  %v2237_v46 = vmul.f32 %v2236_v0, %v7224_v22  ;;  %v789_v9 = vadd.f32 %v6934_v59, %v6882_v39  ;;  %v2219_v21 = vmul.f32 0.5, %v7237_v45  ;;  %v2218_v25 = vmul.f32 0.5, %v7260_v5 }
 0x91d   : > { %v2369_v24 = vmul.f32 %v6392_v32, %v2367_v18  ;;  %v6394_v52 = vpop.eup %6393  ;;  %vm2374_vm15 = vweird.f32 %v6392_v32  ;;  %v2287_v14 = vadd.f32 1.0, %v2286_v26 }
 0x91e   : > { %v2329_v12 = vmul.f32 %v6394_v52, %v2327_v27  ;;  %vm2375_vm3 = vmor %vm2373_vm0, %vm2374_vm15  ;;  %vm2334_vm5 = vweird.f32 %v6394_v52  ;;  %v2261_v27 = vsel %vm2258_vm14, %v2260_v13, %v2256_v31 }
 0x91f   : > { %v2370_v55 = vsub.f32 1.0, %v2369_v24  ;;  %6395 = vrcp.f32 %v2287_v14  ;;  %vm2335_vm12 = vmor %vm2333_vm11, %vm2334_vm5  ;;  %v2262_v38 = vmul.f32 %v2261_v27, %v2237_v46  ;;  %v2297_v57 = vand.u32 2147483647, %v2287_v14 }
 0x920   : > { %v2330_v56 = vsub.f32 1.0, %v2329_v12  ;;  %v2299_v26 = vand.u32 2147483648, %v2287_v14  ;;  %vm2293_vm0 = vweird.f32 %v2287_v14 }
 0x921   : > { %v2371_v35 = vmul.f32 %v6392_v32, %v2370_v55  ;;  %v2275_v55 = vmul.f32 %v2274_v29, %v7276_v6  ;;  %v5381_v22 = vclamps-f32 %v2262_v38, 1.0  ;;  %vm2298_vm5 = vcmp.eq.f32.partialorder %v2297_v57, 8.507059e+37 }
 0x922   : > { %v2331_v62 = vmul.f32 %v6394_v52, %v2330_v56  ;;  %v2300_v59 = vor.u32 1.1754944e-38, %v2299_v26 }
 0x923   : > { %v2372_v17 = vadd.f32 %v6392_v32, %v2371_v35  ;;  %v2276_v35 = vadd.f32 1.1283791, %v2275_v55 }
 0x924   : > { %v2332_v28 = vadd.f32 %v6394_v52, %v2331_v62 }
 0x925   : > { %v2376_v4 = vsel %vm2375_vm3, %v6392_v32, %v2372_v17  ;;  %v6396_v10 = vpop.eup %6395  ;;  %v2277_v39 = vmul.f32 %v2276_v35, %v7268_v20 }
 0x926   : > { %v2381_v7 = vsel %vm2378_vm6, %v2380_v40, %v2376_v4  ;;  %v2336_v32 = vsel %vm2335_vm12, %v6394_v52, %v2332_v28  ;;  %v2289_v1 = vmul.f32 %v6396_v10, %v2287_v14  ;;  %vm2294_vm15 = vweird.f32 %v6396_v10 }
 0x927   : > { %v2382_v60 = vmul.f32 %v2381_v7, %v2357_v63  ;;  %v2341_v43 = vsel %vm2338_vm13, %v2340_v49, %v2336_v32  ;;  %vm2295_vm3 = vmor %vm2293_vm0, %vm2294_vm15  ;;  %v2385_v40 = vadd.f32 1.0, %v5381_v22  ;;  %v784_v4 = vadd.f32 %v6919_v51, %v6932_v58 }
 0x928   : > { %v2342_v23 = vmul.f32 %v2341_v43, %v2317_v19  ;;  %v2290_v12 = vsub.f32 1.0, %v2289_v1 }
 0x929   : > { %v5384_v24 = vclamps-f32 %v2382_v60, 1.0 }
 0x92a   : > { %v5383_v36 = vclamps-f32 %v2342_v23, 1.0  ;;  %v2291_v6 = vmul.f32 %v6396_v10, %v2290_v12 }
 0x92b   : > { %v2388_v48 = vadd.f32 1.0, %v5384_v24 }
 0x92c   : > { %v2387_v8 = vadd.f32 1.0, %v5383_v36  ;;  %v2292_v56 = vadd.f32 %v6396_v10, %v2291_v6 }
 0x92d   : > { %v2392_v52 = vmul.f32 %v2388_v48, %v2220_v42 }
 0x92e   : > { %v2391_v34 = vmul.f32 %v2387_v8, %v2219_v21  ;;  %v2296_v45 = vsel %vm2295_vm3, %v6396_v10, %v2292_v56 }
 0x92f   : > { %v7331_v53 = vadd.f32 %v2392_v52, %v789_v9  ;;  %v2301_v2 = vsel %vm2298_vm5, %v2300_v59, %v2296_v45 }
 0x930   : > { %v7334_v44 = vadd.f32 %v2391_v34, %v6926_v54  ;;  %v2302_v62 = vmul.f32 %v2301_v2, %v2277_v39  ;;  %v2217_v54 = vmul.f32 0.5, %v7221_v30  ;;  %v5807_v34 = vld [vmem:[%s8424_s11 + $0x20] sm:$0xff]  ;;  %v5808_v2 = vld [vmem:[%s8424_s11 + $0x28] sm:$0xff] }
 0x932   : > { %v6097_v17 = vpack.i.bf16 %v7331_v53, %v7334_v44  ;;  %v2549_v61 = vpack.c.bf16 %v7331_v53, %v7334_v44  ;;  %v5382_v14 = vclamps-f32 %v2302_v62, 1.0  ;;  %v2389_v20 = vmul.f32 %v2385_v40, %v2217_v54 }
 0x934   : > { %6098 = vrot.lane.b32.xlu1 %v6097_v17, %s8487_s5  ;;  %2577 = vmatpush.bf16.msrb.mxu0 %v2549_v61  ;;  %v2386_v63 = vadd.f32 1.0, %v5382_v14  ;;  %v7347_v41 = vadd.f32 %v2389_v20, %v6908_v47 }
 0x936   : > { %v2390_v18 = vmul.f32 %v2386_v63, %v2218_v25  ;;  %v5805_v25 = vld [vmem:[%s8424_s11 + $0x10] sm:$0xff] }
 0x938   : > { %v7349_v7 = vadd.f32 %v2390_v18, %v784_v4 }
 0x93a   : > { %v6102_v28 = vpack.i.bf16 %v7349_v7, %v7347_v41  ;;  %v2548_v30 = vpack.c.bf16 %v7349_v7, %v7347_v41 }
 0x93c   : > { %6103 = vrot.lane.b32.xlu2 %v6102_v28, %s8487_s5  ;;  %2578 = vmatpush.bf16.msrb.mxu0 %v2548_v30 }
 0x93f   : > { %5433 = vmatmul.msk.bf16.vlgmr.msrb.gmra.mxu0 %vm730_vm2, %v5807_v34 }
 0x94f   : > { %5434 = vmatmul.msk.bf16.gmra.mxu0 %vm730_vm2, %v5808_v2 }
 0x996   : > { %v6104_v5 = vpop.permute.xlu2 %6103 }
 0x997   : > { %v6106_v0 = vunpack.i.h.bf16 %v6104_v5  ;;  %v6105_v60 = vunpack.i.l.bf16 %v6104_v5 }
 0x999   : > { %v2407_v51 = vsel %vm791_vm1, %v6105_v60, %v7347_v41  ;;  %v2410_v47 = vsel %vm791_vm1, %v6106_v0, %v7349_v7  ;;  %v5803_v60 = vld [vmem:[%s8424_s11] sm:$0xff] }
 0x99a   : > { %v6112_v58 = vpack.i.bf16 %v2410_v47, %v2407_v51  ;;  %v5809_v51 = vld [vmem:[%s8424_s11 + $0x30] sm:$0xff] }
 0x99c   : > { %6113 = vrot.lane.b32.xlu2 %v6112_v58, %s8487_s5 }
 0x9a6   : > { %v6099_v49 = vpop.permute.xlu1 %6098 }
 0x9a7   : > { %v6101_v29 = vunpack.i.h.bf16 %v6099_v49  ;;  %v6100_v31 = vunpack.i.l.bf16 %v6099_v49 }
 0x9a9   : > { %v2413_v19 = vsel %vm791_vm1, %v6100_v31, %v7334_v44  ;;  %v2416_v32 = vsel %vm791_vm1, %v6101_v29, %v7331_v53  ;;  %v5806_v31 = vld [vmem:[%s8424_s11 + $0x18] sm:$0xff] }
 0x9aa   : > { %v6107_v13 = vpack.i.bf16 %v2416_v32, %v2413_v19  ;;  %v5804_v19 = vld [vmem:[%s8424_s11 + $0x8] sm:$0xff] }
 0x9ab   : > { %v7428_v32 = vld [vmem:[%s8425_s12 + $0x8] sm:$0xff] }
 0x9ac   : > { %6108 = vrot.lane.b32.xlu1 %v6107_v13, %s8487_s5  ;;  %v7433_v13 = vld [vmem:[%s8425_s12 + $0x10] sm:$0xff] }
 0x9f6   : > { %v6114_v24 = vpop.permute.xlu2 %6113 }
 0x9f7   : > { %v6116_v43 = vunpack.i.h.bf16 %v6114_v24  ;;  %v6115_v23 = vunpack.i.l.bf16 %v6114_v24  ;;  %v7438_v24 = vld [vmem:[%s8425_s12] sm:$0xff] }
 0x9f9   : > { %v2426_v10 = vsel %vm791_vm1, %v6116_v43, %v7349_v7  ;;  %v2425_v27 = vsel %vm791_vm1, %v6115_v23, %v7347_v41  ;;  %v5810_v43 = vld [vmem:[%s8424_s11 + $0x38] sm:$0xff] }
 0x9fa   : > { %v6122_v42 = vpack.i.bf16 %v2426_v10, %v2425_v27  ;;  %v7451_v23 = vld [vmem:[%s8425_s12 + $0x18] sm:$0xff]  ;;  %v5811_v10 = vld [vmem:[%s8424_s11 + $0x40] sm:$0xff]  ;;  %v5812_v27 = vld [vmem:[%s8424_s11 + $0x48] sm:$0xff] }
 0x9fc   : > { %6123 = vrot.lane.b32.xlu1 %v6122_v42, %s8481_s26 }
 0xa1e   : > { %v6109_v48 = vpop.permute.xlu1 %6108 }
 0xa1f   : > { %v6111_v55 = vunpack.i.h.bf16 %v6109_v48  ;;  %v6110_v46 = vunpack.i.l.bf16 %v6109_v48 }
 0xa21   : > { %v2428_v36 = vsel %vm791_vm1, %v6111_v55, %v7331_v53  ;;  %v2427_v1 = vsel %vm791_vm1, %v6110_v46, %v7334_v44 }
 0xa22   : > { %v6117_v9 = vpack.i.bf16 %v2428_v36, %v2427_v1  ;;  %v2580_v36 = vpop.f32.mrf.mxu0 }
 0xa24   : > { %6118 = vrot.lane.b32.xlu0 %v6117_v9, %s8481_s26  ;;  %6128 = vrot.lane.b32.xlu2 %v6117_v9, %s8480_s22 }
 0xa25   : > { %6138 = vrot.lane.b32.xlu1 %v6117_v9, %s8482_s25 }
 0xa2c   : > { %6143 = vrot.lane.b32.xlu2 %v6117_v9, %s8483_s29  ;;  %6133 = vrot.lane.b32.xlu0 %v6122_v42, %s8480_s22 }
 0xa2d   : > { %6153 = vrot.lane.b32.xlu1 %v6122_v42, %s8483_s29 }
 0xa34   : > { %6148 = vrot.lane.b32.xlu0 %v6122_v42, %s8482_s25  ;;  %2720 = vperm.xlu2 %6157, %v7438_v24  }
 0xa35   : > { %2730 = vperm.xlu1 %6159, %v7433_v13  }
 0xa3c   : > { %2725 = vperm.xlu0 %6158, %v7428_v32   ;;  %2735 = vperm.xlu2 %6157, %v7451_v23  }
 0xa3d   : > { %6161 = vset.pattern.permute.xlu1 %v6507_v15 }
 0xa44   : > { %6163 = vset.pattern.permute.xlu0 %v6508_v16  ;;  %6160 = vset.pattern.permute.xlu2 %v6507_v15 }
 0xa6e   : > { %v6124_v6 = vpop.permute.xlu1 %6123 }
 0xa6f   : > { %v6126_v45 = vunpack.i.h.bf16 %v6124_v6  ;;  %v6125_v17 = vunpack.i.l.bf16 %v6124_v6 }
 0xa71   : > { %v5401_v54 = vpack.c.bf16 %v6126_v45, %v6125_v17 }
 0xa7e   : > { %v6129_v52 = vpop.permute.xlu2 %6128 }
 0xa7f   : > { %v6131_v38 = vunpack.i.h.bf16 %v6129_v52  ;;  %v6130_v21 = vunpack.i.l.bf16 %v6129_v52 }
 0xa81   : > { %v5414_v8 = vpack.c.bf16 %v6131_v38, %v6130_v21 }
 0xa83   : > { %5415 = vmatpush.bf16.msk.msrb.mxu3 %vm6772_vm7, %v5414_v8  ;;  %v2582_v8 = vpop.f32.mrf.mxu0 }
 0xa86   : > { %v6144_v12 = vpop.permute.xlu2 %6143 }
 0xa87   : > { %v6146_v35 = vunpack.i.h.bf16 %v6144_v12  ;;  %v6145_v57 = vunpack.i.l.bf16 %v6144_v12 }
 0xa89   : > { %v5448_v26 = vpack.c.bf16 %v6146_v35, %v6145_v57 }
 0xa8b   : > { %5449 = vmatpush.bf16.msk.msrb.mxu1 %vm6776_vm8, %v5448_v26 }
 0xa8e   : > { %v2721_v57 = vpop.permute.xlu2 %2720 }
 0xa96   : > { %v6119_v22 = vpop.permute.xlu0 %6118 }
 0xa97   : > { %v6121_v56 = vunpack.i.h.bf16 %v6119_v22  ;;  %v6120_v39 = vunpack.i.l.bf16 %v6119_v22  ;;  %v6139_v59 = vpop.permute.xlu1 %6138 }
 0xa98   : > { %v6141_v40 = vunpack.i.h.bf16 %v6139_v59  ;;  %v6140_v62 = vunpack.i.l.bf16 %v6139_v59  ;;  %v2585_v59 = vpop.f32.mrf.mxu0 }
 0xa99   : > { %v5398_v61 = vpack.c.bf16 %v6121_v56, %v6120_v39 }
 0xa9a   : > { %v5468_v14 = vpack.c.bf16 %v6141_v40, %v6140_v62 }
 0xa9b   : > { %5399 = vmatpush.bf16.msk.msrb.mxu2 %vm6739_vm4, %v5398_v61 }
 0xa9e   : > { %v6134_v20 = vpop.permute.xlu0 %6133 }
 0xa9f   : > { %v6136_v63 = vunpack.i.h.bf16 %v6134_v20  ;;  %v6135_v4 = vunpack.i.l.bf16 %v6134_v20  ;;  %v6154_v18 = vpop.permute.xlu1 %6153  ;;  %5402 = vmatpush.bf16.msk.msrb.mxu2 %vm6739_vm4, %v5401_v54 }
 0xaa0   : > { %v6156_v28 = vunpack.i.h.bf16 %v6154_v18  ;;  %v6155_v30 = vunpack.i.l.bf16 %v6154_v18 }
 0xaa1   : > { %v5417_v5 = vpack.c.bf16 %v6136_v63, %v6135_v4 }
 0xaa2   : > { %v5451_v0 = vpack.c.bf16 %v6156_v28, %v6155_v30  ;;  %5403 = vmatmul.msk.bf16.vlgmr.msrb.gmra.mxu2 %vm730_vm2, %v5805_v25  ;;  %v2587_v28 = vpop.f32.mrf.mxu0 }
 0xaa3   : > { %5469 = vmatpush.bf16.msk.msra.mxu2 %vm6803_vm10, %v5468_v14  ;;  %5418 = vmatpush.bf16.msk.msrb.mxu3 %vm6772_vm7, %v5417_v5 }
 0xaa4   : > { %5452 = vmatpush.bf16.msk.msrb.mxu1 %vm6776_vm8, %v5451_v0 }
 0xaa6   : > { %v6149_v47 = vpop.permute.xlu0 %6148  ;;  %5419 = vmatmul.msk.bf16.vlgmr.msrb.gmra.mxu3 %vm730_vm2, %v5803_v60 }
 0xaa7   : > { %v6151_v58 = vunpack.i.h.bf16 %v6149_v47  ;;  %v6150_v49 = vunpack.i.l.bf16 %v6149_v47  ;;  %5453 = vmatmul.msk.bf16.vlgmr.msrb.gmra.mxu1 %vm730_vm2, %v5809_v51  ;;  %v2731_v5 = vpop.permute.xlu1 %2730 }
 0xaa9   : > { %v5471_v29 = vpack.c.bf16 %v6151_v58, %v6150_v49 }
 0xaab   : > { %5472 = vmatpush.bf16.msk.msra.mxu2 %vm6803_vm10, %v5471_v29 }
 0xaae   : > { %v2726_v40 = vpop.permute.xlu0 %2725 }
 0xab2   : > { %5404 = vmatmul.msk.bf16.gmra.mxu2 %vm730_vm2, %v5806_v31 }
 0xab6   : > { %5420 = vmatmul.msk.bf16.gmra.mxu3 %vm730_vm2, %v5804_v19  ;;  %v2736_v19 = vpop.permute.xlu2 %2735 }
 0xab7   : > { %5454 = vmatmul.msk.bf16.gmra.mxu1 %vm730_vm2, %v5810_v43 }
 0xac2   : > { %5473 = vmatmul.msk.bf16.vlgmr.msra.gmra.mxu2 %vm730_vm2, %v5811_v10 }
 0xad2   : > { %5474 = vmatmul.msk.bf16.gmra.mxu2 %vm730_vm2, %v5812_v27 }
 0xb24   : > { %v2642_v1 = vpop.f32.mrf.mxu1 }
 0xb25   : > { %v2503_v42 = vpop.f32.mrf.mxu2 }
 0xb29   : > { %v2538_v55 = vpop.f32.mrf.mxu3 }
 0xb2a   : > { %v2539_v9 = vadd.f32 %v2538_v55, %v2503_v42 }
 0xb2c   : > { %v2590_v21 = vadd.f32 %v2580_v36, %v2539_v9  ;;  %v2644_v26 = vpop.f32.mrf.mxu1 }
 0xb2d   : > { %v2505_v48 = vpop.f32.mrf.mxu2 }
 0xb2e   : > { %v2652_v12 = vadd.f32 %v2642_v1, %v2590_v21 }
 0xb31   : > { %v2540_v52 = vpop.f32.mrf.mxu3 }
 0xb32   : > { %v2541_v35 = vadd.f32 %v2540_v52, %v2505_v48 }
 0xb34   : > { %v2591_v56 = vadd.f32 %v2582_v8, %v2541_v35  ;;  %v2647_v54 = vpop.f32.mrf.mxu1 }
 0xb35   : > { %v2508_v46 = vpop.f32.mrf.mxu2 }
 0xb36   : > { %v2653_v17 = vadd.f32 %v2644_v26, %v2591_v56 }
 0xb39   : > { %v2543_v22 = vpop.f32.mrf.mxu3 }
 0xb3a   : > { %v2544_v61 = vadd.f32 %v2543_v22, %v2508_v46 }
 0xb3c   : > { %v2592_v14 = vadd.f32 %v2585_v59, %v2544_v61  ;;  %v2649_v47 = vpop.f32.mrf.mxu1 }
 0xb3d   : > { %v2510_v38 = vpop.f32.mrf.mxu2 }
 0xb3e   : > { %v2654_v4 = vadd.f32 %v2647_v54, %v2592_v14  ;;  %v694_v54 = vld [vmem:[%s6968_s2 + $0x30] sm:$0xff] }
 0xb41   : > { %v2545_v25 = vpop.f32.mrf.mxu3 }
 0xb42   : > { %v2546_v18 = vadd.f32 %v2545_v25, %v2510_v38 }
 0xb44   : > { %v2593_v60 = vadd.f32 %v2587_v28, %v2546_v18 }
 0xb45   : > { %v2704_v34 = vpop.f32.mrf.mxu2 }
 0xb46   : > { %v2714_v6 = vadd.f32 %v2704_v34, %v2652_v12  ;;  %v2655_v49 = vadd.f32 %v2649_v47, %v2593_v60 }
 0xb48   : > { %v2738_v39 = vadd.f32 %v2721_v57, %v2714_v6 }
 0xb4a   : > { %v2742_v45 = vsel %vm730_vm2, %v2738_v39, 0.0 }
 0xb4b   : > { %2743 = vadd.xlane.f32.xlu1 %v2742_v45 }
 0xb4d   : > { %v2706_v2 = vpop.f32.mrf.mxu2 }
 0xb4e   : > { %v2715_v62 = vadd.f32 %v2706_v2, %v2653_v17 }
 0xb50   : > { %v2739_v20 = vadd.f32 %v2726_v40, %v2715_v62 }
 0xb52   : > { %v2745_v63 = vsel %vm730_vm2, %v2739_v20, 0.0 }
 0xb53   : > { %2746 = vadd.xlane.f32.xlu2 %v2745_v63 }
 0xb55   : > { %v2709_v30 = vpop.f32.mrf.mxu2 }
 0xb56   : > { %v2716_v0 = vadd.f32 %v2709_v30, %v2654_v4 }
 0xb58   : > { %v2740_v51 = vadd.f32 %v2731_v5, %v2716_v0 }
 0xb5a   : > { %v2748_v58 = vsel %vm730_vm2, %v2740_v51, 0.0 }
 0xb5b   : > { %2749 = vadd.xlane.f32.xlu0 %v2748_v58 }
 0xb5d   : > { %v2711_v29 = vpop.f32.mrf.mxu2 }
 0xb5e   : > { %v2717_v31 = vadd.f32 %v2711_v29, %v2655_v49 }
 0xb60   : > { %v2741_v43 = vadd.f32 %v2736_v19, %v2717_v31 }
 0xb62   : > { %v2751_v10 = vsel %vm730_vm2, %v2741_v43, 0.0 }
 0xb63   : > { %2752 = vadd.xlane.f32.xlu1 %v2751_v10 }
 0xbbe   : > { %v2744_v27 = vpop.xlane.xlu1 %2743 }
 0xbc6   : > { %v2747_v42 = vpop.xlane.xlu2 %2746 }
 0xbc7   : > { %v2754_v55 = vadd.f32 %v2747_v42, %v2744_v27 }
 0xbce   : > { %v2750_v48 = vpop.xlane.xlu0 %2749 }
 0xbcf   : > { %v2755_v46 = vadd.f32 %v2754_v55, %v2750_v48 }
 0xbd6   : > { %v2753_v36 = vpop.xlane.xlu1 %2752 }
 0xbd7   : > { %v2756_v1 = vadd.f32 %v2755_v46, %v2753_v36  ;;  %v695_v46 = vld [vmem:[%s6968_s2 + $0x38] sm:$0xff]  ;;  %v693_v36 = vld [vmem:[%s6968_s2 + $0x28] sm:$0xff] }
 0xbd9   : > { %v2757_v9 = vrot.slane %v2756_v1, 4 }
 0xbdb   : > { %v2758_v52 = vadd.f32 %v2757_v9, %v2756_v1  ;;  %v692_v1 = vld [vmem:[%s6968_s2 + $0x20] sm:$0xff] }
 0xbdd   : > { %v2759_v38 = vrot.slane %v2758_v52, 2 }
 0xbdf   : > { %v2760_v21 = vadd.f32 %v2759_v38, %v2758_v52 }
 0xbe1   : > { %v2761_v8 = vrot.slane %v2760_v21, 1 }
 0xbe3   : > { %v2762_v12 = vadd.f32 %v2761_v8, %v2760_v21 }
 0xbe5   : > { %v2763_v35 = vmul.f32 0.0009765625, %v2762_v12 }
 0xbe7   : > { %v7469_v57 = vsub.f32 %v2740_v51, %v2763_v35  ;;  %v7471_v26 = vsub.f32 %v2739_v20, %v2763_v35  ;;  %v7473_v34 = vsub.f32 %v2738_v39, %v2763_v35  ;;  %v7484_v39 = vsub.f32 %v2741_v43, %v2763_v35 }
 0xbe9   : > { %v2770_v6 = vmul.f32 %v7469_v57, %v7469_v57  ;;  %v2769_v22 = vmul.f32 %v7471_v26, %v7471_v26  ;;  %v2768_v56 = vmul.f32 %v7473_v34, %v7473_v34  ;;  %v2771_v61 = vmul.f32 %v7484_v39, %v7484_v39 }
 0xbeb   : > { %v2778_v59 = vsel %vm730_vm2, %v2770_v6, 0.0  ;;  %v2775_v45 = vsel %vm730_vm2, %v2769_v22, 0.0  ;;  %v2772_v17 = vsel %vm730_vm2, %v2768_v56, 0.0  ;;  %v2781_v2 = vsel %vm730_vm2, %v2771_v61, 0.0 }
 0xbec   : > { %2779 = vadd.xlane.f32.xlu1 %v2778_v59  ;;  %2776 = vadd.xlane.f32.xlu0 %v2775_v45 }
 0xbed   : > { %2773 = vadd.xlane.f32.xlu2 %v2772_v17 }
 0xbf5   : > { %2782 = vadd.xlane.f32.xlu2 %v2781_v2 }
 0xc05   : > { %2846 = vperm.xlu1 %6161, %v7451_v23  }
 0xc0d   : > { %2842 = vperm.xlu2 %6160, %v7433_v13   ;;  %2834 = vperm.xlu1 %6161, %v7438_v24  }
 0xc15   : > { %6162 = vset.pattern.permute.xlu2 %v6506_v11  ;;  %6166 = vset.pattern.permute.xlu1 %v6508_v16 }
 0xc16   : > { %2865 = vperm.xlu2 %6162, %v694_v54  }
 0xc1e   : > { %6165 = vset.pattern.permute.xlu2 %v6507_v15 }
 0xc1f   : > { %2838 = vperm.xlu2 %6165, %v7428_v32  }
 0xc27   : > { %6167 = vset.pattern.permute.xlu2 %v6508_v16 }
 0xc5f   : > { %v2777_v40 = vpop.xlane.xlu0 %2776  ;;  %v2780_v20 = vpop.xlane.xlu1 %2779 }
 0xc60   : > { %v2774_v62 = vpop.xlane.xlu2 %2773 }
 0xc61   : > { %v2784_v14 = vadd.f32 %v2777_v40, %v2774_v62 }
 0xc63   : > { %v2785_v25 = vadd.f32 %v2784_v14, %v2780_v20 }
 0xc68   : > { %v2783_v63 = vpop.xlane.xlu2 %2782 }
 0xc69   : > { %v2786_v4 = vadd.f32 %v2785_v25, %v2783_v63 }
 0xc6b   : > { %v2787_v18 = vrot.slane %v2786_v4, 4 }
 0xc6d   : > { %v2788_v28 = vadd.f32 %v2787_v18, %v2786_v4 }
 0xc6f   : > { %v2789_v30 = vrot.slane %v2788_v28, 2 }
 0xc71   : > { %v2790_v5 = vadd.f32 %v2789_v30, %v2788_v28 }
 0xc73   : > { %v2791_v0 = vrot.slane %v2790_v5, 1 }
 0xc75   : > { %v2792_v60 = vadd.f32 %v2791_v0, %v2790_v5 }
 0xc77   : > { %v2793_v51 = vmul.f32 0.0009765625, %v2792_v60 }
 0xc79   : > { %v2794_v47 = vadd.f32 1e-05, %v2793_v51 }
 0xc7b   : > { %6397 = vrsqrt.f32 %v2794_v47  ;;  %vm2801_vm9 = vweird.f32 %v2794_v47 }
 0xc81   : > { %v6398_v58 = vpop.eup %6397 }
 0xc82   : > { %v2796_v49 = vmul.f32 %v6398_v58, %v2794_v47  ;;  %vm2802_vm6 = vweird.f32 %v6398_v58 }
 0xc83   : > { %vm2803_vm11 = vmor %vm2801_vm9, %vm2802_vm6 }
 0xc84   : > { %v2797_v29 = vmul.f32 %v6398_v58, %v2796_v49 }
 0xc86   : > { %v2798_v31 = vmul.f32 0.5, %v2797_v29 }
 0xc88   : > { %v2799_v19 = vsub.f32 1.5, %v2798_v31 }
 0xc8a   : > { %v2800_v43 = vmul.f32 %v6398_v58, %v2799_v19 }
 0xc8c   : > { %v2804_v10 = vsel %vm2803_vm11, %v6398_v58, %v2800_v43 }
 0xc8d   : > { %v2808_v27 = vmul.f32 %v2804_v10, %v7451_v23  ;;  %v2807_v42 = vmul.f32 %v2804_v10, %v7433_v13  ;;  %v2805_v48 = vmul.f32 %v2804_v10, %v7438_v24  ;;  %v2806_v55 = vmul.f32 %v2804_v10, %v7428_v32  ;;  %v2843_v13 = vpop.permute.xlu2 %2842  ;;  %v2847_v23 = vpop.permute.xlu1 %2846 }
 0xc8f   : > { %2826 = vperm.xlu1 %6166, %v2808_v27   ;;  %2821 = vperm.xlu0 %6163, %v2807_v42  }
 0xc90   : > { %2811 = vperm.xlu2 %6167, %v2805_v48  }
 0xc95   : > { %v2866_v24 = vpop.permute.xlu2 %2865  ;;  %v2835_v52 = vpop.permute.xlu1 %2834 }
 0xc97   : > { %6164 = vset.pattern.permute.xlu0 %v6506_v11  ;;  %2816 = vperm.xlu1 %6166, %v2806_v55  }
 0xc98   : > { %2870 = vperm.xlu0 %6164, %v695_v46   ;;  %6169 = vset.pattern.permute.xlu2 %v6506_v11 }
 0xc99   : > { %2860 = vperm.xlu2 %6169, %v693_v36  }
 0xc9d   : > { %v2839_v9 = vpop.permute.xlu2 %2838 }
 0xc9f   : > { %6168 = vset.pattern.permute.xlu1 %v6506_v11 }
 0xca0   : > { %2855 = vperm.xlu1 %6168, %v692_v1  }
 0xcea   : > { %v2812_v8 = vpop.permute.xlu2 %2811 }
 0xd01   : > { %v2827_v38 = vpop.permute.xlu1 %2826  ;;  %v2822_v32 = vpop.permute.xlu0 %2821 }
 0xd02   : > { %v2831_v21 = vmul.f32 %v2822_v32, %v7469_v57  ;;  %v2832_v35 = vmul.f32 %v2827_v38, %v7484_v39  ;;  %v2861_v57 = vpop.permute.xlu2 %2860  ;;  %v2829_v39 = vmul.f32 %v2812_v8, %v7473_v34 }
 0xd04   : > { %v2851_v12 = vadd.f32 %v2843_v13, %v2831_v21  ;;  %v2852_v59 = vadd.f32 %v2847_v23, %v2832_v35  ;;  %v2849_v18 = vadd.f32 %v2835_v52, %v2829_v39 }
 0xd06   : > { %v7510_v6 = vadd.f32 %v2866_v24, %v2851_v12 }
 0xd08   : > { %v7513_v22 = vmul.f32 0.70710677, %v7510_v6 }
 0xd09   : > { %v2817_v56 = vpop.permute.xlu1 %2816 }
 0xd0a   : > { %v2965_v45 = vmul.f32 %v7513_v22, %v7513_v22  ;;  %v2830_v17 = vmul.f32 %v2817_v56, %v7471_v26  ;;  %v2871_v61 = vpop.permute.xlu0 %2870 }
 0xd0b   : > { %v7518_v2 = vadd.f32 %v2871_v61, %v2852_v59 }
 0xd0c   : > { %v7520_v40 = vmin.f32 %v2965_v45, 16.0  ;;  %v2850_v62 = vadd.f32 %v2839_v9, %v2830_v17 }
 0xd0d   : > { %v7524_v54 = vmul.f32 0.70710677, %v7518_v2 }
 0xd0e   : > { %v2967_v14 = vmul.f32 2.1237322e-06, %v7520_v40  ;;  %v2978_v20 = vmul.f32 3.8918573e-05, %v7520_v40  ;;  %v7528_v25 = vadd.f32 %v2861_v57, %v2850_v62 }
 0xd0f   : > { %v3005_v26 = vmul.f32 %v7524_v54, %v7524_v54 }
 0xd10   : > { %v2968_v63 = vadd.f32 0.00028619796, %v2967_v14  ;;  %v2979_v4 = vadd.f32 0.001143296, %v2978_v20  ;;  %v7535_v30 = vmul.f32 0.70710677, %v7528_v25 }
 0xd11   : > { %v7532_v28 = vmin.f32 %v3005_v26, 16.0 }
 0xd12   : > { %v2969_v34 = vmul.f32 %v2968_v63, %v7520_v40  ;;  %v2980_v5 = vmul.f32 %v2979_v4, %v7520_v40  ;;  %v2856_v0 = vpop.permute.xlu1 %2855  ;;  %v2925_v47 = vmul.f32 %v7535_v30, %v7535_v30 }
 0xd13   : > { %v3007_v60 = vmul.f32 2.1237322e-06, %v7532_v28  ;;  %v3018_v51 = vmul.f32 3.8918573e-05, %v7532_v28  ;;  %v7543_v58 = vadd.f32 %v2856_v0, %v2849_v18 }
 0xd14   : > { %v2970_v49 = vadd.f32 0.0036580483, %v2969_v34  ;;  %v2981_v29 = vadd.f32 0.014752088, %v2980_v5  ;;  %v7545_v43 = vmin.f32 %v2925_v47, 16.0 }
 0xd15   : > { %v3008_v31 = vadd.f32 0.00028619796, %v3007_v60  ;;  %v3019_v19 = vadd.f32 0.001143296, %v3018_v51  ;;  %v7550_v42 = vmul.f32 0.70710677, %v7543_v58 }
 0xd16   : > { %v2971_v10 = vmul.f32 %v2970_v49, %v7520_v40  ;;  %v2982_v27 = vmul.f32 %v2981_v29, %v7520_v40  ;;  %v2938_v46 = vmul.f32 3.8918573e-05, %v7545_v43  ;;  %v2927_v52 = vmul.f32 2.1237322e-06, %v7545_v43 }
 0xd17   : > { %v3009_v48 = vmul.f32 %v3008_v31, %v7532_v28  ;;  %v3020_v55 = vmul.f32 %v3019_v19, %v7532_v28  ;;  %v2885_v1 = vmul.f32 %v7550_v42, %v7550_v42 }
 0xd18   : > { %v2983_v36 = vadd.f32 0.112945676, %v2982_v27  ;;  %v2972_v23 = vadd.f32 0.05243302, %v2971_v10  ;;  %v2939_v38 = vadd.f32 0.001143296, %v2938_v46 }
 0xd19   : > { %v3010_v13 = vadd.f32 0.0036580483, %v3009_v48  ;;  %v3021_v24 = vadd.f32 0.014752088, %v3020_v55  ;;  %v7561_v12 = vmin.f32 %v2885_v1, 16.0 }
 0xd1a   : > { %v2984_v9 = vmul.f32 %v2983_v36, %v7520_v40  ;;  %v2940_v8 = vmul.f32 %v2939_v38, %v7545_v43  ;;  %v2973_v59 = vmul.f32 %v2972_v23, %v7520_v40  ;;  %v2928_v17 = vadd.f32 0.00028619796, %v2927_v52 }
 0xd1b   : > { %v3022_v32 = vmul.f32 %v3021_v24, %v7532_v28  ;;  %v3011_v35 = vmul.f32 %v3010_v13, %v7532_v28  ;;  %v2887_v14 = vmul.f32 2.1237322e-06, %v7561_v12  ;;  %v2898_v18 = vmul.f32 3.8918573e-05, %v7561_v12 }
 0xd1c   : > { %v2985_v21 = vadd.f32 0.4994258, %v2984_v9  ;;  %v2941_v61 = vadd.f32 0.014752088, %v2940_v8  ;;  %v2974_v63 = vadd.f32 0.18741608, %v2973_v59  ;;  %v2929_v4 = vmul.f32 %v2928_v17, %v7545_v43 }
 0xd1d   : > { %v3023_v56 = vadd.f32 0.112945676, %v3022_v32  ;;  %v3012_v20 = vadd.f32 0.05243302, %v3011_v35  ;;  %v2888_v0 = vadd.f32 0.00028619796, %v2887_v14 }
 0xd1e   : > { %v2986_v45 = vmul.f32 %v2985_v21, %v7520_v40  ;;  %v2942_v39 = vmul.f32 %v2941_v61, %v7545_v43  ;;  %v2975_v47 = vmul.f32 %v2974_v63, %v7520_v40  ;;  %v2930_v49 = vadd.f32 0.0036580483, %v2929_v4 }
 0xd1f   : > { %v3024_v57 = vmul.f32 %v3023_v56, %v7532_v28  ;;  %v3013_v60 = vmul.f32 %v3012_v20, %v7532_v28  ;;  %v2899_v31 = vadd.f32 0.001143296, %v2898_v18  ;;  %v2889_v27 = vmul.f32 %v2888_v0, %v7561_v12 }
 0xd20   : > { %v2987_v62 = vadd.f32 1.0, %v2986_v45  ;;  %v2943_v5 = vadd.f32 0.112945676, %v2942_v39  ;;  %v2976_v36 = vadd.f32 1.1283791, %v2975_v47  ;;  %v2931_v1 = vmul.f32 %v2930_v49, %v7545_v43 }
 0xd21   : > { %v3025_v26 = vadd.f32 0.4994258, %v3024_v57  ;;  %v3014_v55 = vadd.f32 0.18741608, %v3013_v60  ;;  %v2900_v46 = vmul.f32 %v2899_v31, %v7561_v12  ;;  %v2890_v38 = vadd.f32 0.0036580483, %v2889_v27 }
 0xd22   : > { %6399 = vrcp.f32 %v2987_v62  ;;  %v2944_v29 = vmul.f32 %v2943_v5, %v7545_v43  ;;  %v2997_v40 = vand.u32 2147483647, %v2987_v62  ;;  %v2999_v9 = vand.u32 2147483648, %v2987_v62 }
 0xd23   : > { %v3026_v34 = vmul.f32 %v3025_v26, %v7532_v28  ;;  %v2901_v23 = vadd.f32 0.014752088, %v2900_v46  ;;  %v3015_v8 = vmul.f32 %v3014_v55, %v7532_v28  ;;  %v2932_v59 = vadd.f32 0.05243302, %v2931_v1 }
 0xd24   : > { %v2945_v10 = vadd.f32 0.4994258, %v2944_v29  ;;  %v2977_v45 = vmul.f32 %v2976_v36, %v7513_v22  ;;  %vm2993_vm13 = vweird.f32 %v2987_v62  ;;  %vm2998_vm14 = vcmp.eq.f32.partialorder %v2997_v40, 8.507059e+37 }
 0xd25   : > { %v3027_v51 = vadd.f32 1.0, %v3026_v34  ;;  %v2902_v35 = vmul.f32 %v2901_v23, %v7561_v12  ;;  %v3000_v61 = vor.u32 1.1754944e-38, %v2999_v9  ;;  %v2891_v39 = vmul.f32 %v2890_v38, %v7561_v12 }
 0xd26   : > { %v2946_v13 = vmul.f32 %v2945_v10, %v7545_v43  ;;  %v3016_v26 = vadd.f32 1.1283791, %v3015_v8  ;;  %v2933_v22 = vmul.f32 %v2932_v59, %v7545_v43  ;;  %v2880_v38 = vmul.f32 0.5, %v7518_v2 }
 0xd27   : > { %6401 = vrcp.f32 %v3027_v51  ;;  %v2903_v14 = vadd.f32 0.112945676, %v2902_v35  ;;  %v3037_v28 = vand.u32 2147483647, %v3027_v51  ;;  %v3039_v63 = vand.u32 2147483648, %v3027_v51 }
 0xd28   : > { %v6400_v19 = vpop.eup %6399  ;;  %v7579_v52 = vadd.f32 1.0, %v2946_v13  ;;  %vm3033_vm3 = vweird.f32 %v3027_v51  ;;  %v2892_v60 = vadd.f32 0.05243302, %v2891_v39  ;;  %v3017_v49 = vmul.f32 %v3016_v26, %v7524_v54 }
 0xd29   : > { %v2989_v48 = vmul.f32 %v6400_v19, %v2987_v62  ;;  %vm2994_vm12 = vweird.f32 %v6400_v19  ;;  %v2904_v34 = vmul.f32 %v2903_v14, %v7561_v12  ;;  %v3040_v29 = vor.u32 1.1754944e-38, %v3039_v63 }
 0xd2a   : > { %6403 = vrcp.f32 %v7579_v52  ;;  %vm2995_vm15 = vmor %vm2993_vm13, %vm2994_vm12  ;;  %vm3038_vm6 = vcmp.eq.f32.partialorder %v3037_v28, 8.507059e+37  ;;  %v2934_v55 = vadd.f32 0.18741608, %v2933_v22  ;;  %v2893_v1 = vmul.f32 %v2892_v60, %v7561_v12 }
 0xd2b   : > { %v2990_v24 = vsub.f32 1.0, %v2989_v48  ;;  %v2905_v47 = vadd.f32 0.4994258, %v2904_v34  ;;  %v2879_v54 = vmul.f32 0.5, %v7510_v6  ;;  %vm2953_vm11 = vweird.f32 %v7579_v52 }
 0xd2c   : > { %v2935_v23 = vmul.f32 %v2934_v55, %v7545_v43  ;;  %v2894_v8 = vadd.f32 0.18741608, %v2893_v1  ;;  %v2957_v35 = vand.u32 2147483647, %v7579_v52 }
 0xd2d   : > { %v6402_v32 = vpop.eup %6401  ;;  %v2991_v21 = vmul.f32 %v6400_v19, %v2990_v24  ;;  %v2906_v27 = vmul.f32 %v2905_v47, %v7561_v12 }
 0xd2e   : > { %v3029_v56 = vmul.f32 %v6402_v32, %v3027_v51  ;;  %vm3034_vm0 = vweird.f32 %v6402_v32  ;;  %vm2958_vm13 = vcmp.eq.f32.partialorder %v2957_v35, 8.507059e+37 }
 0xd2f   : > { %v2992_v17 = vadd.f32 %v6400_v19, %v2991_v21  ;;  %vm3035_vm5 = vmor %vm3033_vm3, %vm3034_vm0  ;;  %v2907_v51 = vadd.f32 1.0, %v2906_v27  ;;  %v2959_v21 = vand.u32 2147483648, %v7579_v52 }
 0xd30   : > { %v3030_v57 = vsub.f32 1.0, %v3029_v56  ;;  %v6404_v62 = vpop.eup %6403 }
 0xd31   : > { %v2996_v20 = vsel %vm2995_vm15, %v6400_v19, %v2992_v17  ;;  %v2949_v31 = vmul.f32 %v6404_v62, %v7579_v52  ;;  %6405 = vrcp.f32 %v2907_v51  ;;  %vm2954_vm9 = vweird.f32 %v6404_v62 }
 0xd32   : > { %v3001_v4 = vsel %vm2998_vm14, %v3000_v61, %v2996_v20  ;;  %v3031_v18 = vmul.f32 %v6402_v32, %v3030_v57  ;;  %vm2955_vm12 = vmor %vm2953_vm11, %vm2954_vm9  ;;  %v2960_v43 = vor.u32 1.1754944e-38, %v2959_v21  ;;  %v2895_v61 = vmul.f32 %v2894_v8, %v7561_v12 }
 0xd33   : > { %v3002_v5 = vmul.f32 %v3001_v4, %v2977_v45  ;;  %v2950_v46 = vsub.f32 1.0, %v2949_v31  ;;  %v2936_v45 = vadd.f32 1.1283791, %v2935_v23  ;;  %v2919_v28 = vand.u32 2147483648, %v2907_v51 }
 0xd34   : > { %v3032_v0 = vadd.f32 %v6402_v32, %v3031_v18  ;;  %v2896_v26 = vadd.f32 1.1283791, %v2895_v61  ;;  %v2917_v18 = vand.u32 2147483647, %v2907_v51  ;;  %vm2913_vm15 = vweird.f32 %v2907_v51 }
 0xd35   : > { %v5477_v19 = vclamps-f32 %v3002_v5, 1.0  ;;  %v2951_v13 = vmul.f32 %v6404_v62, %v2950_v46  ;;  %v2937_v52 = vmul.f32 %v2936_v45, %v7535_v30  ;;  %v2920_v34 = vor.u32 1.1754944e-38, %v2919_v28 }
 0xd36   : > { %v3036_v10 = vsel %vm3035_vm5, %v6402_v32, %v3032_v0  ;;  %v2897_v22 = vmul.f32 %v2896_v26, %v7550_v42  ;;  %vm2918_vm3 = vcmp.eq.f32.partialorder %v2917_v18, 8.507059e+37 }
 0xd37   : > { %v3041_v48 = vsel %vm3038_vm6, %v3040_v29, %v3036_v10  ;;  %v3047_v24 = vadd.f32 1.0, %v5477_v19  ;;  %v2952_v9 = vadd.f32 %v6404_v62, %v2951_v13  ;;  %v6406_v17 = vpop.eup %6405  ;;  %v2877_v29 = vmul.f32 0.5, %v7543_v58 }
 0xd38   : > { %v3042_v36 = vmul.f32 %v3041_v48, %v3017_v49  ;;  %v2909_v39 = vmul.f32 %v6406_v17, %v2907_v51  ;;  %vm2914_vm14 = vweird.f32 %v6406_v17  ;;  %v2878_v49 = vmul.f32 0.5, %v7528_v25 }
 0xd39   : > { %v7598_v56 = vmul.f32 %v3047_v24, %v2879_v54  ;;  %v2956_v6 = vsel %vm2955_vm12, %v6404_v62, %v2952_v9  ;;  %vm2915_vm0 = vmor %vm2913_vm15, %vm2914_vm14 }
 0xd3a   : > { %v5478_v40 = vclamps-f32 %v3042_v36, 1.0  ;;  %v2961_v14 = vsel %vm2958_vm13, %v2960_v43, %v2956_v6  ;;  %v2910_v20 = vsub.f32 1.0, %v2909_v39 }
 0xd3b   : > { %v2962_v63 = vmul.f32 %v2961_v14, %v2937_v52 }
 0xd3c   : > { %v3048_v32 = vadd.f32 1.0, %v5478_v40  ;;  %v2911_v4 = vmul.f32 %v6406_v17, %v2910_v20 }
 0xd3d   : > { %v5476_v5 = vclamps-f32 %v2962_v63, 1.0 }
 0xd3e   : > { %v3052_v59 = vmul.f32 %v3048_v32, %v2880_v38  ;;  %v2912_v12 = vadd.f32 %v6406_v17, %v2911_v4 }
 0xd3f   : > { %v3046_v47 = vadd.f32 1.0, %v5476_v5 }
 0xd40   : > { %v6170_v2 = vpack.i.bf16 %v3052_v59, %v7598_v56  ;;  %v3197_v57 = vpack.c.bf16 %v3052_v59, %v7598_v56  ;;  %v2916_v62 = vsel %vm2915_vm0, %v6406_v17, %v2912_v12 }
 0xd41   : > { %v2921_v0 = vsel %vm2918_vm3, %v2920_v34, %v2916_v62  ;;  %v3050_v19 = vmul.f32 %v3046_v47, %v2878_v49 }
 0xd42   : > { %6171 = vrot.lane.b32.xlu0 %v6170_v2, %s8487_s5  ;;  %3225 = vmatpush.bf16.msra.mxu1 %v3197_v57  ;;  %v2922_v60 = vmul.f32 %v2921_v0, %v2897_v22  ;;  %v7643_v2 = vld [vmem:[%s8427_s14 + $0x18] sm:$0xff]  ;;  %v7651_v57 = vld [vmem:[%s8427_s14 + $0x10] sm:$0xff] }
 0xd44   : > { %v5475_v30 = vclamps-f32 %v2922_v60, 1.0  ;;  %v5817_v60 = vld [vmem:[%s8426_s13 + $0x20] sm:$0xff] }
 0xd46   : > { %v3045_v31 = vadd.f32 1.0, %v5475_v30  ;;  %v5815_v30 = vld [vmem:[%s8426_s13 + $0x10] sm:$0xff] }
 0xd48   : > { %v3049_v10 = vmul.f32 %v3045_v31, %v2877_v29 }
 0xd4a   : > { %v6175_v27 = vpack.i.bf16 %v3050_v19, %v3049_v10  ;;  %v3196_v48 = vpack.c.bf16 %v3050_v19, %v3049_v10 }
 0xd4c   : > { %6176 = vrot.lane.b32.xlu1 %v6175_v27, %s8487_s5  ;;  %3226 = vmatpush.bf16.msra.mxu1 %v3196_v48 }
 0xd4f   : > { %5527 = vmatmul.msk.bf16.vlgmr.msra.gmra.mxu1 %vm730_vm2, %v5817_v60 }
 0xdb4   : > { %v6172_v55 = vpop.permute.xlu0 %6171 }
 0xdb5   : > { %v6174_v42 = vunpack.i.h.bf16 %v6172_v55  ;;  %v6173_v46 = vunpack.i.l.bf16 %v6172_v55  ;;  %v5818_v55 = vld [vmem:[%s8426_s13 + $0x28] sm:$0xff] }
 0xdb6   : > { %5528 = vmatmul.msk.bf16.gmra.mxu1 %vm730_vm2, %v5818_v55 }
 0xdb7   : > { %v3061_v36 = vsel %vm791_vm1, %v6173_v46, %v7598_v56  ;;  %v3064_v1 = vsel %vm791_vm1, %v6174_v42, %v3052_v59  ;;  %v5816_v46 = vld [vmem:[%s8426_s13 + $0x18] sm:$0xff] }
 0xdb8   : > { %v6180_v51 = vpack.i.bf16 %v3064_v1, %v3061_v36 }
 0xdba   : > { %6181 = vrot.lane.b32.xlu2 %v6180_v51, %s8487_s5 }
 0xdbe   : > { %v6177_v25 = vpop.permute.xlu1 %6176 }
 0xdbf   : > { %v6179_v58 = vunpack.i.h.bf16 %v6177_v25  ;;  %v6178_v13 = vunpack.i.l.bf16 %v6177_v25 }
 0xdc1   : > { %v3055_v24 = vsel %vm791_vm1, %v6178_v13, %v3049_v10  ;;  %v3058_v40 = vsel %vm791_vm1, %v6179_v58, %v3050_v19 }
 0xdc2   : > { %v6185_v54 = vpack.i.bf16 %v3058_v40, %v3055_v24 }
 0xdc4   : > { %6186 = vrot.lane.b32.xlu0 %v6185_v54, %s8487_s5  ;;  %v5819_v54 = vld [vmem:[%s8426_s13 + $0x30] sm:$0xff] }
 0xe14   : > { %v6182_v23 = vpop.permute.xlu2 %6181 }
 0xe15   : > { %v6184_v9 = vunpack.i.h.bf16 %v6182_v23  ;;  %v6183_v38 = vunpack.i.l.bf16 %v6182_v23  ;;  %v5813_v23 = vld [vmem:[%s8426_s13] sm:$0xff] }
 0xe17   : > { %v3076_v32 = vsel %vm791_vm1, %v6184_v9, %v3052_v59  ;;  %v3075_v21 = vsel %vm791_vm1, %v6183_v38, %v7598_v56  ;;  %v7630_v56 = vld [vmem:[%s8427_s14] sm:$0xff]  ;;  %v7635_v59 = vld [vmem:[%s8427_s14 + $0x8] sm:$0xff]  ;;  %v5820_v38 = vld [vmem:[%s8426_s13 + $0x38] sm:$0xff] }
 0xe18   : > { %v6200_v8 = vpack.i.bf16 %v3076_v32, %v3075_v21  ;;  %v5821_v9 = vld [vmem:[%s8426_s13 + $0x40] sm:$0xff]  ;;  %v5814_v32 = vld [vmem:[%s8426_s13 + $0x8] sm:$0xff] }
 0xe19   : > { %v5822_v21 = vld [vmem:[%s8426_s13 + $0x48] sm:$0xff] }
 0xe1a   : > { %6201 = vrot.lane.b32.xlu0 %v6200_v8, %s8483_s29  ;;  %6191 = vrot.lane.b32.xlu1 %v6200_v8, %s8481_s26 }
 0xe22   : > { %6206 = vrot.lane.b32.xlu1 %v6200_v8, %s8480_s22 }
 0xe36   : > { %v6187_v35 = vpop.permute.xlu0 %6186 }
 0xe37   : > { %v6189_v45 = vunpack.i.h.bf16 %v6187_v35  ;;  %v6188_v6 = vunpack.i.l.bf16 %v6187_v35 }
 0xe39   : > { %v3074_v17 = vsel %vm791_vm1, %v6189_v45, %v3050_v19  ;;  %v3073_v43 = vsel %vm791_vm1, %v6188_v6, %v3049_v10 }
 0xe3a   : > { %v6195_v61 = vpack.i.bf16 %v3074_v17, %v3073_v43  ;;  %v3228_v17 = vpop.f32.mrf.mxu1 }
 0xe3c   : > { %6196 = vrot.lane.b32.xlu2 %v6195_v61, %s8481_s26  ;;  %6216 = vrot.lane.b32.xlu0 %v6195_v61, %s8483_s29 }
 0xe3d   : > { %6221 = vrot.lane.b32.xlu1 %v6195_v61, %s8480_s22 }
 0xe44   : > { %6211 = vrot.lane.b32.xlu2 %v6200_v8, %s8482_s25  ;;  %3368 = vperm.xlu0 %6164, %v7630_v56  }
 0xe45   : > { %3373 = vperm.xlu1 %6168, %v7635_v59  }
 0xe4c   : > { %6226 = vrot.lane.b32.xlu2 %v6195_v61, %s8482_s25  ;;  %3383 = vperm.xlu0 %6164, %v7643_v2  }
 0xe4d   : > { %6231 = vset.pattern.permute.xlu1 %v6507_v15 }
 0xe54   : > { %3378 = vperm.xlu2 %6169, %v7651_v57   ;;  %6232 = vset.pattern.permute.xlu0 %v6508_v16 }
 0xe5c   : > { %6230 = vset.pattern.permute.xlu2 %v6507_v15 }
 0xe8c   : > { %v6202_v39 = vpop.permute.xlu0 %6201  ;;  %v6192_v14 = vpop.permute.xlu1 %6191 }
 0xe8d   : > { %v6204_v52 = vunpack.i.h.bf16 %v6202_v39  ;;  %v6203_v20 = vunpack.i.l.bf16 %v6202_v39  ;;  %v6194_v26 = vunpack.i.h.bf16 %v6192_v14  ;;  %v6193_v28 = vunpack.i.l.bf16 %v6192_v14 }
 0xe8f   : > { %v5542_v63 = vpack.c.bf16 %v6204_v52, %v6203_v20  ;;  %v5492_v4 = vpack.c.bf16 %v6194_v26, %v6193_v28  ;;  %v3230_v20 = vpop.f32.mrf.mxu1 }
 0xe91   : > { %5493 = vmatpush.bf16.msk.msra.mxu3 %vm6739_vm4, %v5492_v4  ;;  %5543 = vmatpush.bf16.msk.msrb.mxu2 %vm6776_vm8, %v5542_v63 }
 0xe94   : > { %v6207_v18 = vpop.permute.xlu1 %6206 }
 0xe95   : > { %v6209_v12 = vunpack.i.h.bf16 %v6207_v18  ;;  %v6208_v34 = vunpack.i.l.bf16 %v6207_v18 }
 0xe96   : > { %v6197_v22 = vpop.permute.xlu2 %6196 }
 0xe97   : > { %v5508_v5 = vpack.c.bf16 %v6209_v12, %v6208_v34  ;;  %v6199_v62 = vunpack.i.h.bf16 %v6197_v22  ;;  %v6198_v0 = vunpack.i.l.bf16 %v6197_v22  ;;  %v3233_v60 = vpop.f32.mrf.mxu1 }
 0xe99   : > { %5509 = vmatpush.bf16.msk.msra.mxu0 %vm6772_vm7, %v5508_v5  ;;  %v5495_v47 = vpack.c.bf16 %v6199_v62, %v6198_v0 }
 0xe9b   : > { %5496 = vmatpush.bf16.msk.msra.mxu3 %vm6739_vm4, %v5495_v47 }
 0xe9e   : > { %v6212_v49 = vpop.permute.xlu2 %6211  ;;  %5497 = vmatmul.msk.bf16.vlgmr.msra.gmra.mxu3 %vm730_vm2, %v5815_v30 }
 0xe9f   : > { %v6214_v29 = vunpack.i.h.bf16 %v6212_v49  ;;  %v6213_v31 = vunpack.i.l.bf16 %v6212_v49 }
 0xea1   : > { %v5562_v19 = vpack.c.bf16 %v6214_v29, %v6213_v31 }
 0xea3   : > { %5563 = vmatpush.bf16.msk.msrb.mxu3 %vm6803_vm10, %v5562_v19 }
 0xea6   : > { %v6227_v10 = vpop.permute.xlu2 %6226 }
 0xea7   : > { %v6229_v27 = vunpack.i.h.bf16 %v6227_v10  ;;  %v6228_v48 = vunpack.i.l.bf16 %v6227_v10 }
 0xea9   : > { %v5565_v42 = vpack.c.bf16 %v6229_v27, %v6228_v48 }
 0xeab   : > { %5566 = vmatpush.bf16.msk.msrb.mxu3 %vm6803_vm10, %v5565_v42 }
 0xeae   : > { %v6217_v36 = vpop.permute.xlu0 %6216  ;;  %5498 = vmatmul.msk.bf16.gmra.mxu3 %vm730_vm2, %v5816_v46 }
 0xeaf   : > { %v6219_v1 = vunpack.i.h.bf16 %v6217_v36  ;;  %v6218_v51 = vunpack.i.l.bf16 %v6217_v36  ;;  %v6222_v25 = vpop.permute.xlu1 %6221 }
 0xeb0   : > { %v6224_v58 = vunpack.i.h.bf16 %v6222_v25  ;;  %v6223_v13 = vunpack.i.l.bf16 %v6222_v25 }
 0xeb1   : > { %v5545_v24 = vpack.c.bf16 %v6219_v1, %v6218_v51  ;;  %v3379_v1 = vpop.permute.xlu2 %3378  ;;  %v3235_v51 = vpop.f32.mrf.mxu1 }
 0xeb2   : > { %v5511_v40 = vpack.c.bf16 %v6224_v58, %v6223_v13 }
 0xeb3   : > { %5546 = vmatpush.bf16.msk.msrb.mxu2 %vm6776_vm8, %v5545_v24 }
 0xeb4   : > { %5512 = vmatpush.bf16.msk.msra.mxu0 %vm6772_vm7, %v5511_v40 }
 0xeb6   : > { %5547 = vmatmul.msk.bf16.vlgmr.msrb.gmra.mxu2 %vm730_vm2, %v5819_v54  ;;  %v3369_v12 = vpop.permute.xlu0 %3368 }
 0xeb7   : > { %5513 = vmatmul.msk.bf16.vlgmr.msra.gmra.mxu0 %vm730_vm2, %v5813_v23  ;;  %v3374_v29 = vpop.permute.xlu1 %3373 }
 0xebe   : > { %5567 = vmatmul.msk.bf16.vlgmr.msrb.gmra.mxu3 %vm730_vm2, %v5821_v9  ;;  %v3384_v9 = vpop.permute.xlu0 %3383 }
 0xec6   : > { %5548 = vmatmul.msk.bf16.gmra.mxu2 %vm730_vm2, %v5820_v38 }
 0xec7   : > { %5514 = vmatmul.msk.bf16.gmra.mxu0 %vm730_vm2, %v5814_v32 }
 0xece   : > { %5568 = vmatmul.msk.bf16.gmra.mxu3 %vm730_vm2, %v5822_v21 }
 0xf21   : > { %v3151_v8 = vpop.f32.mrf.mxu3 }
 0xf29   : > { %v3153_v35 = vpop.f32.mrf.mxu3 }
 0xf31   : > { %v3156_v45 = vpop.f32.mrf.mxu3 }
 0xf34   : > { %v3186_v6 = vpop.f32.mrf.mxu0 }
 0xf35   : > { %v3187_v39 = vadd.f32 %v3186_v6, %v3151_v8 }
 0xf37   : > { %v3238_v52 = vadd.f32 %v3228_v17, %v3187_v39 }
 0xf39   : > { %v3158_v43 = vpop.f32.mrf.mxu3  ;;  %v3290_v61 = vpop.f32.mrf.mxu2 }
 0xf3a   : > { %v3300_v26 = vadd.f32 %v3290_v61, %v3238_v52 }
 0xf3c   : > { %v3188_v14 = vpop.f32.mrf.mxu0 }
 0xf3d   : > { %v3189_v4 = vadd.f32 %v3188_v14, %v3153_v35 }
 0xf3f   : > { %v3239_v22 = vadd.f32 %v3230_v20, %v3189_v4 }
 0xf41   : > { %v3292_v28 = vpop.f32.mrf.mxu2  ;;  %v3352_v63 = vpop.f32.mrf.mxu3 }
 0xf42   : > { %v3362_v18 = vadd.f32 %v3352_v63, %v3300_v26  ;;  %v3301_v0 = vadd.f32 %v3292_v28, %v3239_v22 }
 0xf44   : > { %v3386_v34 = vadd.f32 %v3369_v12, %v3362_v18  ;;  %v3191_v5 = vpop.f32.mrf.mxu0 }
 0xf45   : > { %v3192_v30 = vadd.f32 %v3191_v5, %v3156_v45 }
 0xf46   : > { %v3390_v62 = vsel %vm730_vm2, %v3386_v34, 0.0 }
 0xf47   : > { %3391 = vadd.xlane.f32.xlu1 %v3390_v62  ;;  %v3240_v10 = vadd.f32 %v3233_v60, %v3192_v30 }
 0xf49   : > { %v3354_v47 = vpop.f32.mrf.mxu3  ;;  %v3295_v31 = vpop.f32.mrf.mxu2 }
 0xf4a   : > { %v3363_v49 = vadd.f32 %v3354_v47, %v3301_v0  ;;  %v3302_v55 = vadd.f32 %v3295_v31, %v3240_v10 }
 0xf4c   : > { %v3387_v19 = vadd.f32 %v3374_v29, %v3363_v49  ;;  %v3193_v48 = vpop.f32.mrf.mxu0 }
 0xf4d   : > { %v3194_v46 = vadd.f32 %v3193_v48, %v3158_v43 }
 0xf4e   : > { %v3393_v27 = vsel %vm730_vm2, %v3387_v19, 0.0 }
 0xf4f   : > { %3394 = vadd.xlane.f32.xlu2 %v3393_v27  ;;  %v3241_v13 = vadd.f32 %v3235_v51, %v3194_v46 }
 0xf51   : > { %v3357_v42 = vpop.f32.mrf.mxu3  ;;  %v3297_v58 = vpop.f32.mrf.mxu2 }
 0xf52   : > { %v3364_v36 = vadd.f32 %v3357_v42, %v3302_v55  ;;  %v3303_v40 = vadd.f32 %v3297_v58, %v3241_v13 }
 0xf54   : > { %v3388_v25 = vadd.f32 %v3379_v1, %v3364_v36 }
 0xf56   : > { %v3396_v24 = vsel %vm730_vm2, %v3388_v25, 0.0 }
 0xf57   : > { %3397 = vadd.xlane.f32.xlu0 %v3396_v24 }
 0xf59   : > { %v3359_v54 = vpop.f32.mrf.mxu3 }
 0xf5a   : > { %v3365_v23 = vadd.f32 %v3359_v54, %v3303_v40 }
 0xf5c   : > { %v3389_v38 = vadd.f32 %v3384_v9, %v3365_v23 }
 0xf5e   : > { %v3399_v32 = vsel %vm730_vm2, %v3389_v38, 0.0 }
 0xf5f   : > { %3400 = vadd.xlane.f32.xlu1 %v3399_v32 }
 0xfba   : > { %v3392_v21 = vpop.xlane.xlu1 %3391 }
 0xfc2   : > { %v3395_v8 = vpop.xlane.xlu2 %3394 }
 0xfc3   : > { %v3402_v45 = vadd.f32 %v3395_v8, %v3392_v21 }
 0xfca   : > { %v3398_v35 = vpop.xlane.xlu0 %3397 }
 0xfcb   : > { %v3403_v6 = vadd.f32 %v3402_v45, %v3398_v35 }
 0xfd2   : > { %v3401_v17 = vpop.xlane.xlu1 %3400 }
 0xfd3   : > { %v3404_v43 = vadd.f32 %v3403_v6, %v3401_v17 }
 0xfd5   : > { %v3405_v61 = vrot.slane %v3404_v43, 4 }
 0xfd7   : > { %v3406_v39 = vadd.f32 %v3405_v61, %v3404_v43 }
 0xfd9   : > { %v3407_v14 = vrot.slane %v3406_v39, 2 }
 0xfdb   : > { %v3408_v52 = vadd.f32 %v3407_v14, %v3406_v39 }
 0xfdd   : > { %v3409_v20 = vrot.slane %v3408_v52, 1 }
 0xfdf   : > { %v3410_v26 = vadd.f32 %v3409_v20, %v3408_v52 }
 0xfe1   : > { %v3411_v28 = vmul.f32 0.0009765625, %v3410_v26 }
 0xfe3   : > { %v7716_v63 = vsub.f32 %v3388_v25, %v3411_v28  ;;  %v7718_v4 = vsub.f32 %v3387_v19, %v3411_v28  ;;  %v3412_v18 = vsub.f32 %v3386_v34, %v3411_v28  ;;  %v7727_v47 = vsub.f32 %v3389_v38, %v3411_v28 }
 0xfe5   : > { %v3418_v12 = vmul.f32 %v7716_v63, %v7716_v63  ;;  %v3417_v5 = vmul.f32 %v7718_v4, %v7718_v4  ;;  %v3416_v22 = vmul.f32 %v3412_v18, %v3412_v18  ;;  %v3419_v34 = vmul.f32 %v7727_v47, %v7727_v47 }
 0xfe7   : > { %v3426_v62 = vsel %vm730_vm2, %v3418_v12, 0.0  ;;  %v3423_v0 = vsel %vm730_vm2, %v3417_v5, 0.0  ;;  %v3420_v60 = vsel %vm730_vm2, %v3416_v22, 0.0  ;;  %v3429_v30 = vsel %vm730_vm2, %v3419_v34, 0.0 }
 0xfe8   : > { %3427 = vadd.xlane.f32.xlu1 %v3426_v62  ;;  %3424 = vadd.xlane.f32.xlu0 %v3423_v0 }
 0xfe9   : > { %3421 = vadd.xlane.f32.xlu2 %v3420_v60 }
 0xff1   : > { %3430 = vadd.xlane.f32.xlu2 %v3429_v30 }
0x1001   : > { %3494 = vperm.xlu1 %6231, %v7643_v2  }
0x1009   : > { %3490 = vperm.xlu2 %6230, %v7651_v57   ;;  %6233 = vset.pattern.permute.xlu1 %v6508_v16 }
0x1011   : > { %6234 = vset.pattern.permute.xlu2 %v6508_v16 }
0x105b   : > { %v3425_v49 = vpop.xlane.xlu0 %3424  ;;  %v3428_v19 = vpop.xlane.xlu1 %3427 }
0x105c   : > { %v3422_v29 = vpop.xlane.xlu2 %3421 }
0x105d   : > { %v3432_v31 = vadd.f32 %v3425_v49, %v3422_v29 }
0x105f   : > { %v3433_v10 = vadd.f32 %v3432_v31, %v3428_v19 }
0x1064   : > { %v3431_v27 = vpop.xlane.xlu2 %3430 }
0x1065   : > { %v3434_v48 = vadd.f32 %v3433_v10, %v3431_v27 }
0x1067   : > { %v3435_v55 = vrot.slane %v3434_v48, 4 }
0x1069   : > { %v3436_v42 = vadd.f32 %v3435_v55, %v3434_v48 }
0x106b   : > { %v3437_v46 = vrot.slane %v3436_v42, 2 }
0x106d   : > { %v3438_v36 = vadd.f32 %v3437_v46, %v3436_v42 }
0x106f   : > { %v3439_v1 = vrot.slane %v3438_v36, 1 }
0x1071   : > { %v3440_v51 = vadd.f32 %v3439_v1, %v3438_v36 }
0x1073   : > { %v3441_v25 = vmul.f32 0.0009765625, %v3440_v51  ;;  %v3495_v61 = vpop.permute.xlu1 %3494 }
0x1075   : > { %v3442_v58 = vadd.f32 1e-05, %v3441_v25 }
0x1077   : > { %6407 = vrsqrt.f32 %v3442_v58  ;;  %vm3449_vm6 = vweird.f32 %v3442_v58 }
0x107d   : > { %v6408_v13 = vpop.eup %6407 }
0x107e   : > { %v3444_v24 = vmul.f32 %v6408_v13, %v3442_v58  ;;  %vm3450_vm5 = vweird.f32 %v6408_v13 }
0x107f   : > { %vm3451_vm9 = vmor %vm3449_vm6, %vm3450_vm5 }
0x1080   : > { %v3445_v40 = vmul.f32 %v6408_v13, %v3444_v24 }
0x1082   : > { %v3446_v54 = vmul.f32 0.5, %v3445_v40 }
0x1084   : > { %v3447_v23 = vsub.f32 1.5, %v3446_v54 }
0x1086   : > { %v3448_v9 = vmul.f32 %v6408_v13, %v3447_v23 }
0x1088   : > { %v3452_v38 = vsel %vm3451_vm9, %v6408_v13, %v3448_v9 }
0x1089   : > { %v3456_v32 = vmul.f32 %v3452_v38, %v7643_v2  ;;  %v3455_v21 = vmul.f32 %v3452_v38, %v7651_v57  ;;  %v3453_v8 = vmul.f32 %v3452_v38, %v7630_v56  ;;  %v3454_v35 = vmul.f32 %v3452_v38, %v7635_v59  ;;  %v3491_v2 = vpop.permute.xlu2 %3490 }
0x108b   : > { %3474 = vperm.xlu1 %6233, %v3456_v32   ;;  %3469 = vperm.xlu0 %6232, %v3455_v21  }
0x108c   : > { %3459 = vperm.xlu2 %6234, %v3453_v8  }
0x1093   : > { %3464 = vperm.xlu1 %6233, %v3454_v35   ;;  %6236 = vset.pattern.permute.xlu0 %v6507_v15 }
0x1094   : > { %6235 = vset.pattern.permute.xlu2 %v6507_v15  ;;  %3486 = vperm.xlu0 %6236, %v7635_v59  }
0x1095   : > { %3482 = vperm.xlu2 %6235, %v7630_v56  }
0x109b   : > { %6299 = vset.pattern.permute.xlu1 %v6506_v11 }
0x109c   : > { %6298 = vset.pattern.permute.xlu0 %v6506_v11 }
0x109d   : > { %6297 = vset.pattern.permute.xlu2 %v6506_v11 }
0x10e6   : > { %v3460_v57 = vpop.permute.xlu2 %3459 }
0x10e7   : > { %v3477_v45 = vmul.f32 %v3460_v57, %v3412_v18 }
0x10ef   : > { %v3483_v6 = vpop.permute.xlu2 %3482 }
0x10f0   : > { %v7747_v17 = vadd.f32 %v3483_v6, %v3477_v45 }
0x10f2   : > { %v7750_v43 = vmul.f32 0.70710677, %v7747_v17 }
0x10f4   : > { %v3509_v59 = vmul.f32 %v7750_v43, %v7750_v43 }
0x10f6   : > { %v7754_v56 = vmin.f32 %v3509_v59, 16.0 }
0x10f8   : > { %v3522_v39 = vmul.f32 3.8918573e-05, %v7754_v56  ;;  %v3511_v30 = vmul.f32 2.1237322e-06, %v7754_v56 }
0x10fa   : > { %v3523_v14 = vadd.f32 0.001143296, %v3522_v39  ;;  %v3512_v48 = vadd.f32 0.00028619796, %v3511_v30 }
0x10fc   : > { %v3524_v52 = vmul.f32 %v3523_v14, %v7754_v56  ;;  %v3513_v24 = vmul.f32 %v3512_v48, %v7754_v56 }
0x10fd   : > { %v3475_v20 = vpop.permute.xlu1 %3474  ;;  %v3470_v26 = vpop.permute.xlu0 %3469 }
0x10fe   : > { %v3525_v28 = vadd.f32 0.014752088, %v3524_v52  ;;  %v3480_v18 = vmul.f32 %v3475_v20, %v7727_v47  ;;  %v3479_v12 = vmul.f32 %v3470_v26, %v7716_v63  ;;  %v3514_v57 = vadd.f32 0.0036580483, %v3513_v24 }
0x1100   : > { %v3526_v5 = vmul.f32 %v3525_v28, %v7754_v56  ;;  %v7761_v22 = vadd.f32 %v3495_v61, %v3480_v18  ;;  %v7763_v62 = vadd.f32 %v3491_v2, %v3479_v12  ;;  %v3515_v28 = vmul.f32 %v3514_v57, %v7754_v56 }
0x1102   : > { %v3527_v0 = vadd.f32 0.112945676, %v3526_v5  ;;  %v7766_v60 = vmul.f32 0.70710677, %v7761_v22  ;;  %v7769_v34 = vmul.f32 0.70710677, %v7763_v62 }
0x1104   : > { %v3528_v49 = vmul.f32 %v3527_v0, %v7754_v56  ;;  %v3629_v63 = vmul.f32 %v7766_v60, %v7766_v60  ;;  %v3589_v47 = vmul.f32 %v7769_v34, %v7769_v34 }
0x1105   : > { %v3465_v29 = vpop.permute.xlu1 %3464 }
0x1106   : > { %v3478_v31 = vmul.f32 %v3465_v29, %v7718_v4  ;;  %v7778_v19 = vmin.f32 %v3629_v63, 16.0  ;;  %v7780_v10 = vmin.f32 %v3589_v47, 16.0  ;;  %v3487_v27 = vpop.permute.xlu0 %3486  ;;  %v3529_v55 = vadd.f32 0.4994258, %v3528_v49 }
0x1108   : > { %v3631_v42 = vmul.f32 2.1237322e-06, %v7778_v19  ;;  %v3642_v46 = vmul.f32 3.8918573e-05, %v7778_v19  ;;  %v3591_v36 = vmul.f32 2.1237322e-06, %v7780_v10  ;;  %v7786_v51 = vadd.f32 %v3487_v27, %v3478_v31 }
0x1109   : > { %v3602_v1 = vmul.f32 3.8918573e-05, %v7780_v10  ;;  %v3530_v13 = vmul.f32 %v3529_v55, %v7754_v56  ;;  %v3516_v31 = vadd.f32 0.05243302, %v3515_v28 }
0x110a   : > { %v3632_v25 = vadd.f32 0.00028619796, %v3631_v42  ;;  %v3643_v58 = vadd.f32 0.001143296, %v3642_v46  ;;  %v3592_v4 = vadd.f32 0.00028619796, %v3591_v36 }
0x110b   : > { %v3603_v9 = vadd.f32 0.001143296, %v3602_v1  ;;  %v7794_v38 = vmul.f32 0.70710677, %v7786_v51  ;;  %v7796_v8 = vadd.f32 1.0, %v3530_v13 }
0x110c   : > { %v3633_v40 = vmul.f32 %v3632_v25, %v7778_v19  ;;  %v3644_v54 = vmul.f32 %v3643_v58, %v7778_v19  ;;  %v3593_v23 = vmul.f32 %v3592_v4, %v7780_v10  ;;  %v3517_v4 = vmul.f32 %v3516_v31, %v7754_v56 }
0x110d   : > { %v3604_v35 = vmul.f32 %v3603_v9, %v7780_v10  ;;  %v3549_v2 = vmul.f32 %v7794_v38, %v7794_v38  ;;  %6409 = vrcp.f32 %v7796_v8  ;;  %vm3537_vm11 = vweird.f32 %v7796_v8 }
0x110e   : > { %v3634_v32 = vadd.f32 0.0036580483, %v3633_v40  ;;  %v3645_v21 = vadd.f32 0.014752088, %v3644_v54  ;;  %v3594_v6 = vadd.f32 0.0036580483, %v3593_v23 }
0x110f   : > { %v3605_v61 = vadd.f32 0.014752088, %v3604_v35  ;;  %v7802_v59 = vmin.f32 %v3549_v2, 16.0  ;;  %v3543_v28 = vand.u32 2147483648, %v7796_v8 }
0x1110   : > { %v3646_v45 = vmul.f32 %v3645_v21, %v7778_v19  ;;  %v3635_v39 = vmul.f32 %v3634_v32, %v7778_v19  ;;  %v3595_v12 = vmul.f32 %v3594_v6, %v7780_v10  ;;  %v3518_v32 = vadd.f32 0.18741608, %v3517_v4 }
0x1111   : > { %v3606_v52 = vmul.f32 %v3605_v61, %v7780_v10  ;;  %v3551_v20 = vmul.f32 2.1237322e-06, %v7802_v59  ;;  %v3562_v26 = vmul.f32 3.8918573e-05, %v7802_v59 }
0x1112   : > { %v3647_v14 = vadd.f32 0.112945676, %v3646_v45  ;;  %v3636_v49 = vadd.f32 0.05243302, %v3635_v39  ;;  %v3596_v48 = vadd.f32 0.05243302, %v3595_v12 }
0x1113   : > { %v3607_v5 = vadd.f32 0.112945676, %v3606_v52  ;;  %v3552_v0 = vadd.f32 0.00028619796, %v3551_v20  ;;  %v3563_v30 = vadd.f32 0.001143296, %v3562_v26  ;;  %v7815_v55 = vpop.eup %6409 }
0x1114   : > { %v3648_v18 = vmul.f32 %v3647_v14, %v7778_v19  ;;  %v3637_v36 = vmul.f32 %v3636_v49, %v7778_v19  ;;  %v3533_v13 = vmul.f32 %v7815_v55, %v7796_v8  ;;  %v3597_v24 = vmul.f32 %v3596_v48, %v7780_v10 }
0x1115   : > { %v3608_v47 = vmul.f32 %v3607_v5, %v7780_v10  ;;  %v3564_v29 = vmul.f32 %v3563_v30, %v7802_v59  ;;  %v3553_v46 = vmul.f32 %v3552_v0, %v7802_v59  ;;  %v3519_v14 = vmul.f32 %v3518_v32, %v7754_v56 }
0x1116   : > { %v3649_v63 = vadd.f32 0.4994258, %v3648_v18  ;;  %v3638_v23 = vadd.f32 0.18741608, %v3637_v36  ;;  %v3534_v21 = vsub.f32 1.0, %v3533_v13  ;;  %vm3538_vm12 = vweird.f32 %v7815_v55 }
0x1117   : > { %v3609_v42 = vadd.f32 0.4994258, %v3608_v47  ;;  %v3565_v25 = vadd.f32 0.014752088, %v3564_v29  ;;  %v3554_v54 = vadd.f32 0.0036580483, %v3553_v46  ;;  %vm7842_vm5 = vmor %vm3537_vm11, %vm3538_vm12 }
0x1118   : > { %v3650_v27 = vmul.f32 %v3649_v63, %v7778_v19  ;;  %v3598_v35 = vadd.f32 0.18741608, %v3597_v24  ;;  %v3639_v6 = vmul.f32 %v3638_v23, %v7778_v19  ;;  %v3535_v52 = vmul.f32 %v7815_v55, %v3534_v21 }
0x1119   : > { %v3610_v58 = vmul.f32 %v3609_v42, %v7780_v10  ;;  %v3566_v9 = vmul.f32 %v3565_v25, %v7802_v59  ;;  %v3555_v2 = vmul.f32 %v3554_v54, %v7802_v59  ;;  %v3541_v13 = vand.u32 2147483647, %v7796_v8 }
0x111a   : > { %v3651_v1 = vadd.f32 1.0, %v3650_v27  ;;  %v3599_v20 = vmul.f32 %v3598_v35, %v7780_v10  ;;  %v3640_v19 = vadd.f32 1.1283791, %v3639_v6  ;;  %v3536_v47 = vadd.f32 %v7815_v55, %v3535_v52 }
0x111b   : > { %v3611_v40 = vadd.f32 1.0, %v3610_v58  ;;  %v3567_v57 = vadd.f32 0.112945676, %v3566_v9  ;;  %v3556_v12 = vadd.f32 0.05243302, %v3555_v2  ;;  %vm3542_vm12 = vcmp.eq.f32.partialorder %v3541_v13, 8.507059e+37 }
0x111c   : > { %6411 = vrcp.f32 %v3651_v1  ;;  %v3663_v0 = vand.u32 2147483648, %v3651_v1  ;;  %v3661_v56 = vand.u32 2147483647, %v3651_v1  ;;  %vm3657_vm14 = vweird.f32 %v3651_v1 }
0x111d   : > { %6413 = vrcp.f32 %v3611_v40  ;;  %v3568_v39 = vmul.f32 %v3567_v57, %v7802_v59  ;;  %v3600_v10 = vadd.f32 1.1283791, %v3599_v20  ;;  %v3623_v27 = vand.u32 2147483648, %v3611_v40 }
0x111e   : > { %v3557_v48 = vmul.f32 %v3556_v12, %v7802_v59  ;;  %v3664_v46 = vor.u32 1.1754944e-38, %v3663_v0  ;;  %v3621_v25 = vand.u32 2147483647, %v3611_v40  ;;  %v3641_v58 = vmul.f32 %v3640_v19, %v7766_v60 }
0x111f   : > { %v3569_v5 = vadd.f32 0.4994258, %v3568_v39  ;;  %vm3662_vm3 = vcmp.eq.f32.partialorder %v3661_v56, 8.507059e+37  ;;  %vm3617_vm6 = vweird.f32 %v3611_v40  ;;  %v3520_v23 = vadd.f32 1.1283791, %v3519_v14 }
0x1120   : > { %v3624_v60 = vor.u32 1.1754944e-38, %v3623_v27  ;;  %v3558_v32 = vadd.f32 0.18741608, %v3557_v48  ;;  %v3540_v21 = vsel %vm7842_vm5, %v7815_v55, %v3536_v47  ;;  %v3601_v35 = vmul.f32 %v3600_v10, %v7769_v34 }
0x1121   : > { %v3570_v63 = vmul.f32 %v3569_v5, %v7802_v59  ;;  %vm3622_vm11 = vcmp.eq.f32.partialorder %v3621_v25, 8.507059e+37  ;;  %v3544_v57 = vor.u32 1.1754944e-38, %v3543_v28  ;;  %v3504_v39 = vmul.f32 0.5, %v7761_v22 }
0x1122   : > { %v6412_v45 = vpop.eup %6411  ;;  %v3559_v52 = vmul.f32 %v3558_v32, %v7802_v59  ;;  %v3521_v20 = vmul.f32 %v3520_v23, %v7750_v43 }
0x1123   : > { %v3653_v61 = vmul.f32 %v6412_v45, %v3651_v1  ;;  %v6414_v26 = vpop.eup %6413  ;;  %vm3658_vm13 = vweird.f32 %v6412_v45  ;;  %v3571_v42 = vadd.f32 1.0, %v3570_v63 }
0x1124   : > { %v3613_v30 = vmul.f32 %v6414_v26, %v3611_v40  ;;  %vm3659_vm15 = vmor %vm3657_vm14, %vm3658_vm13  ;;  %vm3618_vm0 = vweird.f32 %v6414_v26  ;;  %v3545_v40 = vsel %vm3542_vm12, %v3544_v57, %v3540_v21  ;;  %v3560_v19 = vadd.f32 1.1283791, %v3559_v52 }
0x1125   : > { %v3654_v18 = vsub.f32 1.0, %v3653_v61  ;;  %6415 = vrcp.f32 %v3571_v42  ;;  %vm3619_vm9 = vmor %vm3617_vm6, %vm3618_vm0  ;;  %v3546_v34 = vmul.f32 %v3545_v40, %v3521_v20  ;;  %v3581_v0 = vand.u32 2147483647, %v3571_v42 }
0x1126   : > { %v3614_v29 = vsub.f32 1.0, %v3613_v30  ;;  %v3583_v30 = vand.u32 2147483648, %v3571_v42  ;;  %vm3577_vm14 = vweird.f32 %v3571_v42  ;;  %v3561_v47 = vmul.f32 %v3560_v19, %v7794_v38 }
0x1127   : > { %v3655_v49 = vmul.f32 %v6412_v45, %v3654_v18  ;;  %v5569_v59 = vclamps-f32 %v3546_v34, 1.0  ;;  %vm3582_vm0 = vcmp.eq.f32.partialorder %v3581_v0, 8.507059e+37 }
0x1128   : > { %v3615_v36 = vmul.f32 %v6414_v26, %v3614_v29 }
0x1129   : > { %v3656_v31 = vadd.f32 %v6412_v45, %v3655_v49  ;;  %v3669_v27 = vadd.f32 1.0, %v5569_v59 }
0x112a   : > { %v3616_v54 = vadd.f32 %v6414_v26, %v3615_v36 }
0x112b   : > { %v3660_v4 = vsel %vm3659_vm15, %v6412_v45, %v3656_v31  ;;  %v6416_v61 = vpop.eup %6415 }
0x112c   : > { %v3665_v24 = vsel %vm3662_vm3, %v3664_v46, %v3660_v4  ;;  %v3620_v2 = vsel %vm3619_vm9, %v6414_v26, %v3616_v54  ;;  %v3573_v55 = vmul.f32 %v6416_v61, %v3571_v42  ;;  %v3503_v26 = vmul.f32 0.5, %v7763_v62 }
0x112d   : > { %v3666_v9 = vmul.f32 %v3665_v24, %v3641_v58  ;;  %v3625_v6 = vsel %vm3622_vm11, %v3624_v60, %v3620_v2  ;;  %vm3578_vm13 = vweird.f32 %v6416_v61  ;;  %v3584_v62 = vor.u32 1.1754944e-38, %v3583_v30 }
0x112e   : > { %v3626_v8 = vmul.f32 %v3625_v6, %v3601_v35  ;;  %v3574_v5 = vsub.f32 1.0, %v3573_v55  ;;  %vm3579_vm15 = vmor %vm3577_vm14, %vm3578_vm13  ;;  %v3502_v46 = vmul.f32 0.5, %v7786_v51 }
0x112f   : > { %v5572_v45 = vclamps-f32 %v3666_v9, 1.0 }
0x1130   : > { %v5571_v18 = vclamps-f32 %v3626_v8, 1.0  ;;  %v3575_v56 = vmul.f32 %v6416_v61, %v3574_v5 }
0x1131   : > { %v3672_v14 = vadd.f32 1.0, %v5572_v45 }
0x1132   : > { %v3671_v28 = vadd.f32 1.0, %v5571_v18  ;;  %v3576_v63 = vadd.f32 %v6416_v61, %v3575_v56  ;;  %v5829_v56 = vld [vmem:[%s8428_s15 + $0x30] sm:$0xff] }
0x1133   : > { %v3676_v12 = vmul.f32 %v3672_v14, %v3504_v39 }
0x1134   : > { %v3675_v22 = vmul.f32 %v3671_v28, %v3503_v26  ;;  %v3580_v10 = vsel %vm3579_vm15, %v6416_v61, %v3576_v63 }
0x1135   : > { %v7856_v49 = vadd.f32 %v3676_v12, %v7331_v53  ;;  %v3585_v31 = vsel %vm3582_vm0, %v3584_v62, %v3580_v10  ;;  %v5828_v62 = vld [vmem:[%s8428_s15 + $0x28] sm:$0xff]  ;;  %v5830_v10 = vld [vmem:[%s8428_s15 + $0x38] sm:$0xff] }
0x1136   : > { %v7859_v43 = vadd.f32 %v3675_v22, %v7334_v44  ;;  %v3586_v48 = vmul.f32 %v3585_v31, %v3561_v47  ;;  %v3501_v44 = vmul.f32 0.5, %v7747_v17  ;;  %v5827_v22 = vld [vmem:[%s8428_s15 + $0x20] sm:$0xff] }
0x1138   : > { %v6237_v29 = vpack.i.bf16 %v7856_v49, %v7859_v43  ;;  %v3833_v53 = vpack.c.bf16 %v7856_v49, %v7859_v43  ;;  %v5570_v42 = vclamps-f32 %v3586_v48, 1.0  ;;  %v3673_v38 = vmul.f32 %v3669_v27, %v3501_v44 }
0x113a   : > { %6238 = vrot.lane.b32.xlu1 %v6237_v29, %s8487_s5  ;;  %3861 = vmatpush.bf16.msra.mxu2 %v3833_v53  ;;  %v3670_v36 = vadd.f32 1.0, %v5570_v42  ;;  %v7870_v58 = vadd.f32 %v3673_v38, %v7347_v41  ;;  %v5825_v42 = vld [vmem:[%s8428_s15 + $0x10] sm:$0xff] }
0x113c   : > { %v3674_v25 = vmul.f32 %v3670_v36, %v3502_v46 }
0x113e   : > { %v7873_v4 = vadd.f32 %v3674_v25, %v7349_v7 }
0x1140   : > { %v6242_v1 = vpack.i.bf16 %v7873_v4, %v7870_v58  ;;  %v3832_v13 = vpack.c.bf16 %v7873_v4, %v7870_v58 }
0x1142   : > { %6243 = vrot.lane.b32.xlu2 %v6242_v1, %s8487_s5  ;;  %3862 = vmatpush.bf16.msra.mxu2 %v3832_v13 }
0x1145   : > { %5621 = vmatmul.msk.bf16.vlgmr.msra.gmra.mxu2 %vm730_vm2, %v5827_v22 }
0x1155   : > { %5622 = vmatmul.msk.bf16.gmra.mxu2 %vm730_vm2, %v5828_v62 }
0x119c   : > { %v6244_v17 = vpop.permute.xlu2 %6243 }
0x119d   : > { %v6246_v24 = vunpack.i.h.bf16 %v6244_v17  ;;  %v6245_v51 = vunpack.i.l.bf16 %v6244_v17 }
0x119f   : > { %v3694_v54 = vsel %vm791_vm1, %v6246_v24, %v7873_v4  ;;  %v3691_v41 = vsel %vm791_vm1, %v6245_v51, %v7870_v58  ;;  %v5823_v51 = vld [vmem:[%s8428_s15] sm:$0xff] }
0x11a0   : > { %v6252_v7 = vpack.i.bf16 %v3694_v54, %v3691_v41 }
0x11a2   : > { %6253 = vrot.lane.b32.xlu2 %v6252_v7, %s8487_s5 }
0x11ac   : > { %v6239_v23 = vpop.permute.xlu1 %6238 }
0x11ad   : > { %v6241_v9 = vunpack.i.h.bf16 %v6239_v23  ;;  %v6240_v60 = vunpack.i.l.bf16 %v6239_v23 }
0x11af   : > { %v3700_v32 = vsel %vm791_vm1, %v6241_v9, %v7856_v49  ;;  %v3697_v21 = vsel %vm791_vm1, %v6240_v60, %v7859_v43 }
0x11b0   : > { %v6247_v35 = vpack.i.bf16 %v3700_v32, %v3697_v21  ;;  %v5826_v32 = vld [vmem:[%s8428_s15 + $0x18] sm:$0xff]  ;;  %v7953_v21 = vld [vmem:[%s8429_s16 + $0x8] sm:$0xff] }
0x11b2   : > { %6248 = vrot.lane.b32.xlu1 %v6247_v35, %s8487_s5  ;;  %v7958_v35 = vld [vmem:[%s8429_s16 + $0x10] sm:$0xff] }
0x11fc   : > { %v6254_v2 = vpop.permute.xlu2 %6253 }
0x11fd   : > { %v6256_v57 = vunpack.i.h.bf16 %v6254_v2  ;;  %v6255_v45 = vunpack.i.l.bf16 %v6254_v2  ;;  %v7963_v2 = vld [vmem:[%s8429_s16] sm:$0xff] }
0x11ff   : > { %v3710_v6 = vsel %vm791_vm1, %v6256_v57, %v7873_v4  ;;  %v3709_v8 = vsel %vm791_vm1, %v6255_v45, %v7870_v58  ;;  %v5824_v57 = vld [vmem:[%s8428_s15 + $0x8] sm:$0xff]  ;;  %v7974_v45 = vld [vmem:[%s8429_s16 + $0x18] sm:$0xff] }
0x1200   : > { %v6262_v61 = vpack.i.bf16 %v3710_v6, %v3709_v8  ;;  %v5831_v6 = vld [vmem:[%s8428_s15 + $0x40] sm:$0xff]  ;;  %v5832_v8 = vld [vmem:[%s8428_s15 + $0x48] sm:$0xff] }
0x1202   : > { %6263 = vrot.lane.b32.xlu1 %v6262_v61, %s8481_s26 }
0x120a   : > { %6278 = vrot.lane.b32.xlu1 %v6262_v61, %s8483_s29 }
0x1212   : > { %6293 = vrot.lane.b32.xlu1 %v6262_v61, %s8482_s25 }
0x121a   : > { %4014 = vperm.xlu1 %6299, %v7958_v35  }
0x1222   : > { %6300 = vset.pattern.permute.xlu1 %v6507_v15 }
0x1224   : > { %v6249_v40 = vpop.permute.xlu1 %6248 }
0x1225   : > { %v6251_v39 = vunpack.i.h.bf16 %v6249_v40  ;;  %v6250_v14 = vunpack.i.l.bf16 %v6249_v40 }
0x1227   : > { %v3712_v52 = vsel %vm791_vm1, %v6251_v39, %v7856_v49  ;;  %v3711_v20 = vsel %vm791_vm1, %v6250_v14, %v7859_v43 }
0x1228   : > { %v6257_v18 = vpack.i.bf16 %v3712_v52, %v3711_v20  ;;  %v3864_v52 = vpop.f32.mrf.mxu2 }
0x122a   : > { %6258 = vrot.lane.b32.xlu0 %v6257_v18, %s8481_s26  ;;  %6268 = vrot.lane.b32.xlu2 %v6257_v18, %s8483_s29 }
0x1232   : > { %6273 = vrot.lane.b32.xlu0 %v6257_v18, %s8480_s22  ;;  %6283 = vrot.lane.b32.xlu2 %v6262_v61, %s8480_s22 }
0x123a   : > { %6288 = vrot.lane.b32.xlu0 %v6257_v18, %s8482_s25  ;;  %4004 = vperm.xlu2 %6297, %v7963_v2  }
0x1242   : > { %4009 = vperm.xlu0 %6298, %v7953_v21   ;;  %4019 = vperm.xlu2 %6297, %v7974_v45  }
0x124a   : > { %6303 = vset.pattern.permute.xlu0 %v6508_v16  ;;  %6301 = vset.pattern.permute.xlu2 %v6507_v15 }
0x1274   : > { %v6264_v55 = vpop.permute.xlu1 %6263 }
0x1275   : > { %v6266_v29 = vunpack.i.h.bf16 %v6264_v55  ;;  %v6265_v53 = vunpack.i.l.bf16 %v6264_v55 }
0x1277   : > { %v5589_v27 = vpack.c.bf16 %v6266_v29, %v6265_v53 }
0x127c   : > { %v6279_v12 = vpop.permute.xlu1 %6278 }
0x127d   : > { %v6281_v5 = vunpack.i.h.bf16 %v6279_v12  ;;  %v6280_v19 = vunpack.i.l.bf16 %v6279_v12 }
0x127f   : > { %v5639_v30 = vpack.c.bf16 %v6281_v5, %v6280_v19 }
0x1284   : > { %v6269_v34 = vpop.permute.xlu2 %6268  ;;  %v6294_v17 = vpop.permute.xlu1 %6293 }
0x1285   : > { %v6271_v26 = vunpack.i.h.bf16 %v6269_v34  ;;  %v6270_v28 = vunpack.i.l.bf16 %v6269_v34  ;;  %v6296_v7 = vunpack.i.h.bf16 %v6294_v17  ;;  %v6295_v23 = vunpack.i.l.bf16 %v6294_v17 }
0x1287   : > { %v5636_v0 = vpack.c.bf16 %v6271_v26, %v6270_v28  ;;  %v5659_v60 = vpack.c.bf16 %v6296_v7, %v6295_v23  ;;  %v3866_v26 = vpop.f32.mrf.mxu2 }
0x1289   : > { %5637 = vmatpush.bf16.msk.msra.mxu3 %vm6776_vm8, %v5636_v0 }
0x128c   : > { %v6284_v48 = vpop.permute.xlu2 %6283  ;;  %v4015_v17 = vpop.permute.xlu1 %4014 }
0x128d   : > { %5640 = vmatpush.bf16.msk.msra.mxu3 %vm6776_vm8, %v5639_v30  ;;  %v6286_v36 = vunpack.i.h.bf16 %v6284_v48  ;;  %v6285_v25 = vunpack.i.l.bf16 %v6284_v48 }
0x128f   : > { %v5605_v13 = vpack.c.bf16 %v6286_v36, %v6285_v25 }
0x1290   : > { %5641 = vmatmul.msk.bf16.vlgmr.msra.gmra.mxu3 %vm730_vm2, %v5829_v56 }
0x1294   : > { %v4005_v30 = vpop.permute.xlu2 %4004 }
0x129c   : > { %v6259_v59 = vpop.permute.xlu0 %6258 }
0x129d   : > { %v6261_v63 = vunpack.i.h.bf16 %v6259_v59  ;;  %v6260_v47 = vunpack.i.l.bf16 %v6259_v59 }
0x129f   : > { %v5586_v31 = vpack.c.bf16 %v6261_v63, %v6260_v47  ;;  %v3869_v47 = vpop.f32.mrf.mxu2 }
0x12a0   : > { %5642 = vmatmul.msk.bf16.gmra.mxu3 %vm730_vm2, %v5830_v10 }
0x12a1   : > { %5587 = vmatpush.bf16.msk.msrb.mxu0 %vm6739_vm4, %v5586_v31 }
0x12a4   : > { %v6274_v44 = vpop.permute.xlu0 %6273 }
0x12a5   : > { %v6276_v38 = vunpack.i.h.bf16 %v6274_v44  ;;  %v6275_v46 = vunpack.i.l.bf16 %v6274_v44  ;;  %5590 = vmatpush.bf16.msk.msrb.mxu0 %vm6739_vm4, %v5589_v27 }
0x12a7   : > { %v5602_v1 = vpack.c.bf16 %v6276_v38, %v6275_v46 }
0x12a8   : > { %5591 = vmatmul.msk.bf16.vlgmr.msrb.gmra.mxu0 %vm730_vm2, %v5825_v42 }
0x12a9   : > { %5603 = vmatpush.bf16.msk.msrb.mxu1 %vm6772_vm7, %v5602_v1  ;;  %v3871_v1 = vpop.f32.mrf.mxu2 }
0x12ac   : > { %v6289_v24 = vpop.permute.xlu0 %6288 }
0x12ad   : > { %v6291_v54 = vunpack.i.h.bf16 %v6289_v24  ;;  %v6290_v41 = vunpack.i.l.bf16 %v6289_v24  ;;  %5606 = vmatpush.bf16.msk.msrb.mxu1 %vm6772_vm7, %v5605_v13 }
0x12af   : > { %v5656_v9 = vpack.c.bf16 %v6291_v54, %v6290_v41 }
0x12b0   : > { %5607 = vmatmul.msk.bf16.vlgmr.msrb.gmra.mxu1 %vm730_vm2, %v5823_v51 }
0x12b1   : > { %5657 = vmatpush.bf16.msk.msra.mxu0 %vm6803_vm10, %v5656_v9 }
0x12b4   : > { %v4010_v31 = vpop.permute.xlu0 %4009 }
0x12b5   : > { %5660 = vmatpush.bf16.msk.msra.mxu0 %vm6803_vm10, %v5659_v60 }
0x12b8   : > { %5592 = vmatmul.msk.bf16.gmra.mxu0 %vm730_vm2, %v5826_v32  ;;  %v4020_v32 = vpop.permute.xlu2 %4019 }
0x12c0   : > { %5608 = vmatmul.msk.bf16.gmra.mxu1 %vm730_vm2, %v5824_v57 }
0x12c8   : > { %5661 = vmatmul.msk.bf16.vlgmr.msra.gmra.mxu0 %vm730_vm2, %v5831_v6 }
0x12d8   : > { %5662 = vmatmul.msk.bf16.gmra.mxu0 %vm730_vm2, %v5832_v8 }
0x1313   : > { %v3926_v20 = vpop.f32.mrf.mxu3 }
0x131b   : > { %v3928_v19 = vpop.f32.mrf.mxu3 }
0x1323   : > { %v3931_v48 = vpop.f32.mrf.mxu3 }
0x1325   : > { %v3787_v61 = vpop.f32.mrf.mxu0 }
0x132b   : > { %v3933_v41 = vpop.f32.mrf.mxu3 }
0x132d   : > { %v3789_v40 = vpop.f32.mrf.mxu0  ;;  %v3822_v39 = vpop.f32.mrf.mxu1 }
0x132e   : > { %v3823_v18 = vadd.f32 %v3822_v39, %v3787_v61 }
0x1330   : > { %v3874_v34 = vadd.f32 %v3864_v52, %v3823_v18 }
0x1332   : > { %v3936_v28 = vadd.f32 %v3926_v20, %v3874_v34 }
0x1335   : > { %v3792_v14 = vpop.f32.mrf.mxu0  ;;  %v3824_v55 = vpop.f32.mrf.mxu1 }
0x1336   : > { %v3825_v5 = vadd.f32 %v3824_v55, %v3789_v40 }
0x1338   : > { %v3875_v59 = vadd.f32 %v3866_v26, %v3825_v5 }
0x133a   : > { %v3937_v10 = vadd.f32 %v3928_v19, %v3875_v59 }
0x133d   : > { %v3794_v12 = vpop.f32.mrf.mxu0  ;;  %v3827_v56 = vpop.f32.mrf.mxu1 }
0x133e   : > { %v3828_v29 = vadd.f32 %v3827_v56, %v3792_v14 }
0x1340   : > { %v3876_v44 = vadd.f32 %v3869_v47, %v3828_v29 }
0x1342   : > { %v3938_v36 = vadd.f32 %v3931_v48, %v3876_v44 }
0x1345   : > { %v3988_v0 = vpop.f32.mrf.mxu0  ;;  %v3829_v38 = vpop.f32.mrf.mxu1 }
0x1346   : > { %v3998_v22 = vadd.f32 %v3988_v0, %v3936_v28  ;;  %v3830_v25 = vadd.f32 %v3829_v38, %v3794_v12 }
0x1348   : > { %v4022_v63 = vadd.f32 %v4005_v30, %v3998_v22  ;;  %v3877_v51 = vadd.f32 %v3871_v1, %v3830_v25 }
0x134a   : > { %v4026_v62 = vsel %vm730_vm2, %v4022_v63, 0.0  ;;  %v3939_v23 = vadd.f32 %v3933_v41, %v3877_v51 }
0x134b   : > { %4027 = vadd.xlane.f32.xlu1 %v4026_v62 }
0x134d   : > { %v3990_v53 = vpop.f32.mrf.mxu0 }
0x134e   : > { %v3999_v27 = vadd.f32 %v3990_v53, %v3937_v10 }
0x1350   : > { %v4023_v42 = vadd.f32 %v4010_v31, %v3999_v27  ;;  %v698_v31 = vld [vmem:[%s6968_s2 + $0x50] sm:$0xff] }
0x1352   : > { %v4029_v46 = vsel %vm730_vm2, %v4023_v42, 0.0 }
0x1353   : > { %4030 = vadd.xlane.f32.xlu2 %v4029_v46 }
0x1355   : > { %v3993_v13 = vpop.f32.mrf.mxu0 }
0x1356   : > { %v4000_v24 = vadd.f32 %v3993_v13, %v3938_v36 }
0x1358   : > { %v4024_v54 = vadd.f32 %v4015_v17, %v4000_v24 }
0x135a   : > { %v4032_v7 = vsel %vm730_vm2, %v4024_v54, 0.0 }
0x135b   : > { %4033 = vadd.xlane.f32.xlu0 %v4032_v7 }
0x135d   : > { %v3995_v9 = vpop.f32.mrf.mxu0 }
0x135e   : > { %v4001_v60 = vadd.f32 %v3995_v9, %v3939_v23 }
0x1360   : > { %v4025_v57 = vadd.f32 %v4020_v32, %v4001_v60 }
0x1362   : > { %v4035_v6 = vsel %vm730_vm2, %v4025_v57, 0.0 }
0x1363   : > { %4036 = vadd.xlane.f32.xlu2 %v4035_v6 }
0x13be   : > { %v4028_v61 = vpop.xlane.xlu1 %4027 }
0x13c6   : > { %v4031_v8 = vpop.xlane.xlu2 %4030 }
0x13c7   : > { %v4038_v39 = vadd.f32 %v4031_v8, %v4028_v61 }
0x13ce   : > { %v4034_v40 = vpop.xlane.xlu0 %4033 }
0x13cf   : > { %v4039_v14 = vadd.f32 %v4038_v39, %v4034_v40 }
0x13d6   : > { %v4037_v52 = vpop.xlane.xlu2 %4036 }
0x13d7   : > { %v4040_v20 = vadd.f32 %v4039_v14, %v4037_v52  ;;  %v699_v14 = vld [vmem:[%s6968_s2 + $0x58] sm:$0xff]  ;;  %v697_v52 = vld [vmem:[%s6968_s2 + $0x48] sm:$0xff] }
0x13d9   : > { %v4041_v18 = vrot.slane %v4040_v20, 4 }
0x13db   : > { %v4042_v55 = vadd.f32 %v4041_v18, %v4040_v20  ;;  %v696_v20 = vld [vmem:[%s6968_s2 + $0x40] sm:$0xff] }
0x13dd   : > { %v4043_v12 = vrot.slane %v4042_v55, 2 }
0x13df   : > { %v4044_v34 = vadd.f32 %v4043_v12, %v4042_v55 }
0x13e1   : > { %v4045_v26 = vrot.slane %v4044_v34, 1 }
0x13e3   : > { %v4046_v28 = vadd.f32 %v4045_v26, %v4044_v34 }
0x13e5   : > { %v4047_v5 = vmul.f32 0.0009765625, %v4046_v28 }
0x13e7   : > { %v7993_v19 = vsub.f32 %v4024_v54, %v4047_v5  ;;  %v7995_v0 = vsub.f32 %v4023_v42, %v4047_v5  ;;  %v7997_v30 = vsub.f32 %v4022_v63, %v4047_v5  ;;  %v8008_v63 = vsub.f32 %v4025_v57, %v4047_v5 }
0x13e9   : > { %v4054_v22 = vmul.f32 %v7993_v19, %v7993_v19  ;;  %v4053_v56 = vmul.f32 %v7995_v0, %v7995_v0  ;;  %v4052_v59 = vmul.f32 %v7997_v30, %v7997_v30  ;;  %v4055_v29 = vmul.f32 %v8008_v63, %v8008_v63 }
0x13eb   : > { %v4062_v47 = vsel %vm730_vm2, %v4054_v22, 0.0  ;;  %v4059_v62 = vsel %vm730_vm2, %v4053_v56, 0.0  ;;  %v4056_v10 = vsel %vm730_vm2, %v4052_v59, 0.0  ;;  %v4065_v53 = vsel %vm730_vm2, %v4055_v29, 0.0 }
0x13ec   : > { %4063 = vadd.xlane.f32.xlu2 %v4062_v47  ;;  %4060 = vadd.xlane.f32.xlu0 %v4059_v62 }
0x13ed   : > { %4057 = vadd.xlane.f32.xlu1 %v4056_v10 }
0x13f5   : > { %4066 = vadd.xlane.f32.xlu1 %v4065_v53 }
0x1404   : > { %4130 = vperm.xlu2 %6301, %v7974_v45  }
0x140c   : > { %4118 = vperm.xlu2 %6301, %v7963_v2  }
0x140e   : > { %4126 = vperm.xlu1 %6300, %v7958_v35  }
0x1414   : > { %6306 = vset.pattern.permute.xlu2 %v6508_v16 }
0x1416   : > { %6302 = vset.pattern.permute.xlu1 %v6506_v11 }
0x1417   : > { %4149 = vperm.xlu1 %6302, %v698_v31  }
0x141f   : > { %6305 = vset.pattern.permute.xlu1 %v6507_v15 }
0x1420   : > { %4122 = vperm.xlu1 %6305, %v7953_v21  }
0x1428   : > { %6307 = vset.pattern.permute.xlu1 %v6508_v16 }
0x145f   : > { %v4061_v27 = vpop.xlane.xlu0 %4060  ;;  %v4064_v42 = vpop.xlane.xlu2 %4063 }
0x1460   : > { %v4058_v48 = vpop.xlane.xlu1 %4057 }
0x1461   : > { %v4068_v44 = vadd.f32 %v4061_v27, %v4058_v48 }
0x1463   : > { %v4069_v38 = vadd.f32 %v4068_v44, %v4064_v42 }
0x1468   : > { %v4067_v46 = vpop.xlane.xlu1 %4066 }
0x1469   : > { %v4070_v36 = vadd.f32 %v4069_v38, %v4067_v46 }
0x146b   : > { %v4071_v25 = vrot.slane %v4070_v36, 4 }
0x146d   : > { %v4072_v1 = vadd.f32 %v4071_v25, %v4070_v36 }
0x146f   : > { %v4073_v13 = vrot.slane %v4072_v1, 2 }
0x1471   : > { %v4074_v17 = vadd.f32 %v4073_v13, %v4072_v1 }
0x1473   : > { %v4075_v24 = vrot.slane %v4074_v17, 1 }
0x1475   : > { %v4076_v51 = vadd.f32 %v4075_v24, %v4074_v17 }
0x1477   : > { %v4077_v54 = vmul.f32 0.0009765625, %v4076_v51 }
0x1479   : > { %v4078_v41 = vadd.f32 1e-05, %v4077_v54 }
0x147b   : > { %6417 = vrsqrt.f32 %v4078_v41  ;;  %vm4085_vm5 = vweird.f32 %v4078_v41 }
0x1481   : > { %v6418_v7 = vpop.eup %6417 }
0x1482   : > { %v4080_v23 = vmul.f32 %v6418_v7, %v4078_v41  ;;  %vm4086_vm3 = vweird.f32 %v6418_v7 }
0x1483   : > { %vm4087_vm6 = vmor %vm4085_vm5, %vm4086_vm3 }
0x1484   : > { %v4081_v9 = vmul.f32 %v6418_v7, %v4080_v23 }
0x1486   : > { %v4082_v60 = vmul.f32 0.5, %v4081_v9 }
0x1488   : > { %v4083_v32 = vsub.f32 1.5, %v4082_v60 }
0x148a   : > { %v4084_v57 = vmul.f32 %v6418_v7, %v4083_v32 }
0x148c   : > { %v4088_v6 = vsel %vm4087_vm6, %v6418_v7, %v4084_v57 }
0x148d   : > { %v4092_v8 = vmul.f32 %v4088_v6, %v7974_v45  ;;  %v4091_v61 = vmul.f32 %v4088_v6, %v7958_v35  ;;  %v4089_v40 = vmul.f32 %v4088_v6, %v7963_v2  ;;  %v4090_v39 = vmul.f32 %v4088_v6, %v7953_v21  ;;  %v4131_v35 = vpop.permute.xlu2 %4130  ;;  %v4127_v2 = vpop.permute.xlu1 %4126 }
0x148f   : > { %4110 = vperm.xlu2 %6306, %v4092_v8   ;;  %4105 = vperm.xlu0 %6303, %v4091_v61  }
0x1490   : > { %4095 = vperm.xlu1 %6307, %v4089_v40  }
0x1495   : > { %v4119_v45 = vpop.permute.xlu2 %4118  ;;  %v4150_v18 = vpop.permute.xlu1 %4149 }
0x1497   : > { %6304 = vset.pattern.permute.xlu0 %v6506_v11  ;;  %4100 = vperm.xlu2 %6306, %v4090_v39  }
0x1498   : > { %6309 = vset.pattern.permute.xlu1 %v6506_v11  ;;  %4154 = vperm.xlu0 %6304, %v699_v14  }
0x1499   : > { %4144 = vperm.xlu1 %6309, %v697_v52  }
0x149d   : > { %v4123_v12 = vpop.permute.xlu1 %4122 }
0x149f   : > { %6308 = vset.pattern.permute.xlu2 %v6506_v11 }
0x14a0   : > { %4139 = vperm.xlu2 %6308, %v696_v20  }
0x14e9   : > { %v4111_v55 = vpop.permute.xlu2 %4110 }
0x14ea   : > { %v4116_v59 = vmul.f32 %v4111_v55, %v8008_v63 }
0x14f1   : > { %v4101_v21 = vpop.permute.xlu2 %4100 }
0x14f2   : > { %v4114_v11 = vmul.f32 %v4101_v21, %v7995_v0 }
0x14f4   : > { %v4134_v31 = vadd.f32 %v4123_v12, %v4114_v11 }
0x14fa   : > { %v4140_v56 = vpop.permute.xlu2 %4139 }
0x1501   : > { %v4106_v34 = vpop.permute.xlu0 %4105 }
0x1502   : > { %v4115_v26 = vmul.f32 %v4106_v34, %v7993_v19  ;;  %v4096_v28 = vpop.permute.xlu1 %4095  ;;  %v4136_v19 = vadd.f32 %v4131_v35, %v4116_v59 }
0x1503   : > { %v4113_v5 = vmul.f32 %v4096_v28, %v7997_v30 }
0x1504   : > { %v4135_v22 = vadd.f32 %v4127_v2, %v4115_v26 }
0x1505   : > { %v4133_v47 = vadd.f32 %v4119_v45, %v4113_v5 }
0x1506   : > { %v8036_v62 = vadd.f32 %v4150_v18, %v4135_v22 }
0x1507   : > { %v8038_v10 = vadd.f32 %v4140_v56, %v4133_v47 }
0x1508   : > { %v8041_v29 = vmul.f32 0.70710677, %v8036_v62 }
0x1509   : > { %v8044_v53 = vmul.f32 0.70710677, %v8038_v10 }
0x150a   : > { %v4249_v30 = vmul.f32 %v8041_v29, %v8041_v29  ;;  %v4155_v27 = vpop.permute.xlu0 %4154 }
0x150b   : > { %v4169_v63 = vmul.f32 %v8044_v53, %v8044_v53  ;;  %v8050_v0 = vadd.f32 %v4155_v27, %v4136_v19  ;;  %v4145_v48 = vpop.permute.xlu1 %4144 }
0x150c   : > { %v8052_v44 = vmin.f32 %v4249_v30, 16.0  ;;  %v8054_v42 = vadd.f32 %v4145_v48, %v4134_v31 }
0x150d   : > { %v8056_v38 = vmin.f32 %v4169_v63, 16.0  ;;  %v8059_v46 = vmul.f32 0.70710677, %v8050_v0 }
0x150e   : > { %v4251_v36 = vmul.f32 2.1237322e-06, %v8052_v44  ;;  %v4262_v25 = vmul.f32 3.8918573e-05, %v8052_v44  ;;  %v8068_v24 = vmul.f32 0.70710677, %v8054_v42 }
0x150f   : > { %v4171_v1 = vmul.f32 2.1237322e-06, %v8056_v38  ;;  %v4182_v13 = vmul.f32 3.8918573e-05, %v8056_v38  ;;  %v4289_v17 = vmul.f32 %v8059_v46, %v8059_v46 }
0x1510   : > { %v4252_v51 = vadd.f32 0.00028619796, %v4251_v36  ;;  %v4263_v54 = vadd.f32 0.001143296, %v4262_v25  ;;  %v4209_v23 = vmul.f32 %v8068_v24, %v8068_v24 }
0x1511   : > { %v4183_v41 = vadd.f32 0.001143296, %v4182_v13  ;;  %v8070_v7 = vmin.f32 %v4289_v17, 16.0  ;;  %v4172_v60 = vadd.f32 0.00028619796, %v4171_v1 }
0x1512   : > { %v4264_v9 = vmul.f32 %v4263_v54, %v8052_v44  ;;  %v4253_v32 = vmul.f32 %v4252_v51, %v8052_v44  ;;  %v8079_v40 = vmin.f32 %v4209_v23, 16.0 }
0x1513   : > { %v4184_v57 = vmul.f32 %v4183_v41, %v8056_v38  ;;  %v4291_v6 = vmul.f32 2.1237322e-06, %v8070_v7  ;;  %v4302_v8 = vmul.f32 3.8918573e-05, %v8070_v7  ;;  %v4173_v45 = vmul.f32 %v4172_v60, %v8056_v38 }
0x1514   : > { %v4265_v61 = vadd.f32 0.014752088, %v4264_v9  ;;  %v4211_v35 = vmul.f32 2.1237322e-06, %v8079_v40  ;;  %v4254_v2 = vadd.f32 0.0036580483, %v4253_v32 }
0x1515   : > { %v4185_v39 = vadd.f32 0.014752088, %v4184_v57  ;;  %v4292_v14 = vadd.f32 0.00028619796, %v4291_v6  ;;  %v4303_v20 = vadd.f32 0.001143296, %v4302_v8 }
0x1516   : > { %v4266_v52 = vmul.f32 %v4265_v61, %v8052_v44  ;;  %v4222_v55 = vmul.f32 3.8918573e-05, %v8079_v40  ;;  %v4212_v28 = vadd.f32 0.00028619796, %v4211_v35  ;;  %v4255_v56 = vmul.f32 %v4254_v2, %v8052_v44 }
0x1517   : > { %v4186_v18 = vmul.f32 %v4185_v39, %v8056_v38  ;;  %v4293_v21 = vmul.f32 %v4292_v14, %v8070_v7  ;;  %v4304_v34 = vmul.f32 %v4303_v20, %v8070_v7  ;;  %v4174_v59 = vadd.f32 0.0036580483, %v4173_v45 }
0x1518   : > { %v4267_v12 = vadd.f32 0.112945676, %v4266_v52  ;;  %v4223_v11 = vadd.f32 0.001143296, %v4222_v55  ;;  %v4213_v63 = vmul.f32 %v4212_v28, %v8079_v40  ;;  %v4256_v1 = vadd.f32 0.05243302, %v4255_v56 }
0x1519   : > { %v4187_v26 = vadd.f32 0.112945676, %v4186_v18  ;;  %v4305_v22 = vadd.f32 0.014752088, %v4304_v34  ;;  %v4294_v31 = vadd.f32 0.0036580483, %v4293_v21  ;;  %v4175_v13 = vmul.f32 %v4174_v59, %v8056_v38 }
0x151a   : > { %v4268_v5 = vmul.f32 %v4267_v12, %v8052_v44  ;;  %v4224_v48 = vmul.f32 %v4223_v11, %v8079_v40  ;;  %v4214_v60 = vadd.f32 0.0036580483, %v4213_v63  ;;  %v4257_v57 = vmul.f32 %v4256_v1, %v8052_v44 }
0x151b   : > { %v4188_v47 = vmul.f32 %v4187_v26, %v8056_v38  ;;  %v4306_v30 = vmul.f32 %v4305_v22, %v8070_v7  ;;  %v4295_v41 = vmul.f32 %v4294_v31, %v8070_v7  ;;  %v4176_v6 = vadd.f32 0.05243302, %v4175_v13 }
0x151c   : > { %v4269_v19 = vadd.f32 0.4994258, %v4268_v5  ;;  %v4225_v51 = vadd.f32 0.014752088, %v4224_v48  ;;  %v4215_v39 = vmul.f32 %v4214_v60, %v8079_v40  ;;  %v4258_v52 = vadd.f32 0.18741608, %v4257_v57 }
0x151d   : > { %v4189_v27 = vadd.f32 0.4994258, %v4188_v47  ;;  %v4307_v25 = vadd.f32 0.112945676, %v4306_v30  ;;  %v4296_v8 = vadd.f32 0.05243302, %v4295_v41  ;;  %v4177_v20 = vmul.f32 %v4176_v6, %v8056_v38 }
0x151e   : > { %v4270_v36 = vmul.f32 %v4269_v19, %v8052_v44  ;;  %v4226_v32 = vmul.f32 %v4225_v51, %v8079_v40  ;;  %v4216_v34 = vadd.f32 0.05243302, %v4215_v39  ;;  %v4259_v5 = vmul.f32 %v4258_v52, %v8052_v44 }
0x151f   : > { %v4190_v17 = vmul.f32 %v4189_v27, %v8056_v38  ;;  %v4308_v9 = vmul.f32 %v4307_v25, %v8070_v7  ;;  %v4297_v18 = vmul.f32 %v4296_v8, %v8070_v7  ;;  %v4178_v56 = vadd.f32 0.18741608, %v4177_v20 }
0x1520   : > { %v4271_v54 = vadd.f32 1.0, %v4270_v36  ;;  %v4227_v14 = vadd.f32 0.112945676, %v4226_v32  ;;  %v4217_v30 = vmul.f32 %v4216_v34, %v8079_v40  ;;  %v4260_v25 = vadd.f32 1.1283791, %v4259_v5 }
0x1521   : > { %v8098_v23 = vadd.f32 1.0, %v4190_v17  ;;  %v4309_v61 = vadd.f32 0.4994258, %v4308_v9  ;;  %v4298_v11 = vadd.f32 0.18741608, %v4297_v18  ;;  %v4179_v44 = vmul.f32 %v4178_v56, %v8056_v38 }
0x1522   : > { %6419 = vrcp.f32 %v4271_v54  ;;  %v4228_v2 = vmul.f32 %v4227_v14, %v8079_v40  ;;  %v4283_v59 = vand.u32 2147483648, %v4271_v54  ;;  %v4281_v27 = vand.u32 2147483647, %v4271_v54 }
0x1523   : > { %6421 = vrcp.f32 %v8098_v23  ;;  %v4310_v35 = vmul.f32 %v4309_v61, %v8070_v7  ;;  %vm4277_vm11 = vweird.f32 %v4271_v54  ;;  %v4299_v13 = vmul.f32 %v4298_v11, %v8070_v7 }
0x1524   : > { %v4229_v28 = vadd.f32 0.4994258, %v4228_v2  ;;  %v4284_v1 = vor.u32 1.1754944e-38, %v4283_v59  ;;  %v4218_v9 = vadd.f32 0.18741608, %v4217_v30  ;;  %vm4282_vm14 = vcmp.eq.f32.partialorder %v4281_v27, 8.507059e+37 }
0x1525   : > { %v4311_v21 = vadd.f32 1.0, %v4310_v35  ;;  %v4203_v60 = vand.u32 2147483648, %v8098_v23  ;;  %vm4197_vm15 = vweird.f32 %v8098_v23  ;;  %v4201_v38 = vand.u32 2147483647, %v8098_v23 }
0x1526   : > { %v4230_v19 = vmul.f32 %v4229_v28, %v8079_v40  ;;  %v4261_v6 = vmul.f32 %v4260_v25, %v8041_v29  ;;  %v4300_v8 = vadd.f32 1.1283791, %v4299_v13  ;;  %v4219_v20 = vmul.f32 %v4218_v9, %v8079_v40 }
0x1527   : > { %6423 = vrcp.f32 %v4311_v21  ;;  %v4321_v14 = vand.u32 2147483647, %v4311_v21  ;;  %v4323_v52 = vand.u32 2147483648, %v4311_v21  ;;  %vm4202_vm5 = vcmp.eq.f32.partialorder %v4201_v38, 8.507059e+37 }
0x1528   : > { %v6420_v45 = vpop.eup %6419  ;;  %v8113_v48 = vadd.f32 1.0, %v4230_v19  ;;  %v4301_v34 = vmul.f32 %v4300_v8, %v8059_v46  ;;  %vm4317_vm6 = vweird.f32 %v4311_v21  ;;  %v4220_v28 = vadd.f32 1.1283791, %v4219_v20 }
0x1529   : > { %v6422_v55 = vpop.eup %6421  ;;  %v4273_v12 = vmul.f32 %v6420_v45, %v4271_v54  ;;  %vm4278_vm9 = vweird.f32 %v6420_v45  ;;  %v4180_v54 = vadd.f32 1.1283791, %v4179_v44  ;;  %v4163_v44 = vmul.f32 0.5, %v8036_v62 }
0x152a   : > { %v4193_v26 = vmul.f32 %v6422_v55, %v8098_v23  ;;  %vm4279_vm12 = vmor %vm4277_vm11, %vm4278_vm9  ;;  %6425 = vrcp.f32 %v8113_v48  ;;  %vm4198_vm13 = vweird.f32 %v6422_v55  ;;  %vm4322_vm11 = vcmp.eq.f32.partialorder %v4321_v14, 8.507059e+37 }
0x152b   : > { %v4274_v22 = vsub.f32 1.0, %v4273_v12  ;;  %vm8122_vm0 = vmor %vm4197_vm15, %vm4198_vm13  ;;  %v4181_v29 = vmul.f32 %v4180_v54, %v8044_v53  ;;  %v4241_v56 = vand.u32 2147483647, %v8113_v48  ;;  %v4243_v59 = vand.u32 2147483648, %v8113_v48 }
0x152c   : > { %v4194_v47 = vsub.f32 1.0, %v4193_v26  ;;  %vm4237_vm13 = vweird.f32 %v8113_v48  ;;  %v4164_v25 = vmul.f32 0.5, %v8050_v0  ;;  %v4162_v54 = vmul.f32 0.5, %v8054_v42 }
0x152d   : > { %v4275_v31 = vmul.f32 %v6420_v45, %v4274_v22  ;;  %v6424_v17 = vpop.eup %6423  ;;  %v4244_v30 = vor.u32 1.1754944e-38, %v4243_v59  ;;  %vm4242_vm15 = vcmp.eq.f32.partialorder %v4241_v56, 8.507059e+37  ;;  %v8162_v59 = vld [vmem:[%s8431_s18 + $0x10] sm:$0xff] }
0x152e   : > { %v4195_v63 = vmul.f32 %v6422_v55, %v4194_v47  ;;  %v4313_v32 = vmul.f32 %v6424_v17, %v4311_v21  ;;  %vm4318_vm3 = vweird.f32 %v6424_v17 }
0x152f   : > { %v4276_v36 = vadd.f32 %v6420_v45, %v4275_v31  ;;  %vm4319_vm9 = vmor %vm4317_vm6, %vm4318_vm3 }
0x1530   : > { %v4196_v41 = vadd.f32 %v6422_v55, %v4195_v63  ;;  %v4314_v61 = vsub.f32 1.0, %v4313_v32  ;;  %v6426_v35 = vpop.eup %6425  ;;  %v4221_v63 = vmul.f32 %v4220_v28, %v8068_v24 }
0x1531   : > { %v4280_v51 = vsel %vm4279_vm12, %v6420_v45, %v4276_v36  ;;  %v4204_v45 = vor.u32 1.1754944e-38, %v4203_v60  ;;  %v4233_v23 = vmul.f32 %v6426_v35, %v8113_v48  ;;  %vm4238_vm12 = vweird.f32 %v6426_v35 }
0x1532   : > { %v4285_v57 = vsel %vm4282_vm14, %v4284_v1, %v4280_v51  ;;  %v4200_v39 = vsel %vm8122_vm0, %v6422_v55, %v4196_v41  ;;  %v4315_v18 = vmul.f32 %v6424_v17, %v4314_v61  ;;  %v4324_v55 = vor.u32 1.1754944e-38, %v4323_v52  ;;  %vm4239_vm14 = vmor %vm4237_vm13, %vm4238_vm12 }
0x1533   : > { %v4286_v2 = vmul.f32 %v4285_v57, %v4261_v6  ;;  %v4205_v12 = vsel %vm4202_vm5, %v4204_v45, %v4200_v39  ;;  %v4234_v40 = vsub.f32 1.0, %v4233_v23  ;;  %v4161_v57 = vmul.f32 0.5, %v8038_v10 }
0x1534   : > { %v4316_v26 = vadd.f32 %v6424_v17, %v4315_v18  ;;  %v4206_v53 = vmul.f32 %v4205_v12, %v4181_v29 }
0x1535   : > { %v5665_v5 = vclamps-f32 %v4286_v2, 1.0  ;;  %v4235_v11 = vmul.f32 %v6426_v35, %v4234_v40 }
0x1536   : > { %v4320_v22 = vsel %vm4319_vm9, %v6424_v17, %v4316_v26  ;;  %v5663_v27 = vclamps-f32 %v4206_v53, 1.0  ;;  %v8167_v53 = vld [vmem:[%s8431_s18] sm:$0xff] }
0x1537   : > { %v4325_v47 = vsel %vm4322_vm11, %v4324_v55, %v4320_v22  ;;  %v4236_v31 = vadd.f32 %v6426_v35, %v4235_v11  ;;  %v4331_v46 = vadd.f32 1.0, %v5665_v5  ;;  %v8180_v11 = vld [vmem:[%s8431_s18 + $0x8] sm:$0xff] }
0x1538   : > { %v4326_v19 = vmul.f32 %v4325_v47, %v4301_v34  ;;  %v4329_v9 = vadd.f32 1.0, %v5663_v27  ;;  %v8175_v47 = vld [vmem:[%s8431_s18 + $0x18] sm:$0xff] }
0x1539   : > { %v4240_v36 = vsel %vm4239_vm14, %v6426_v35, %v4236_v31  ;;  %v4335_v51 = vmul.f32 %v4331_v46, %v4163_v44 }
0x153a   : > { %v5666_v21 = vclamps-f32 %v4326_v19, 1.0  ;;  %v4245_v13 = vsel %vm4242_vm15, %v4244_v30, %v4240_v36  ;;  %v4333_v62 = vmul.f32 %v4329_v9, %v4161_v57 }
0x153b   : > { %v4246_v17 = vmul.f32 %v4245_v13, %v4221_v63  ;;  %v5838_v13 = vld [vmem:[%s8430_s17 + $0x28] sm:$0xff] }
0x153c   : > { %v4332_v1 = vadd.f32 1.0, %v5666_v21  ;;  %v5837_v21 = vld [vmem:[%s8430_s17 + $0x20] sm:$0xff] }
0x153d   : > { %v5664_v48 = vclamps-f32 %v4246_v17, 1.0 }
0x153e   : > { %v4336_v41 = vmul.f32 %v4332_v1, %v4164_v25  ;;  %v5835_v25 = vld [vmem:[%s8430_s17 + $0x10] sm:$0xff] }
0x153f   : > { %v4330_v24 = vadd.f32 1.0, %v5664_v48 }
0x1540   : > { %v6310_v60 = vpack.i.bf16 %v4336_v41, %v4335_v51  ;;  %v4481_v32 = vpack.c.bf16 %v4336_v41, %v4335_v51 }
0x1541   : > { %v4334_v38 = vmul.f32 %v4330_v24, %v4162_v54 }
0x1542   : > { %6311 = vrot.lane.b32.xlu0 %v6310_v60, %s8487_s5  ;;  %4509 = vmatpush.bf16.msrb.mxu3 %v4481_v32 }
0x1543   : > { %v6315_v0 = vpack.i.bf16 %v4334_v38, %v4333_v62  ;;  %v4480_v6 = vpack.c.bf16 %v4334_v38, %v4333_v62 }
0x1545   : > { %6316 = vrot.lane.b32.xlu2 %v6315_v0, %s8487_s5 }
0x1546   : > { %4510 = vmatpush.bf16.msrb.mxu3 %v4480_v6 }
0x1549   : > { %5715 = vmatmul.msk.bf16.vlgmr.msrb.gmra.mxu3 %vm730_vm2, %v5837_v21 }
0x1559   : > { %5716 = vmatmul.msk.bf16.gmra.mxu3 %vm730_vm2, %v5838_v13 }
0x159f   : > { %v6317_v7 = vpop.permute.xlu2 %6316 }
0x15a0   : > { %v6319_v8 = vunpack.i.h.bf16 %v6317_v7  ;;  %v6318_v61 = vunpack.i.l.bf16 %v6317_v7 }
0x15a2   : > { %v4342_v39 = vsel %vm791_vm1, %v6319_v8, %v4334_v38  ;;  %v4339_v10 = vsel %vm791_vm1, %v6318_v61, %v4333_v62 }
0x15a3   : > { %v6325_v14 = vpack.i.bf16 %v4342_v39, %v4339_v10  ;;  %v5833_v39 = vld [vmem:[%s8430_s17] sm:$0xff]  ;;  %v5839_v10 = vld [vmem:[%s8430_s17 + $0x30] sm:$0xff] }
0x15a5   : > { %6326 = vrot.lane.b32.xlu0 %v6325_v14, %s8487_s5 }
0x15b4   : > { %v6312_v42 = vpop.permute.xlu0 %6311 }
0x15b5   : > { %v6314_v52 = vunpack.i.h.bf16 %v6312_v42  ;;  %v6313_v20 = vunpack.i.l.bf16 %v6312_v42 }
0x15b7   : > { %v4348_v35 = vsel %vm791_vm1, %v6314_v52, %v4336_v41  ;;  %v4345_v2 = vsel %vm791_vm1, %v6313_v20, %v4335_v51 }
0x15b8   : > { %v6320_v45 = vpack.i.bf16 %v4348_v35, %v4345_v2 }
0x15ba   : > { %6321 = vrot.lane.b32.xlu1 %v6320_v45, %s8487_s5  ;;  %v5840_v45 = vld [vmem:[%s8430_s17 + $0x38] sm:$0xff] }
0x1617   : > { %v6327_v18 = vpop.permute.xlu0 %6326 }
0x1618   : > { %v6329_v29 = vunpack.i.h.bf16 %v6327_v18  ;;  %v6328_v23 = vunpack.i.l.bf16 %v6327_v18 }
0x161a   : > { %v4358_v12 = vsel %vm791_vm1, %v6329_v29, %v4334_v38  ;;  %v4357_v34 = vsel %vm791_vm1, %v6328_v23, %v4333_v62 }
0x161b   : > { %v6335_v26 = vpack.i.bf16 %v4358_v12, %v4357_v34  ;;  %v4512_v34 = vpop.f32.mrf.mxu3 }
0x161d   : > { %6336 = vrot.lane.b32.xlu1 %v6335_v26, %s8481_s26 }
0x162c   : > { %v6322_v55 = vpop.permute.xlu1 %6321 }
0x162d   : > { %v6324_v28 = vunpack.i.h.bf16 %v6322_v55  ;;  %v6323_v40 = vunpack.i.l.bf16 %v6322_v55 }
0x162f   : > { %v4360_v5 = vsel %vm791_vm1, %v6324_v28, %v4336_v41  ;;  %v4359_v22 = vsel %vm791_vm1, %v6323_v40, %v4335_v51 }
0x1630   : > { %v6350_v56 = vpack.i.bf16 %v4360_v5, %v4359_v22 }
0x1632   : > { %6351 = vrot.lane.b32.xlu1 %v6350_v56, %s8483_s29  ;;  %6341 = vrot.lane.b32.xlu0 %v6350_v56, %s8480_s22 }
0x1633   : > { %6331 = vrot.lane.b32.xlu2 %v6350_v56, %s8481_s26  ;;  %s4970_s26 = scalar_lea.sflag [#allocation3], %s623_s28 }
0x163a   : > { %6366 = vrot.lane.b32.xlu1 %v6335_v26, %s8482_s25  ;;  %6356 = vrot.lane.b32.xlu0 %v6350_v56, %s8482_s25  ;;  %v4514_v56 = vpop.f32.mrf.mxu3  ;;  %s6451_s25 = sshra.s32 %s4985_s9, 4  ;;  %s6452_s25 = int_to_ptr.hbm [resolvable:$true] %s6451_s25 }
0x163b   : > { %6346 = vrot.lane.b32.xlu2 %v6335_v26, %s8480_s22  ;;  %s6453_s22 = scalar_lea.hbm %s6452_s25, 32  ;;  %p6458_p0 = scmp.lt.s32.totalorder %s6452_s25, %s8432_s19 }
0x163c   : > { %p6454_p11 = scmp.ne.s32.totalorder %s6452_s25, %s6453_s22  ;;  %p6459_p1 = scmp.lt.s32.totalorder %s6457_s23, %s6453_s22 }
0x163e   : > { %p6455_p12 = pnand %p6454_p11, %p6649_p5  ;;  %p6460_p2 = por %p6459_p1, %p6458_p0 }
0x1640   : > { %p6456_p13 = pneg %p6455_p12 }
0x1642   : > { %4662 = vperm.xlu1 %6309, %v8162_v59   ;;  %4652 = vperm.xlu0 %6304, %v8167_v53   ;;  %p6461_p3 = pnand %p6460_p2, %p6456_p13 }
0x1643   : > { %6361 = vrot.lane.b32.xlu2 %v6335_v26, %s8483_s29 }
0x164a   : > { %4667 = vperm.xlu0 %6304, %v8175_v47   ;;  %6370 = vset.pattern.permute.xlu1 %v6507_v15 }
0x164b   : > { %4657 = vperm.xlu2 %6308, %v8180_v11  }
0x1652   : > { %6371 = vset.pattern.permute.xlu0 %v6508_v16 }
0x1653   : > { %6372 = vset.pattern.permute.xlu2 %v6508_v16 }
0x168d   : > { %v6332_v19 = vpop.permute.xlu2 %6331 }
0x168e   : > { %v6334_v31 = vunpack.i.h.bf16 %v6332_v19  ;;  %v6333_v46 = vunpack.i.l.bf16 %v6332_v19 }
0x168f   : > { %v6337_v27 = vpop.permute.xlu1 %6336 }
0x1690   : > { %v5680_v30 = vpack.c.bf16 %v6334_v31, %v6333_v46  ;;  %v6339_v63 = vunpack.i.h.bf16 %v6337_v27  ;;  %v6338_v36 = vunpack.i.l.bf16 %v6337_v27 }
0x1692   : > { %5681 = vmatpush.bf16.msk.msra.mxu1 %vm6739_vm4, %v5680_v30  ;;  %v5683_v44 = vpack.c.bf16 %v6339_v63, %v6338_v36 }
0x1695   : > { %v6347_v1 = vpop.permute.xlu2 %6346 }
0x1696   : > { %5684 = vmatpush.bf16.msk.msra.mxu1 %vm6739_vm4, %v5683_v44  ;;  %v6349_v57 = vunpack.i.h.bf16 %v6347_v1  ;;  %v6348_v54 = vunpack.i.l.bf16 %v6347_v1 }
0x1698   : > { %v5699_v6 = vpack.c.bf16 %v6349_v57, %v6348_v54 }
0x1699   : > { %5685 = vmatmul.msk.bf16.vlgmr.msra.gmra.mxu1 %vm730_vm2, %v5835_v25 }
0x169d   : > { %v6362_v17 = vpop.permute.xlu2 %6361 }
0x169e   : > { %v6364_v24 = vunpack.i.h.bf16 %v6362_v17  ;;  %v6363_v62 = vunpack.i.l.bf16 %v6362_v17 }
0x16a0   : > { %v5733_v7 = vpack.c.bf16 %v6364_v24, %v6363_v62 }
0x16a4   : > { %v6352_v51 = vpop.permute.xlu1 %6351  ;;  %v6342_v41 = vpop.permute.xlu0 %6341 }
0x16a5   : > { %v6354_v9 = vunpack.i.h.bf16 %v6352_v51  ;;  %v6353_v48 = vunpack.i.l.bf16 %v6352_v51  ;;  %v6344_v60 = vunpack.i.h.bf16 %v6342_v41  ;;  %v6343_v32 = vunpack.i.l.bf16 %v6342_v41  ;;  %v4658_v1 = vpop.permute.xlu2 %4657  ;;  %v4517_v51 = vpop.f32.mrf.mxu3 }
0x16a7   : > { %v5730_v38 = vpack.c.bf16 %v6354_v9, %v6353_v48  ;;  %v5696_v0 = vpack.c.bf16 %v6344_v60, %v6343_v32 }
0x16a9   : > { %5697 = vmatpush.bf16.msk.msrb.mxu2 %vm6772_vm7, %v5696_v0  ;;  %5731 = vmatpush.bf16.msk.msrb.mxu0 %vm6776_vm8, %v5730_v38 }
0x16aa   : > { %5686 = vmatmul.msk.bf16.gmra.mxu1 %vm730_vm2, %v5836_v3 }
0x16ac   : > { %v6367_v8 = vpop.permute.xlu1 %6366  ;;  %v6357_v61 = vpop.permute.xlu0 %6356 }
0x16ad   : > { %v6359_v14 = vunpack.i.h.bf16 %v6357_v61  ;;  %v6358_v42 = vunpack.i.l.bf16 %v6357_v61  ;;  %5700 = vmatpush.bf16.msk.msrb.mxu2 %vm6772_vm7, %v5699_v6  ;;  %5734 = vmatpush.bf16.msk.msrb.mxu0 %vm6776_vm8, %v5733_v7  ;;  %v6369_v52 = vunpack.i.h.bf16 %v6367_v8  ;;  %v6368_v20 = vunpack.i.l.bf16 %v6367_v8  ;;  %v4519_v6 = vpop.f32.mrf.mxu3 }
0x16af   : > { %v5750_v35 = vpack.c.bf16 %v6359_v14, %v6358_v42  ;;  %v5753_v2 = vpack.c.bf16 %v6369_v52, %v6368_v20 }
0x16b0   : > { %5701 = vmatmul.msk.bf16.vlgmr.msrb.gmra.mxu2 %vm730_vm2, %v5833_v39  ;;  %5735 = vmatmul.msk.bf16.vlgmr.msrb.gmra.mxu0 %vm730_vm2, %v5839_v10 }
0x16b1   : > { %5751 = vmatpush.bf16.msk.msrb.mxu1 %vm6803_vm10, %v5750_v35 }
0x16b4   : > { %v4653_v19 = vpop.permute.xlu0 %4652  ;;  %v4663_v24 = vpop.permute.xlu1 %4662 }
0x16b5   : > { %5754 = vmatpush.bf16.msk.msrb.mxu1 %vm6803_vm10, %v5753_v2 }
0x16ba   : > { %5755 = vmatmul.msk.bf16.vlgmr.msrb.gmra.mxu1 %vm730_vm2, %v5841_v33 }
0x16bc   : > { %v4668_v42 = vpop.permute.xlu0 %4667 }
0x16c0   : > { %5702 = vmatmul.msk.bf16.gmra.mxu2 %vm730_vm2, %v5834_v37  ;;  %5736 = vmatmul.msk.bf16.gmra.mxu0 %vm730_vm2, %v5840_v45 }
0x16ca   : > { %5756 = vmatmul.msk.bf16.gmra.mxu1 %vm730_vm2, %v5842_v50 }
0x1716   : > { %v4435_v18 = vpop.f32.mrf.mxu1 }
0x171e   : > { %v4437_v29 = vpop.f32.mrf.mxu1 }
0x1727   : > { %v4440_v23 = vpop.f32.mrf.mxu1 }
0x172d   : > { %v4574_v26 = vpop.f32.mrf.mxu0 }
0x172f   : > { %v4442_v12 = vpop.f32.mrf.mxu1 }
0x1733   : > { %v4470_v55 = vpop.f32.mrf.mxu2 }
0x1734   : > { %v4471_v28 = vadd.f32 %v4470_v55, %v4435_v18 }
0x1735   : > { %v4576_v21 = vpop.f32.mrf.mxu0 }
0x1736   : > { %v4522_v40 = vadd.f32 %v4512_v34, %v4471_v28 }
0x1737   : > { %v4636_v5 = vpop.f32.mrf.mxu1 }
0x1738   : > { %v4584_v22 = vadd.f32 %v4574_v26, %v4522_v40 }
0x173a   : > { %v4646_v31 = vadd.f32 %v4636_v5, %v4584_v22 }
0x173b   : > { %v4472_v46 = vpop.f32.mrf.mxu2 }
0x173c   : > { %v4670_v30 = vadd.f32 %v4653_v19, %v4646_v31  ;;  %v4473_v27 = vadd.f32 %v4472_v46, %v4437_v29 }
0x173d   : > { %v4579_v48 = vpop.f32.mrf.mxu0 }
0x173e   : > { %v4523_v63 = vadd.f32 %v4514_v56, %v4473_v27  ;;  %v4674_v36 = vsel %vm730_vm2, %v4670_v30, 0.0 }
0x173f   : > { %4675 = vadd.xlane.f32.xlu2 %v4674_v36  ;;  %v4638_v44 = vpop.f32.mrf.mxu1 }
0x1740   : > { %v4585_v25 = vadd.f32 %v4576_v21, %v4523_v63 }
0x1742   : > { %v4647_v13 = vadd.f32 %v4638_v44, %v4585_v25 }
0x1743   : > { %v4475_v17 = vpop.f32.mrf.mxu2 }
0x1744   : > { %v4671_v41 = vadd.f32 %v4658_v1, %v4647_v13  ;;  %v4476_v9 = vadd.f32 %v4475_v17, %v4440_v23 }
0x1745   : > { %v4581_v61 = vpop.f32.mrf.mxu0 }
0x1746   : > { %v4524_v60 = vadd.f32 %v4517_v51, %v4476_v9  ;;  %v4677_v32 = vsel %vm730_vm2, %v4671_v41, 0.0 }
0x1747   : > { %4678 = vadd.xlane.f32.xlu1 %v4677_v32  ;;  %v4641_v57 = vpop.f32.mrf.mxu1 }
0x1748   : > { %v4586_v54 = vadd.f32 %v4579_v48, %v4524_v60 }
0x174a   : > { %v4648_v3 = vadd.f32 %v4641_v57, %v4586_v54 }
0x174b   : > { %v4477_v62 = vpop.f32.mrf.mxu2 }
0x174c   : > { %v4672_v38 = vadd.f32 %v4663_v24, %v4648_v3  ;;  %v4478_v0 = vadd.f32 %v4477_v62, %v4442_v12 }
0x174e   : > { %v4525_v7 = vadd.f32 %v4519_v6, %v4478_v0  ;;  %v4680_v8 = vsel %vm730_vm2, %v4672_v38, 0.0 }
0x174f   : > { %4681 = vadd.xlane.f32.xlu0 %v4680_v8  ;;  %v4643_v10 = vpop.f32.mrf.mxu1 }
0x1750   : > { %v4587_v39 = vadd.f32 %v4581_v61, %v4525_v7 }
0x1752   : > { %v4649_v14 = vadd.f32 %v4643_v10, %v4587_v39 }
0x1754   : > { %v4673_v52 = vadd.f32 %v4668_v42, %v4649_v14 }
0x1756   : > { %v4683_v20 = vsel %vm730_vm2, %v4673_v52, 0.0 }
0x1757   : > { %4684 = vadd.xlane.f32.xlu2 %v4683_v20 }
0x17b2   : > { %v4676_v35 = vpop.xlane.xlu2 %4675 }
0x17ba   : > { %v4679_v2 = vpop.xlane.xlu1 %4678 }
0x17bb   : > { %v4686_v37 = vadd.f32 %v4679_v2, %v4676_v35 }
0x17c2   : > { %v4682_v33 = vpop.xlane.xlu0 %4681 }
0x17c3   : > { %v4687_v45 = vadd.f32 %v4686_v37, %v4682_v33 }
0x17ca   : > { %v4685_v50 = vpop.xlane.xlu2 %4684 }
0x17cb   : > { %v4688_v18 = vadd.f32 %v4687_v45, %v4685_v50 }
0x17cd   : > { %v4689_v29 = vrot.slane %v4688_v18, 4 }
0x17cf   : > { %v4690_v23 = vadd.f32 %v4689_v29, %v4688_v18 }
0x17d1   : > { %v4691_v12 = vrot.slane %v4690_v23, 2 }
0x17d3   : > { %v4692_v34 = vadd.f32 %v4691_v12, %v4690_v23 }
0x17d5   : > { %v4693_v26 = vrot.slane %v4692_v34, 1 }
0x17d7   : > { %v4694_v55 = vadd.f32 %v4693_v26, %v4692_v34 }
0x17d9   : > { %v4695_v28 = vmul.f32 0.0009765625, %v4694_v55 }
0x17db   : > { %v8247_v40 = vsub.f32 %v4672_v38, %v4695_v28  ;;  %v4697_v5 = vsub.f32 %v4671_v41, %v4695_v28  ;;  %v8249_v22 = vsub.f32 %v4670_v30, %v4695_v28  ;;  %v8258_v63 = vsub.f32 %v4673_v52, %v4695_v28 }
0x17dd   : > { %v4702_v56 = vmul.f32 %v8247_v40, %v8247_v40  ;;  %v4701_v19 = vmul.f32 %v4697_v5, %v4697_v5  ;;  %v4700_v31 = vmul.f32 %v8249_v22, %v8249_v22  ;;  %v4703_v30 = vmul.f32 %v8258_v63, %v8258_v63 }
0x17df   : > { %v4710_v46 = vsel %vm730_vm2, %v4702_v56, 0.0  ;;  %v4707_v21 = vsel %vm730_vm2, %v4701_v19, 0.0  ;;  %v4704_v27 = vsel %vm730_vm2, %v4700_v31, 0.0  ;;  %v4713_v36 = vsel %vm730_vm2, %v4703_v30, 0.0 }
0x17e0   : > { %4711 = vadd.xlane.f32.xlu2 %v4710_v46  ;;  %4708 = vadd.xlane.f32.xlu0 %v4707_v21 }
0x17e1   : > { %4705 = vadd.xlane.f32.xlu1 %v4704_v27 }
0x17e9   : > { %4714 = vadd.xlane.f32.xlu1 %v4713_v36 }
0x1802   : > { %4766 = vperm.xlu1 %6370, %v8167_v53  }
0x180a   : > { %6373 = vset.pattern.permute.xlu1 %v6508_v16 }
0x1853   : > { %v4709_v44 = vpop.xlane.xlu0 %4708  ;;  %v4712_v13 = vpop.xlane.xlu2 %4711 }
0x1854   : > { %v4706_v25 = vpop.xlane.xlu1 %4705 }
0x1855   : > { %v4716_v1 = vadd.f32 %v4709_v44, %v4706_v25 }
0x1857   : > { %v4717_v17 = vadd.f32 %v4716_v1, %v4712_v13 }
0x185c   : > { %v4715_v51 = vpop.xlane.xlu1 %4714 }
0x185d   : > { %v4718_v41 = vadd.f32 %v4717_v17, %v4715_v51 }
0x185f   : > { %v4719_v9 = vrot.slane %v4718_v41, 4 }
0x1861   : > { %v4720_v48 = vadd.f32 %v4719_v9, %v4718_v41 }
0x1863   : > { %v4721_v60 = vrot.slane %v4720_v48, 2 }
0x1865   : > { %v4722_v32 = vadd.f32 %v4721_v60, %v4720_v48 }
0x1867   : > { %v4723_v57 = vrot.slane %v4722_v32, 1 }
0x1869   : > { %v4724_v54 = vadd.f32 %v4723_v57, %v4722_v32 }
0x186b   : > { %v4725_v3 = vmul.f32 0.0009765625, %v4724_v54 }
0x186d   : > { %v4726_v24 = vadd.f32 1e-05, %v4725_v3 }
0x186f   : > { %6427 = vrsqrt.f32 %v4726_v24  ;;  %vm4733_vm4 = vweird.f32 %v4726_v24 }
0x1874   : > { %v4767_v52 = vpop.permute.xlu1 %4766 }
0x1875   : > { %v6428_v62 = vpop.eup %6427 }
0x1876   : > { %v4728_v38 = vmul.f32 %v6428_v62, %v4726_v24  ;;  %vm4734_vm1 = vweird.f32 %v6428_v62 }
0x1877   : > { %vm4735_vm7 = vmor %vm4733_vm4, %vm4734_vm1 }
0x1878   : > { %v4729_v0 = vmul.f32 %v6428_v62, %v4728_v38 }
0x187a   : > { %v4730_v16 = vmul.f32 0.5, %v4729_v0 }
0x187c   : > { %v4731_v6 = vsub.f32 1.5, %v4730_v16 }
0x187e   : > { %v4732_v7 = vmul.f32 %v6428_v62, %v4731_v6 }
0x1880   : > { %v4736_v8 = vsel %vm4735_vm7, %v6428_v62, %v4732_v7 }
0x1881   : > { %v4739_v61 = vmul.f32 %v4736_v8, %v8162_v59  ;;  %v4738_v39 = vmul.f32 %v4736_v8, %v8180_v11  ;;  %v4737_v10 = vmul.f32 %v4736_v8, %v8167_v53  ;;  %v4740_v14 = vmul.f32 %v4736_v8, %v8175_v47 }
0x1883   : > { %4753 = vperm.xlu1 %6373, %v4739_v61   ;;  %4748 = vperm.xlu2 %6372, %v4738_v39  }
0x1884   : > { %4743 = vperm.xlu0 %6371, %v4737_v10  }
0x188b   : > { %6375 = vset.pattern.permute.xlu1 %v6507_v15  ;;  %4758 = vperm.xlu2 %6372, %v4740_v14  }
0x188c   : > { %6376 = vset.pattern.permute.xlu0 %v6507_v15  ;;  %4774 = vperm.xlu1 %6375, %v8162_v59  }
0x188d   : > { %4778 = vperm.xlu0 %6376, %v8175_v47  }
0x1893   : > { %6374 = vset.pattern.permute.xlu2 %v6507_v15 }
0x1894   : > { %4770 = vperm.xlu2 %6374, %v8180_v11  }
0x18dd   : > { %v4749_v42 = vpop.permute.xlu2 %4748 }
0x18de   : > { %v4762_v20 = vmul.f32 %v4749_v42, %v4697_v5 }
0x18e5   : > { %v4759_v53 = vpop.permute.xlu2 %4758 }
0x18ee   : > { %v4771_v35 = vpop.permute.xlu2 %4770 }
0x18ef   : > { %v8275_v2 = vadd.f32 %v4771_v35, %v4762_v20 }
0x18f1   : > { %v8278_v33 = vmul.f32 0.70710677, %v8275_v2 }
0x18f3   : > { %v4833_v37 = vmul.f32 %v8278_v33, %v8278_v33 }
0x18f5   : > { %v8282_v59 = vmin.f32 %v4833_v37, 16.0  ;;  %v4754_v47 = vpop.permute.xlu1 %4753 }
0x18f6   : > { %v4744_v45 = vpop.permute.xlu0 %4743  ;;  %v4763_v56 = vmul.f32 %v4754_v47, %v8247_v40 }
0x18f7   : > { %v4835_v15 = vmul.f32 2.1237322e-06, %v8282_v59  ;;  %v4846_v11 = vmul.f32 3.8918573e-05, %v8282_v59  ;;  %v4761_v50 = vmul.f32 %v4744_v45, %v8249_v22  ;;  %v4764_v22 = vmul.f32 %v4759_v53, %v8258_v63 }
0x18f9   : > { %v4836_v18 = vadd.f32 0.00028619796, %v4835_v15  ;;  %v4847_v29 = vadd.f32 0.001143296, %v4846_v11  ;;  %v8287_v23 = vadd.f32 %v4767_v52, %v4761_v50 }
0x18fb   : > { %v4837_v12 = vmul.f32 %v4836_v18, %v8282_v59  ;;  %v4848_v34 = vmul.f32 %v4847_v29, %v8282_v59  ;;  %v8292_v26 = vmul.f32 0.70710677, %v8287_v23 }
0x18fd   : > { %v4838_v55 = vadd.f32 0.0036580483, %v4837_v12  ;;  %v4849_v28 = vadd.f32 0.014752088, %v4848_v34  ;;  %v4793_v5 = vmul.f32 %v8292_v26, %v8292_v26 }
0x18fe   : > { %v4775_v19 = vpop.permute.xlu1 %4774 }
0x18ff   : > { %v4850_v31 = vmul.f32 %v4849_v28, %v8282_v59  ;;  %v8299_v46 = vmin.f32 %v4793_v5, 16.0  ;;  %v4779_v21 = vpop.permute.xlu0 %4778  ;;  %v8301_v27 = vadd.f32 %v4775_v19, %v4763_v56  ;;  %v4839_v30 = vmul.f32 %v4838_v55, %v8282_v59 }
0x1900   : > { %v8304_v36 = vadd.f32 %v4779_v21, %v4764_v22 }
0x1901   : > { %v4851_v44 = vadd.f32 0.112945676, %v4850_v31  ;;  %v4795_v25 = vmul.f32 2.1237322e-06, %v8299_v46  ;;  %v4806_v1 = vmul.f32 3.8918573e-05, %v8299_v46 }
0x1902   : > { %v8309_v40 = vmul.f32 0.70710677, %v8304_v36  ;;  %v8313_v17 = vmul.f32 0.70710677, %v8301_v27  ;;  %v4840_v51 = vadd.f32 0.05243302, %v4839_v30 }
0x1903   : > { %v4852_v63 = vmul.f32 %v4851_v44, %v8282_v59  ;;  %v4796_v13 = vadd.f32 0.00028619796, %v4795_v25  ;;  %v4807_v41 = vadd.f32 0.001143296, %v4806_v1 }
0x1904   : > { %v4913_v9 = vmul.f32 %v8309_v40, %v8309_v40  ;;  %v4873_v32 = vmul.f32 %v8313_v17, %v8313_v17  ;;  %v4841_v38 = vmul.f32 %v4840_v51, %v8282_v59 }
0x1905   : > { %v4853_v48 = vadd.f32 0.4994258, %v4852_v63  ;;  %v4797_v60 = vmul.f32 %v4796_v13, %v8299_v46  ;;  %v4808_v57 = vmul.f32 %v4807_v41, %v8299_v46 }
0x1906   : > { %v8321_v54 = vmin.f32 %v4913_v9, 16.0  ;;  %v8324_v62 = vmin.f32 %v4873_v32, 16.0  ;;  %v4842_v53 = vadd.f32 0.18741608, %v4841_v38 }
0x1907   : > { %v4854_v3 = vmul.f32 %v4853_v48, %v8282_v59  ;;  %v4798_v24 = vadd.f32 0.0036580483, %v4797_v60  ;;  %v4809_v0 = vadd.f32 0.014752088, %v4808_v57 }
0x1908   : > { %v4915_v16 = vmul.f32 2.1237322e-06, %v8321_v54  ;;  %v4926_v6 = vmul.f32 3.8918573e-05, %v8321_v54  ;;  %v4875_v8 = vmul.f32 2.1237322e-06, %v8324_v62  ;;  %v4843_v29 = vmul.f32 %v4842_v53, %v8282_v59 }
0x1909   : > { %v4855_v7 = vadd.f32 1.0, %v4854_v3  ;;  %v4810_v61 = vmul.f32 %v4809_v0, %v8299_v46  ;;  %v4886_v14 = vmul.f32 3.8918573e-05, %v8324_v62  ;;  %v4799_v42 = vmul.f32 %v4798_v24, %v8299_v46 }
0x190a   : > { %v4916_v39 = vadd.f32 0.00028619796, %v4915_v16  ;;  %v4927_v10 = vadd.f32 0.001143296, %v4926_v6  ;;  %v4876_v37 = vadd.f32 0.00028619796, %v4875_v8 }
0x190b   : > { %6429 = vrcp.f32 %v4855_v7  ;;  %v4811_v52 = vadd.f32 0.112945676, %v4810_v61  ;;  %v4887_v47 = vadd.f32 0.001143296, %v4886_v14  ;;  %v4800_v15 = vadd.f32 0.05243302, %v4799_v42 }
0x190c   : > { %v4917_v20 = vmul.f32 %v4916_v39, %v8321_v54  ;;  %v4928_v35 = vmul.f32 %v4927_v10, %v8321_v54  ;;  %v4877_v50 = vmul.f32 %v4876_v37, %v8324_v62  ;;  %v4844_v44 = vadd.f32 1.1283791, %v4843_v29 }
0x190d   : > { %v4812_v45 = vmul.f32 %v4811_v52, %v8299_v46  ;;  %v4888_v18 = vmul.f32 %v4887_v47, %v8324_v62  ;;  %v4801_v31 = vmul.f32 %v4800_v15, %v8299_v46  ;;  %v4865_v63 = vand.u32 2147483647, %v4855_v7 }
0x190e   : > { %v4929_v11 = vadd.f32 0.014752088, %v4928_v35  ;;  %v4918_v34 = vadd.f32 0.0036580483, %v4917_v20  ;;  %v4878_v19 = vadd.f32 0.0036580483, %v4877_v50  ;;  %vm4861_vm10 = vweird.f32 %v4855_v7 }
0x190f   : > { %v4813_v12 = vadd.f32 0.4994258, %v4812_v45  ;;  %v4889_v5 = vadd.f32 0.014752088, %v4888_v18  ;;  %v4867_v13 = vand.u32 2147483648, %v4855_v7  ;;  %v4845_v38 = vmul.f32 %v4844_v44, %v8278_v33 }
0x1910   : > { %v4930_v28 = vmul.f32 %v4929_v11, %v8321_v54  ;;  %v4919_v59 = vmul.f32 %v4918_v34, %v8321_v54  ;;  %v4879_v48 = vmul.f32 %v4878_v19, %v8324_v62  ;;  %v4802_v60 = vadd.f32 0.18741608, %v4801_v31 }
0x1911   : > { %v6430_v55 = vpop.eup %6429  ;;  %v4814_v22 = vmul.f32 %v4813_v12, %v8299_v46  ;;  %v4890_v30 = vmul.f32 %v4889_v5, %v8324_v62  ;;  %vm4866_vm3 = vcmp.eq.f32.partialorder %v4865_v63, 8.507059e+37  ;;  %v4868_v0 = vor.u32 1.1754944e-38, %v4867_v13 }
0x1912   : > { %v4857_v56 = vmul.f32 %v6430_v55, %v4855_v7  ;;  %v4931_v21 = vadd.f32 0.112945676, %v4930_v28  ;;  %vm4862_vm8 = vweird.f32 %v6430_v55  ;;  %v4920_v57 = vadd.f32 0.05243302, %v4919_v59 }
0x1913   : > { %v4815_v1 = vadd.f32 1.0, %v4814_v22  ;;  %v4891_v41 = vadd.f32 0.112945676, %v4890_v30  ;;  %vm4863_vm0 = vmor %vm4861_vm10, %vm4862_vm8  ;;  %v4880_v8 = vadd.f32 0.05243302, %v4879_v48  ;;  %v4803_v7 = vmul.f32 %v4802_v60, %v8299_v46 }
0x1914   : > { %v4858_v25 = vsub.f32 1.0, %v4857_v56  ;;  %v4932_v51 = vmul.f32 %v4931_v21, %v8321_v54  ;;  %v4921_v42 = vmul.f32 %v4920_v57, %v8321_v54  ;;  %v4786_v37 = vmul.f32 0.5, %v8275_v2 }
0x1915   : > { %6431 = vrcp.f32 %v4815_v1  ;;  %v4892_v24 = vmul.f32 %v4891_v41, %v8324_v62  ;;  %v4881_v35 = vmul.f32 %v4880_v8, %v8324_v62  ;;  %v4804_v15 = vadd.f32 1.1283791, %v4803_v7 }
0x1916   : > { %v4859_v9 = vmul.f32 %v6430_v55, %v4858_v25  ;;  %v4933_v3 = vadd.f32 0.4994258, %v4932_v51  ;;  %v4827_v11 = vand.u32 2147483648, %v4815_v1  ;;  %v4922_v50 = vadd.f32 0.18741608, %v4921_v42 }
0x1917   : > { %v4893_v61 = vadd.f32 0.4994258, %v4892_v24  ;;  %v4825_v29 = vand.u32 2147483647, %v4815_v1  ;;  %v4882_v34 = vadd.f32 0.18741608, %v4881_v35  ;;  %vm4821_vm6 = vweird.f32 %v4815_v1 }
0x1918   : > { %v4860_v32 = vadd.f32 %v6430_v55, %v4859_v9  ;;  %v4934_v6 = vmul.f32 %v4933_v3, %v8321_v54  ;;  %v4828_v56 = vor.u32 1.1754944e-38, %v4827_v11  ;;  %v4923_v2 = vmul.f32 %v4922_v50, %v8321_v54 }
0x1919   : > { %v4894_v33 = vmul.f32 %v4893_v61, %v8324_v62  ;;  %v4805_v22 = vmul.f32 %v4804_v15, %v8292_v26  ;;  %vm4826_vm11 = vcmp.eq.f32.partialorder %v4825_v29, 8.507059e+37  ;;  %v4883_v30 = vmul.f32 %v4882_v34, %v8324_v62 }
0x191a   : > { %v4864_v16 = vsel %vm4863_vm0, %v6430_v55, %v4860_v32  ;;  %v4935_v53 = vadd.f32 1.0, %v4934_v6  ;;  %v4785_v51 = vmul.f32 0.5, %v8287_v23  ;;  %v4788_v42 = vmul.f32 0.5, %v8304_v36 }
0x191b   : > { %v4869_v39 = vsel %vm4866_vm3, %v4868_v0, %v4864_v16  ;;  %v6432_v10 = vpop.eup %6431  ;;  %v4895_v45 = vadd.f32 1.0, %v4894_v33  ;;  %v4884_v41 = vadd.f32 1.1283791, %v4883_v30  ;;  %v4787_v33 = vmul.f32 0.5, %v8301_v27 }
0x191c   : > { %v4870_v14 = vmul.f32 %v4869_v39, %v4845_v38  ;;  %v4817_v52 = vmul.f32 %v6432_v10, %v4815_v1  ;;  %6433 = vrcp.f32 %v4935_v53  ;;  %vm4822_vm5 = vweird.f32 %v6432_v10 }
0x191d   : > { %6435 = vrcp.f32 %v4895_v45  ;;  %vm4823_vm9 = vmor %vm4821_vm6, %vm4822_vm5  ;;  %v4924_v1 = vadd.f32 1.1283791, %v4923_v2  ;;  %v4947_v59 = vand.u32 2147483648, %v4935_v53  ;;  %v4945_v26 = vand.u32 2147483647, %v4935_v53 }
0x191e   : > { %v5758_v20 = vclamps-f32 %v4870_v14, 1.0  ;;  %v4818_v47 = vsub.f32 1.0, %v4817_v52  ;;  %vm4941_vm13 = vweird.f32 %v4935_v53  ;;  %v4907_v32 = vand.u32 2147483648, %v4895_v45 }
0x191f   : > { %v4948_v62 = vor.u32 1.1754944e-38, %v4947_v59  ;;  %v4905_v3 = vand.u32 2147483647, %v4895_v45  ;;  %v4925_v38 = vmul.f32 %v4924_v1, %v8309_v40  ;;  %vm4946_vm1 = vcmp.eq.f32.partialorder %v4945_v26, 8.507059e+37 }
0x1920   : > { %v4954_v46 = vadd.f32 1.0, %v5758_v20  ;;  %v4819_v18 = vmul.f32 %v6432_v10, %v4818_v47  ;;  %vm4901_vm4 = vweird.f32 %v4895_v45  ;;  %v4908_v61 = vor.u32 1.1754944e-38, %v4907_v32 }
0x1921   : > { %v4885_v39 = vmul.f32 %v4884_v41, %v8313_v17  ;;  %vm4906_vm8 = vcmp.eq.f32.partialorder %v4905_v3, 8.507059e+37 }
0x1922   : > { %v4958_v12 = vmul.f32 %v4954_v46, %v4786_v37  ;;  %v4820_v55 = vadd.f32 %v6432_v10, %v4819_v18  ;;  %v6434_v28 = vpop.eup %6433 }
0x1923   : > { %v4937_v31 = vmul.f32 %v6434_v28, %v4935_v53  ;;  %v6436_v44 = vpop.eup %6435  ;;  %vm4942_vm12 = vweird.f32 %v6434_v28 }
0x1924   : > { %v4962_v5 = vadd.f32 %v4958_v12, %v7873_v4  ;;  %v4824_v19 = vsel %vm4823_vm9, %v6432_v10, %v4820_v55  ;;  %v4897_v63 = vmul.f32 %v6436_v44, %v4895_v45  ;;  %vm4943_vm14 = vmor %vm4941_vm13, %vm4942_vm12  ;;  %vm4902_vm15 = vweird.f32 %v6436_v44 }
0x1925   : > { %v4829_v21 = vsel %vm4826_vm11, %v4828_v56, %v4824_v19  ;;  %v4938_v4 = vsub.f32 1.0, %v4937_v31  ;;  %vm4903_vm7 = vmor %vm4901_vm4, %vm4902_vm15 }
0x1926   : > { %4966 = vst.msk [vmem:[%s8360_s6 + $0x8] sm:$0xff] %vm730_vm2, %v4962_v5  ;;  %v4830_v25 = vmul.f32 %v4829_v21, %v4805_v22  ;;  %v4898_v9 = vsub.f32 1.0, %v4897_v63 }
0x1927   : > { %v4939_v13 = vmul.f32 %v6434_v28, %v4938_v4 }
0x1928   : > { %v5757_v54 = vclamps-f32 %v4830_v25, 1.0  ;;  %v4899_v57 = vmul.f32 %v6436_v44, %v4898_v9 }
0x1929   : > { %v4940_v60 = vadd.f32 %v6434_v28, %v4939_v13 }
0x192a   : > { %v4953_v48 = vadd.f32 1.0, %v5757_v54  ;;  %v4900_v23 = vadd.f32 %v6436_v44, %v4899_v57 }
0x192b   : > { %v4944_v0 = vsel %vm4943_vm14, %v6434_v28, %v4940_v60 }
0x192c   : > { %v4957_v24 = vmul.f32 %v4953_v48, %v4785_v51  ;;  %v4949_v16 = vsel %vm4946_vm1, %v4948_v62, %v4944_v0  ;;  %v4904_v7 = vsel %vm4903_vm7, %v6436_v44, %v4900_v23 }
0x192d   : > { %v4950_v8 = vmul.f32 %v4949_v16, %v4925_v38  ;;  %v4909_v10 = vsel %vm4906_vm8, %v4908_v61, %v4904_v7 }
0x192e   : > { %v4961_v6 = vadd.f32 %v4957_v24, %v7870_v58  ;;  %v4910_v14 = vmul.f32 %v4909_v10, %v4885_v39 }
0x192f   : > { %v5760_v40 = vclamps-f32 %v4950_v8, 1.0 }
0x1930   : > { %4965 = vst.msk [vmem:[%s8360_s6] sm:$0xff] %vm730_vm2, %v4961_v6  ;;  %v5759_v53 = vclamps-f32 %v4910_v14, 1.0 }
0x1931   : > { %v4956_v58 = vadd.f32 1.0, %v5760_v40 }
0x1932   : > { %v4955_v52 = vadd.f32 1.0, %v5759_v53 }
0x1933   : > { %v4960_v17 = vmul.f32 %v4956_v58, %v4788_v42 }
0x1934   : > { %v4959_v35 = vmul.f32 %v4955_v52, %v4787_v33 }
0x1935   : > { %v4964_v20 = vadd.f32 %v4960_v17, %v7856_v49 }
0x1936   : > { %v4963_v36 = vadd.f32 %v4959_v35, %v7859_v43 }
0x1937   : > { %4968 = vst.msk [vmem:[%s8360_s6 + $0x18] sm:$0xff] %vm730_vm2, %v4964_v20 }
0x1938   : > { %4967 = vst.msk [vmem:[%s8360_s6 + $0x10] sm:$0xff] %vm730_vm2, %v4963_v36 }
0x1939   : > { %6464 = shalt.err (!%p6461_p3)
}
0x193a   : > { %s6509_s28 = smov 128   ;;  %s6510_s4 = smov 8  }
0x193b   : > { %5848 = dma.vmem_to_hbm [thread:$0]  (%p6649_p5), %s4983_s1, 512, %s4985_s9, %s4970_s26, %s6509_s28, %s6509_s28, %s6510_s4  }
0x193c PF: > { %p5854_p4 = scmp.ge.s32.totalorder %s6499_s21, 2  ;;  %s4999_s7 = sand.u32 1, %s6487_s0  }
0x193d   : > { %s5000_s2 = scalar_lea.sflag [#allocation3], %s4999_s7 }
0x193e   : > { %p5851_p7 = pnand %p5854_p4, %p6653_p6 }
0x1940   : > { %p5852_p8 = pneg %p5851_p7 }
0x1942   : > { %6482 = dma.done.wait (%p5852_p8), %s5000_s2, 512  }
0x1943   : > { %6484 = vsyncadd (%p5852_p8), %s5000_s2, 4294966784  ;;  %s8493_s21 = sld [smem:[#allocation6_spill]]  ;;  %s8496_s0 = smov %s6491_s30 }
0x1944   : > { %s8494_s5 = sld [smem:[#allocation5_spill]] }
0x1945   : > { %s8495_s20 = sld [smem:[#allocation7_spill]] }
0x1949   : > { %p29_p9 = scmp.ge.s32.totalorder %s8493_s21, 4  }
0x194a   : > { %s8497_s30 = smov %s8494_s5 }
0x194b   :  { %31 = sbr.rel (!%p29_p9) target bundleno = 14 (0xe), region = 165 }
0x1950   :  { %5006 = vsyncpa [#allocation3], 1 }
0x1951   :  { %5008 = vsyncpa [#allocation3 + $0x1], 1 }

</bundles_post_ra>
